<compile_context>
chip_gen: v5e
topology: v5e:2x2
jax: 0.10.0
libtpu: 0.0.40
codegen_flags: <defaults>
</compile_context>

<pallas_src>
import functools

import jax
import jax.numpy as jnp
from jax.experimental import pallas as pl
from jax.experimental.pallas import tpu as pltpu

IN_DIM = 28 * 28       # 784
H1 = 784
H2 = 450
OUT = 1

IN_PAD = 896           # 7 * 128
H1_PAD = 896           # 7 * 128
H2_PAD = 512           # 4 * 128
OUT_PAD = 128          # lane-dense output tile


def _round_up(x, m):
    return (x + m - 1) // m * m


def mlp_kernel(x_ref, w1_ref, b1_ref, w2_ref, b2_ref, w3_ref, b3_ref, o_ref):
    # x, w1, w2 are bf16 (MXU inputs); accumulation is f32; bias/ReLU in f32 (VPU).
    x = x_ref[...]                                                     # (bb, IN_PAD) bf16

    # fc1: MXU matmul, f32 accumulate
    h1 = jnp.dot(x, w1_ref[...], preferred_element_type=jnp.float32)   # (bb, H1_PAD) f32
    h1 = jnp.maximum(h1 + b1_ref[...], 0.0)

    # fc2: cast activations to bf16 only at the MXU input
    h2 = jnp.dot(h1.astype(jnp.bfloat16), w2_ref[...],
                 preferred_element_type=jnp.float32)                   # (bb, H2_PAD) f32
    h2 = jnp.maximum(h2 + b2_ref[...], 0.0)

    # fc3 (out_features = 1): VPU multiply + cross-lane reduction (XLU),
    # keeps the MXU free and avoids a 1-lane result layout.
    h3 = jnp.sum(h2 * w3_ref[...], axis=-1, keepdims=True)             # (bb, 1) f32

    # bias is pre-broadcast to (1, 128): the add makes the output lane-dense,
    # so the store is a full unmasked vst. Column 0 is sliced out in the wrapper.
    o_ref[...] = jnp.maximum(h3 + b3_ref[...], 0.0).astype(o_ref.dtype)


def mlp_forward(x, params, *, block_b=256):
    """x: (B, 1, 28, 28) float32 NCHW. Returns (B, 1) float32."""
    w1, b1, w2, b2, w3, b3 = params
    B = x.shape[0]
    x_flat = x.reshape(B, -1).astype(jnp.float32)
    assert x_flat.shape[1] == IN_DIM

    # Batch tile: 256 for real workloads (MXU-bound); shrink for tiny test batches.
    bb = min(block_b, _round_up(B, 8))
    B_pad = _round_up(B, bb)
    grid = (B_pad // bb,)

    # --- one-time glue: zero-pad to 128-aligned lane dims and cast MXU inputs to bf16 ---
    xp = jnp.zeros((B_pad, IN_PAD), jnp.bfloat16)
    xp = xp.at[:B, :IN_DIM].set(x_flat.astype(jnp.bfloat16))

    w1p = jnp.zeros((IN_PAD, H1_PAD), jnp.bfloat16).at[:IN_DIM, :H1].set(w1.astype(jnp.bfloat16))
    b1p = jnp.zeros((1, H1_PAD), jnp.float32).at[:, :H1].set(b1)
    w2p = jnp.zeros((H1_PAD, H2_PAD), jnp.bfloat16).at[:H1, :H2].set(w2.astype(jnp.bfloat16))
    b2p = jnp.zeros((1, H2_PAD), jnp.float32).at[:, :H2].set(b2)
    # fc3 weight as a (1, H2_PAD) row for the VPU reduction (w3 is (H2, 1))
    w3p = jnp.zeros((1, H2_PAD), jnp.float32).at[:, :H2].set(w3[:, 0][None, :])
    # fc3 bias pre-broadcast across 128 lanes so the output store is lane-dense
    b3p = jnp.broadcast_to(b3.reshape(1, 1), (1, OUT_PAD)).astype(jnp.float32)

    in_specs = [
        pl.BlockSpec((bb, IN_PAD), lambda i: (i, 0)),        # x tile (batch-tiled)
        pl.BlockSpec((IN_PAD, H1_PAD), lambda i: (0, 0)),    # w1 (full, bf16)
        pl.BlockSpec((1, H1_PAD), lambda i: (0, 0)),         # b1
        pl.BlockSpec((H1_PAD, H2_PAD), lambda i: (0, 0)),    # w2 (full, bf16)
        pl.BlockSpec((1, H2_PAD), lambda i: (0, 0)),         # b2
        pl.BlockSpec((1, H2_PAD), lambda i: (0, 0)),         # w3 row (f32, VPU path)
        pl.BlockSpec((1, OUT_PAD), lambda i: (0, 0)),        # b3 (lane-broadcast)
    ]
    out_spec = pl.BlockSpec((bb, OUT_PAD), lambda i: (i, 0))

    flops = 2 * B_pad * (IN_PAD * H1_PAD + H1_PAD * H2_PAD + H2_PAD)
    bytes_accessed = (
        IN_PAD * H1_PAD * 2 + H1_PAD * H2_PAD * 2            # bf16 weights
        + (H1_PAD + H2_PAD + H2_PAD + OUT_PAD) * 4           # biases + w3 row
        + B_pad * IN_PAD * 2                                  # x in
        + B_pad * OUT_PAD * 4                                 # out
    )

    out = pl.pallas_call(
        mlp_kernel,
        out_shape=jax.ShapeDtypeStruct((B_pad, OUT_PAD), jnp.float32),
        grid_spec=pltpu.PrefetchScalarGridSpec(
            num_scalar_prefetch=0,
            grid=grid,
            in_specs=in_specs,
            out_specs=out_spec,
        ),
        compiler_params=pltpu.CompilerParams(
            dimension_semantics=("parallel",),   # shards batch steps across TCs on v7x
        ),
        cost_estimate=pl.CostEstimate(
            flops=flops, transcendentals=0, bytes_accessed=bytes_accessed),
    )(xp, w1p, b1p, w2p, b2p, w3p, b3p)

    # slice off batch padding and the lane-dense padding (all 128 lanes hold the result)
    return out[:B, :OUT]


def init_params(key):
    """Deterministic init mimicking PyTorch nn.Linear default (U[-1/sqrt(in), 1/sqrt(in)])."""
    ks = jax.random.split(key, 6)

    def linear(kw, kb, fan_in, fan_out):
        bound = 1.0 / jnp.sqrt(fan_in)
        w = jax.random.uniform(kw, (fan_in, fan_out), jnp.float32, -bound, bound)
        b = jax.random.uniform(kb, (1, fan_out), jnp.float32, -bound, bound)
        return w, b

    w1, b1 = linear(ks[0], ks[1], IN_DIM, H1)
    w2, b2 = linear(ks[2], ks[3], H1, H2)
    w3, b3 = linear(ks[4], ks[5], H2, OUT)
    return (w1, b1, w2, b2, w3, b3)


def mlp_reference(x, params):
    """Pure-JAX f32 reference of the PyTorch forward pass."""
    w1, b1, w2, b2, w3, b3 = params
    h = x.reshape(x.shape[0], -1)
    h = jnp.maximum(h @ w1 + b1, 0.0)
    h = jnp.maximum(h @ w2 + b2, 0.0)
    h = jnp.maximum(h @ w3 + b3, 0.0)
    return h


if __name__ == "__main__":
    key = jax.random.PRNGKey(0)
    kp, kx = jax.random.split(key)

    params = init_params(kp)
    # small batch consistent with the module's MNIST-style input (B, 1, 28, 28)
    x = jax.random.normal(kx, (8, 1, 28, 28), jnp.float32)

    out = mlp_forward(x, params)
    out = jax.block_until_ready(out)

    ref = mlp_reference(x, params)
    assert out.shape == (8, 1)
    # bf16 MXU inputs -> loosened tolerance vs the f32 reference
    assert jnp.allclose(out, ref, atol=5e-2, rtol=5e-2), "mismatch vs reference"

    print("KERNEL_OK")
</pallas_src>

<mosaic_0001>
module attributes {stable_mosaic.version = 11 : i64} {
  func.func @mlp_kernel(%arg0: i32, %arg1: memref<8x896xbf16, #tpu.memory_space<vmem>>, %arg2: memref<896x896xbf16, #tpu.memory_space<vmem>>, %arg3: memref<1x896xf32, #tpu.memory_space<vmem>>, %arg4: memref<896x512xbf16, #tpu.memory_space<vmem>>, %arg5: memref<1x512xf32, #tpu.memory_space<vmem>>, %arg6: memref<1x512xf32, #tpu.memory_space<vmem>>, %arg7: memref<1x128xf32, #tpu.memory_space<vmem>>, %arg8: memref<8x128xf32, #tpu.memory_space<vmem>>) attributes {dimension_semantics = [#tpu.dimension_semantics<parallel>], iteration_bounds = array<i64: 1>, scalar_prefetch = 0 : i64, scratch_operands = 0 : i64, tpu.core_type = #tpu.core_type<tc>, window_params = [{transform_indices = @transform_0, window_bounds = array<i64: 8, 896>}, {pipeline_mode = #tpu.pipeline_mode<synchronous>, transform_indices = @transform_1, window_bounds = array<i64: 896, 896>}, {pipeline_mode = #tpu.pipeline_mode<synchronous>, transform_indices = @transform_2, window_bounds = array<i64: 1, 896>}, {pipeline_mode = #tpu.pipeline_mode<synchronous>, transform_indices = @transform_3, window_bounds = array<i64: 896, 512>}, {pipeline_mode = #tpu.pipeline_mode<synchronous>, transform_indices = @transform_4, window_bounds = array<i64: 1, 512>}, {pipeline_mode = #tpu.pipeline_mode<synchronous>, transform_indices = @transform_5, window_bounds = array<i64: 1, 512>}, {pipeline_mode = #tpu.pipeline_mode<synchronous>, transform_indices = @transform_6, window_bounds = array<i64: 1, 128>}, {transform_indices = @transform_7, window_bounds = array<i64: 8, 128>}]} {
    %c0 = arith.constant 0 : index
    %c0_0 = arith.constant 0 : index
    %0 = vector.load %arg1[%c0, %c0_0] : memref<8x896xbf16, #tpu.memory_space<vmem>>, vector<8x896xbf16>
    %c0_1 = arith.constant 0 : index
    %c0_2 = arith.constant 0 : index
    %1 = vector.load %arg2[%c0_1, %c0_2] : memref<896x896xbf16, #tpu.memory_space<vmem>>, vector<896x896xbf16>
    %cst = arith.constant dense<0.000000e+00> : vector<8x896xf32>
    %2 = tpu.matmul %0, %1, %cst {dimension_numbers = #tpu.dot_dimension_numbers<[1], [0], [0], [1], [0, 0, 1, 1], [], []>} : vector<8x896xbf16>, vector<896x896xbf16>, vector<8x896xf32> -> vector<8x896xf32>
    %c0_3 = arith.constant 0 : index
    %c0_4 = arith.constant 0 : index
    %3 = vector.load %arg3[%c0_3, %c0_4] : memref<1x896xf32, #tpu.memory_space<vmem>>, vector<1x896xf32>
    %4 = vector.broadcast %3 : vector<1x896xf32> to vector<8x896xf32>
    %5 = arith.addf %2, %4 : vector<8x896xf32>
    %cst_5 = arith.constant 0.000000e+00 : f32
    %6 = vector.broadcast %cst_5 : f32 to vector<8x896xf32>
    %7 = arith.maximumf %5, %6 : vector<8x896xf32>
    %8 = arith.truncf %7 : vector<8x896xf32> to vector<8x896xbf16>
    %c0_6 = arith.constant 0 : index
    %c0_7 = arith.constant 0 : index
    %9 = vector.load %arg4[%c0_6, %c0_7] : memref<896x512xbf16, #tpu.memory_space<vmem>>, vector<896x512xbf16>
    %cst_8 = arith.constant dense<0.000000e+00> : vector<8x512xf32>
    %10 = tpu.matmul %8, %9, %cst_8 {dimension_numbers = #tpu.dot_dimension_numbers<[1], [0], [0], [1], [0, 0, 1, 1], [], []>} : vector<8x896xbf16>, vector<896x512xbf16>, vector<8x512xf32> -> vector<8x512xf32>
    %c0_9 = arith.constant 0 : index
    %c0_10 = arith.constant 0 : index
    %11 = vector.load %arg5[%c0_9, %c0_10] : memref<1x512xf32, #tpu.memory_space<vmem>>, vector<1x512xf32>
    %12 = vector.broadcast %11 : vector<1x512xf32> to vector<8x512xf32>
    %13 = arith.addf %10, %12 : vector<8x512xf32>
    %cst_11 = arith.constant 0.000000e+00 : f32
    %14 = vector.broadcast %cst_11 : f32 to vector<8x512xf32>
    %15 = arith.maximumf %13, %14 : vector<8x512xf32>
    %c0_12 = arith.constant 0 : index
    %c0_13 = arith.constant 0 : index
    %16 = vector.load %arg6[%c0_12, %c0_13] : memref<1x512xf32, #tpu.memory_space<vmem>>, vector<1x512xf32>
    %17 = vector.broadcast %16 : vector<1x512xf32> to vector<8x512xf32>
    %18 = arith.mulf %15, %17 : vector<8x512xf32>
    %cst_14 = arith.constant dense<0.000000e+00> : vector<8xf32>
    %19 = vector.multi_reduction <add>, %18, %cst_14 [1] : vector<8x512xf32> to vector<8xf32>
    %20 = vector.shape_cast %19 : vector<8xf32> to vector<8x1xf32>
    %c0_15 = arith.constant 0 : index
    %c0_16 = arith.constant 0 : index
    %21 = vector.load %arg7[%c0_15, %c0_16] : memref<1x128xf32, #tpu.memory_space<vmem>>, vector<1x128xf32>
    %22 = vector.broadcast %20 : vector<8x1xf32> to vector<8x128xf32>
    %23 = vector.broadcast %21 : vector<1x128xf32> to vector<8x128xf32>
    %24 = arith.addf %22, %23 : vector<8x128xf32>
    %cst_17 = arith.constant 0.000000e+00 : f32
    %25 = vector.broadcast %cst_17 : f32 to vector<8x128xf32>
    %26 = arith.maximumf %24, %25 : vector<8x128xf32>
    %c0_18 = arith.constant 0 : index
    %c0_19 = arith.constant 0 : index
    %27 = vector.load %arg8[%c0_18, %c0_19] : memref<8x128xf32, #tpu.memory_space<vmem>>, vector<8x128xf32>
    tpu.vector_store %arg8[%c0_18, %c0_19], %26 {strides = array<i32>} : memref<8x128xf32, #tpu.memory_space<vmem>>, vector<8x128xf32>,
    return
  }
  func.func @transform_0(%arg0: i32) -> (i32, i32) {
    %c0_i32 = arith.constant 0 : i32
    %c0_i32_0 = arith.constant 0 : i32
    return %arg0, %c0_i32 : i32, i32
  }
  func.func @transform_1(%arg0: i32) -> (i32, i32) {
    %c0_i32 = arith.constant 0 : i32
    %c0_i32_0 = arith.constant 0 : i32
    %c0_i32_1 = arith.constant 0 : i32
    return %c0_i32, %c0_i32_0 : i32, i32
  }
  func.func @transform_2(%arg0: i32) -> (i32, i32) {
    %c0_i32 = arith.constant 0 : i32
    %c0_i32_0 = arith.constant 0 : i32
    %c0_i32_1 = arith.constant 0 : i32
    return %c0_i32, %c0_i32_0 : i32, i32
  }
  func.func @transform_3(%arg0: i32) -> (i32, i32) {
    %c0_i32 = arith.constant 0 : i32
    %c0_i32_0 = arith.constant 0 : i32
    %c0_i32_1 = arith.constant 0 : i32
    return %c0_i32, %c0_i32_0 : i32, i32
  }
  func.func @transform_4(%arg0: i32) -> (i32, i32) {
    %c0_i32 = arith.constant 0 : i32
    %c0_i32_0 = arith.constant 0 : i32
    %c0_i32_1 = arith.constant 0 : i32
    return %c0_i32, %c0_i32_0 : i32, i32
  }
  func.func @transform_5(%arg0: i32) -> (i32, i32) {
    %c0_i32 = arith.constant 0 : i32
    %c0_i32_0 = arith.constant 0 : i32
    %c0_i32_1 = arith.constant 0 : i32
    return %c0_i32, %c0_i32_0 : i32, i32
  }
  func.func @transform_6(%arg0: i32) -> (i32, i32) {
    %c0_i32 = arith.constant 0 : i32
    %c0_i32_0 = arith.constant 0 : i32
    %c0_i32_1 = arith.constant 0 : i32
    return %c0_i32, %c0_i32_0 : i32, i32
  }
  func.func @transform_7(%arg0: i32) -> (i32, i32) {
    %c0_i32 = arith.constant 0 : i32
    %c0_i32_0 = arith.constant 0 : i32
    return %arg0, %c0_i32 : i32, i32
  }
}

</mosaic_0001>

<bundles_post_ra>
// kernel: tpu_custom_call.1
= control target key start
LH: loop header
LB: loop body
LE: loop exit
PB: predicated region body
PF: predicated region fallthrough
CT: control target
= control target key end

     0   :  { %12 = vsyncpa [#allocation3], 0  ;;  %s8623_s0 = inlined_call_operand.hbm [shape: bf16[8,896], index: 0, kind: input, shape index: {}]   ;;  %s8624_s1 = inlined_call_operand.hbm [shape: bf16[896,896], index: 1, kind: input, shape index: {}]   ;;  %s8625_s2 = inlined_call_operand.hbm [shape: f32[1,896], index: 2, kind: input, shape index: {}]   ;;  %s8626_s3 = inlined_call_operand.hbm [shape: bf16[896,512], index: 3, kind: input, shape index: {}]   ;;  %s8627_s4 = inlined_call_operand.hbm [shape: f32[1,512], index: 4, kind: input, shape index: {}]   ;;  %s8628_s5 = inlined_call_operand.hbm [shape: f32[1,512], index: 5, kind: input, shape index: {}]   ;;  %s8629_s6 = inlined_call_operand.hbm [shape: f32[1,128], index: 6, kind: input, shape index: {}]   ;;  %s8630_s7 = inlined_call_operand.hbm [shape: f32[8,128], index: 7, kind: output, shape index: {}]  }
   0x1   :  { %13 = vsyncpa [#allocation6], 0 }
   0x2   :  { %14 = vsyncpa [#allocation9], 0 }
   0x3   :  { %15 = vsyncpa [#allocation12], 0  ;;  %s32_s26 = sshll.u32 %s8624_s1, 4  ;;  %s33_s26 = int_to_ptr.hbm [resolvable:$true] %s32_s26 }
   0x4   :  { %16 = vsyncpa [#allocation4], 0  ;;  %s8351_s27 = smov [#allocation5]   ;;  %s56_s8 = sshll.u32 %s8626_s3, 4  ;;  %s57_s8 = int_to_ptr.hbm [resolvable:$true] %s56_s8 }
   0x5   :  { %s34_s28 = sshll.u32 %s8351_s27, 4  ;;  %s8352_s9 = smov 448   ;;  %s35_s28 = int_to_ptr.vmem [resolvable:$true] %s34_s28 }
   0x6   :  { %s8353_s10 = smov 28   ;;  %s8354_s11 = smov [#allocation8]  }
   0x7   :  { %40 = dma.hbm_to_vmem [thread:$0]  %s33_s26, 50176, %s35_s28, [#allocation6], %s8352_s9, %s8352_s9, %s8353_s10  }
   0x8   :  { %s58_s12 = sshll.u32 %s8354_s11, 4  ;;  %s8355_s13 = smov 256   ;;  %s59_s12 = int_to_ptr.vmem [resolvable:$true] %s58_s12 }
   0x9   :  { %s8356_s14 = smov 16   ;;  %s81_s16 = sshll.u32 %s8628_s5, 4  ;;  %s82_s16 = int_to_ptr.hbm [resolvable:$true] %s81_s16 }
   0xa   :  { %64 = dma.hbm_to_vmem [thread:$0]  %s57_s8, 28672, %s59_s12, [#allocation9], %s8355_s13, %s8355_s13, %s8356_s14  }
   0xb   :  { %s8357_s17 = smov [#allocation11]   ;;  %s22_s20 = sshll.u32 %s8623_s0, 4  ;;  %s23_s20 = int_to_ptr.hbm [resolvable:$true] %s22_s20 }
   0xc   :  { %s83_s18 = sshll.u32 %s8357_s17, 4  ;;  %s8358_s21 = smov [#allocation2]   ;;  %s84_s18 = int_to_ptr.vmem [resolvable:$true] %s83_s18 }
   0xd   :  { %86 = dma.hbm_to_vmem [thread:$0]  %s82_s16, 64, %s84_s18, [#allocation12]  }
   0xe   :  { %s24_s22 = sshll.u32 %s8358_s21, 4  ;;  %s46_s25 = sshll.u32 %s8625_s2, 4  ;;  %s25_s22 = int_to_ptr.vmem [resolvable:$true] %s24_s22  ;;  %s47_s25 = int_to_ptr.hbm [resolvable:$true] %s46_s25 }
   0xf   :  { %27 = dma.hbm_to_vmem [thread:$0]  %s23_s20, 448, %s25_s22, [#allocation3]  }
  0x10   :  { %s70_s27 = sshll.u32 %s8627_s4, 4  ;;  %s8359_s28 = smov [#allocation7]   ;;  %s71_s27 = int_to_ptr.hbm [resolvable:$true] %s70_s27 }
  0x11   :  { %s48_s29 = sshll.u32 %s8359_s28, 4  ;;  %s8360_s0 = smov [#allocation10]   ;;  %s49_s29 = int_to_ptr.vmem [resolvable:$true] %s48_s29 }
  0x12   :  { %51 = dma.hbm_to_vmem [thread:$0]  %s47_s25, 112, %s49_s29, [#allocation6]  }
  0x13   :  { %s72_s30 = sshll.u32 %s8360_s0, 4  ;;  %s92_s10 = sshll.u32 %s8629_s6, 4  ;;  %s73_s30 = int_to_ptr.vmem [resolvable:$true] %s72_s30  ;;  %s93_s10 = int_to_ptr.hbm [resolvable:$true] %s92_s10 }
  0x14   :  { %75 = dma.hbm_to_vmem [thread:$0]  %s71_s27, 64, %s73_s30, [#allocation9]  }
  0x15   :  { %s8361_s2 = smov [#allocation13]  }
  0x16   :  { %s94_s11 = sshll.u32 %s8361_s2, 4  ;;  %s95_s11 = int_to_ptr.vmem [resolvable:$true] %s94_s11 }
  0x17   :  { %97 = dma.hbm_to_vmem [thread:$0]  %s93_s10, 16, %s95_s11, [#allocation12]  }
  0x18   :  { %8341 = dma.done.wait [#allocation3], 448  }
  0x19   :  { %8342 = vsyncadd [#allocation3], 4294966848 }
  0x1a   :  { %8343 = dma.done.wait [#allocation6], 50288  }
  0x1b   :  { %8344 = vsyncadd [#allocation6], 4294917008 }
  0x1c   :  { %8345 = dma.done.wait [#allocation9], 28736  }
  0x1d   :  { %8346 = vsyncadd [#allocation9], 4294938560 }
  0x1e   :  { %8347 = dma.done.wait [#allocation12], 80  }
  0x1f   :  { %8348 = vsyncadd [#allocation12], 4294967216  ;;  %v5252_v0 = vld [vmem:[#allocation5 + $0x188] sm:$0xf]  ;;  %v7570_v1 = vld [vmem:[#allocation5 + $0x1a0] sm:$0xf0] }
  0x20   :  { %v5476_v2 = vld [vmem:[#allocation5 + $0x348] sm:$0xf]  ;;  %v5253_v3 = vor.u32 %v7570_v1, %v5252_v0  ;;  %v7626_v4 = vld [vmem:[#allocation5 + $0x360] sm:$0xf0]  ;;  %v5224_v11 = vld [vmem:[#allocation5 + $0x150] sm:$0xf] }
  0x21   :  { %v5700_v5 = vld [vmem:[#allocation5 + $0x508] sm:$0xf]  ;;  %v7682_v6 = vld [vmem:[#allocation5 + $0x520] sm:$0xf0]  ;;  %v5477_v7 = vor.u32 %v7626_v4, %v5476_v2  ;;  %v7563_v13 = vld [vmem:[#allocation5 + $0x168] sm:$0xf0] }
  0x22   :  { %v5701_v8 = vor.u32 %v7682_v6, %v5700_v5  ;;  %v5924_v9 = vld [vmem:[#allocation5 + $0x6c8] sm:$0xf]  ;;  %v7738_v10 = vld [vmem:[#allocation5 + $0x6e0] sm:$0xf0]  ;;  %2635 = vmatpush.bf16.msra.mxu0 %v5253_v3  ;;  %v5448_v14 = vld [vmem:[#allocation5 + $0x310] sm:$0xf]  ;;  %v5225_v16 = vor.u32 %v7563_v13, %v5224_v11 }
  0x23   :  { %v5925_v12 = vor.u32 %v7738_v10, %v5924_v9  ;;  %v7619_v15 = vld [vmem:[#allocation5 + $0x328] sm:$0xf0]  ;;  %2648 = vmatpush.bf16.msra.mxu1 %v5477_v7  ;;  %v5672_v18 = vld [vmem:[#allocation5 + $0x4d0] sm:$0xf]  ;;  %v5196_v23 = vld [vmem:[#allocation5 + $0x118] sm:$0xf] }
  0x24   :  { %2661 = vmatpush.bf16.msra.mxu2 %v5701_v8  ;;  %v5449_v17 = vor.u32 %v7619_v15, %v5448_v14  ;;  %v7675_v19 = vld [vmem:[#allocation5 + $0x4e8] sm:$0xf0]  ;;  %v5896_v20 = vld [vmem:[#allocation5 + $0x690] sm:$0xf]  ;;  %v7556_v24 = vld [vmem:[#allocation5 + $0x130] sm:$0xf0] }
  0x25   :  { %2674 = vmatpush.bf16.msra.mxu3 %v5925_v12  ;;  %v5673_v21 = vor.u32 %v7675_v19, %v5672_v18  ;;  %v7731_v22 = vld [vmem:[#allocation5 + $0x6a8] sm:$0xf0]  ;;  %v5420_v26 = vld [vmem:[#allocation5 + $0x2d8] sm:$0xf]  ;;  %v7612_v27 = vld [vmem:[#allocation5 + $0x2f0] sm:$0xf0]  ;;  %v5197_v29 = vor.u32 %v7556_v24, %v5196_v23 }
  0x26   :  { %v5897_v25 = vor.u32 %v7731_v22, %v5896_v20  ;;  %v5644_v28 = vld [vmem:[#allocation5 + $0x498] sm:$0xf]  ;;  %2636 = vmatpush.bf16.msra.mxu0 %v5225_v16  ;;  %v7668_v30 = vld [vmem:[#allocation5 + $0x4b0] sm:$0xf0]  ;;  %v5421_v33 = vor.u32 %v7612_v27, %v5420_v26  ;;  %v5168_v35 = vld [vmem:[#allocation5 + $0xe0] sm:$0xf] }
  0x27   :  { %v5868_v31 = vld [vmem:[#allocation5 + $0x658] sm:$0xf]  ;;  %v7724_v32 = vld [vmem:[#allocation5 + $0x670] sm:$0xf0]  ;;  %2649 = vmatpush.bf16.msra.mxu1 %v5449_v17  ;;  %v5645_v34 = vor.u32 %v7668_v30, %v5644_v28  ;;  %v7549_v36 = vld [vmem:[#allocation5 + $0xf8] sm:$0xf0] }
  0x28   :  { %2662 = vmatpush.bf16.msra.mxu2 %v5673_v21  ;;  %v5392_v37 = vld [vmem:[#allocation5 + $0x2a0] sm:$0xf]  ;;  %v5869_v38 = vor.u32 %v7724_v32, %v5868_v31  ;;  %v7605_v39 = vld [vmem:[#allocation5 + $0x2b8] sm:$0xf0]  ;;  %v5169_v44 = vor.u32 %v7549_v36, %v5168_v35  ;;  %v5140_v47 = vld [vmem:[#allocation5 + $0xa8] sm:$0xf] }
  0x29   :  { %2675 = vmatpush.bf16.msra.mxu3 %v5897_v25  ;;  %v5616_v40 = vld [vmem:[#allocation5 + $0x460] sm:$0xf]  ;;  %v7661_v41 = vld [vmem:[#allocation5 + $0x478] sm:$0xf0]  ;;  %v5393_v45 = vor.u32 %v7605_v39, %v5392_v37  ;;  %v7542_v48 = vld [vmem:[#allocation5 + $0xc0] sm:$0xf0] }
  0x2a   :  { %v5840_v42 = vld [vmem:[#allocation5 + $0x620] sm:$0xf]  ;;  %v7717_v43 = vld [vmem:[#allocation5 + $0x638] sm:$0xf0]  ;;  %2637 = vmatpush.bf16.msra.mxu0 %v5197_v29  ;;  %v5617_v46 = vor.u32 %v7661_v41, %v5616_v40  ;;  %v5364_v49 = vld [vmem:[#allocation5 + $0x268] sm:$0xf]  ;;  %v5141_v56 = vor.u32 %v7542_v48, %v5140_v47 }
  0x2b   :  { %2650 = vmatpush.bf16.msra.mxu1 %v5421_v33  ;;  %v5841_v50 = vor.u32 %v7717_v43, %v5840_v42  ;;  %v7598_v51 = vld [vmem:[#allocation5 + $0x280] sm:$0xf0]  ;;  %v5588_v52 = vld [vmem:[#allocation5 + $0x428] sm:$0xf]  ;;  %v5112_v59 = vld [vmem:[#allocation5 + $0x70] sm:$0xf] }
  0x2c   :  { %2663 = vmatpush.bf16.msra.mxu2 %v5645_v34  ;;  %v7654_v53 = vld [vmem:[#allocation5 + $0x440] sm:$0xf0]  ;;  %v5812_v54 = vld [vmem:[#allocation5 + $0x5e8] sm:$0xf]  ;;  %v5365_v57 = vor.u32 %v7598_v51, %v5364_v49  ;;  %v7535_v60 = vld [vmem:[#allocation5 + $0x88] sm:$0xf0] }
  0x2d   :  { %2676 = vmatpush.bf16.msra.mxu3 %v5869_v38  ;;  %v7710_v55 = vld [vmem:[#allocation5 + $0x600] sm:$0xf0]  ;;  %v5589_v58 = vor.u32 %v7654_v53, %v5588_v52  ;;  %v5336_v61 = vld [vmem:[#allocation5 + $0x230] sm:$0xf]  ;;  %v7591_v63 = vld [vmem:[#allocation5 + $0x248] sm:$0xf0]  ;;  %v5113_v4 = vor.u32 %v7535_v60, %v5112_v59 }
  0x2e   :  { %2638 = vmatpush.bf16.msra.mxu0 %v5169_v44  ;;  %v5813_v62 = vor.u32 %v7710_v55, %v5812_v54  ;;  %v5560_v0 = vld [vmem:[#allocation5 + $0x3f0] sm:$0xf]  ;;  %v7647_v1 = vld [vmem:[#allocation5 + $0x408] sm:$0xf0]  ;;  %v5337_v5 = vor.u32 %v7591_v63, %v5336_v61  ;;  %v5084_v7 = vld [vmem:[#allocation5 + $0x38] sm:$0xf] }
  0x2f   :  { %2651 = vmatpush.bf16.msra.mxu1 %v5393_v45  ;;  %v5784_v2 = vld [vmem:[#allocation5 + $0x5b0] sm:$0xf]  ;;  %v7703_v3 = vld [vmem:[#allocation5 + $0x5c8] sm:$0xf0]  ;;  %v5561_v6 = vor.u32 %v7647_v1, %v5560_v0  ;;  %v7528_v8 = vld [vmem:[#allocation5 + $0x50] sm:$0xf0] }
  0x30   :  { %2664 = vmatpush.bf16.msra.mxu2 %v5617_v46  ;;  %v5308_v9 = vld [vmem:[#allocation5 + $0x1f8] sm:$0xf]  ;;  %v5785_v10 = vor.u32 %v7703_v3, %v5784_v2  ;;  %v7584_v11 = vld [vmem:[#allocation5 + $0x210] sm:$0xf0]  ;;  %v5085_v16 = vor.u32 %v7528_v8, %v5084_v7  ;;  %v5056_v17 = vld [vmem:[#allocation5] sm:$0xf] }
  0x31   :  { %2677 = vmatpush.bf16.msra.mxu3 %v5841_v50  ;;  %v5532_v12 = vld [vmem:[#allocation5 + $0x3b8] sm:$0xf]  ;;  %v7640_v13 = vld [vmem:[#allocation5 + $0x3d0] sm:$0xf0]  ;;  %v7521_v18 = vld [vmem:[#allocation5 + $0x18] sm:$0xf0]  ;;  %v5309_v19 = vor.u32 %v7584_v11, %v5308_v9 }
  0x32   :  { %2639 = vmatpush.bf16.msra.mxu0 %v5141_v56  ;;  %v5756_v14 = vld [vmem:[#allocation5 + $0x578] sm:$0xf]  ;;  %v7696_v15 = vld [vmem:[#allocation5 + $0x590] sm:$0xf0]  ;;  %v5533_v20 = vor.u32 %v7640_v13, %v5532_v12  ;;  %v5280_v21 = vld [vmem:[#allocation5 + $0x1c0] sm:$0xf]  ;;  %v5057_v31 = vor.u32 %v7521_v18, %v5056_v17 }
  0x33   :  { %2652 = vmatpush.bf16.msra.mxu1 %v5365_v57  ;;  %v7577_v22 = vld [vmem:[#allocation5 + $0x1d8] sm:$0xf0]  ;;  %v5504_v23 = vld [vmem:[#allocation5 + $0x380] sm:$0xf]  ;;  %v5757_v24 = vor.u32 %v7696_v15, %v5756_v14  ;;  %v6148_v28 = vld [vmem:[#allocation5 + $0x888] sm:$0xf] }
  0x34   :  { %2665 = vmatpush.bf16.msra.mxu2 %v5589_v58  ;;  %v7633_v25 = vld [vmem:[#allocation5 + $0x398] sm:$0xf0]  ;;  %v5728_v26 = vld [vmem:[#allocation5 + $0x540] sm:$0xf]  ;;  %v7794_v29 = vld [vmem:[#allocation5 + $0x8a0] sm:$0xf0]  ;;  %v5281_v35 = vor.u32 %v7577_v22, %v5280_v21 }
  0x35   :  { %2678 = vmatpush.bf16.msra.mxu3 %v5813_v62  ;;  %v7689_v27 = vld [vmem:[#allocation5 + $0x558] sm:$0xf0]  ;;  %v6372_v30 = vld [vmem:[#allocation5 + $0xa48] sm:$0xf]  ;;  %v7850_v32 = vld [vmem:[#allocation5 + $0xa60] sm:$0xf0]  ;;  %v5505_v36 = vor.u32 %v7633_v25, %v5504_v23  ;;  %v6149_v40 = vor.u32 %v7794_v29, %v6148_v28 }
  0x36   :  { %2640 = vmatpush.bf16.msra.mxu0 %v5113_v4  ;;  %v6596_v33 = vld [vmem:[#allocation5 + $0xc08] sm:$0xf]  ;;  %v7906_v34 = vld [vmem:[#allocation5 + $0xc20] sm:$0xf0]  ;;  %v7567_v37 = vld [vmem:[#allocation5 + $0x18c] sm:$0xf]  ;;  %v5729_v39 = vor.u32 %v7689_v27, %v5728_v26  ;;  %v6373_v41 = vor.u32 %v7850_v32, %v6372_v30 }
  0x37   :  { %2653 = vmatpush.bf16.msra.mxu1 %v5337_v5  ;;  %v5254_v38 = vld [vmem:[#allocation5 + $0x1a4] sm:$0xf0]  ;;  %v6597_v42 = vor.u32 %v7906_v34, %v6596_v33  ;;  %v6120_v43 = vld [vmem:[#allocation5 + $0x850] sm:$0xf]  ;;  %v7787_v44 = vld [vmem:[#allocation5 + $0x868] sm:$0xf0] }
  0x38   :  { %2666 = vmatpush.bf16.msra.mxu2 %v5561_v6  ;;  %v6344_v45 = vld [vmem:[#allocation5 + $0xa10] sm:$0xf]  ;;  %v5257_v46 = vor.u32 %v7567_v37, %v5254_v38  ;;  %v7843_v47 = vld [vmem:[#allocation5 + $0xa28] sm:$0xf0]  ;;  %v7560_v50 = vld [vmem:[#allocation5 + $0x154] sm:$0xf]  ;;  %v6121_v52 = vor.u32 %v7787_v44, %v6120_v43 }
  0x39   :  { %2679 = vmatpush.bf16.msra.mxu3 %v5785_v10  ;;  %v6568_v48 = vld [vmem:[#allocation5 + $0xbd0] sm:$0xf]  ;;  %v7899_v49 = vld [vmem:[#allocation5 + $0xbe8] sm:$0xf0]  ;;  %v6092_v53 = vld [vmem:[#allocation5 + $0x818] sm:$0xf]  ;;  %v6345_v54 = vor.u32 %v7843_v47, %v6344_v45 }
  0x3a   :  { %2641 = vmatpush.bf16.msra.mxu0 %v5085_v16  ;;  %v5226_v51 = vld [vmem:[#allocation5 + $0x16c] sm:$0xf0]  ;;  %v6569_v55 = vor.u32 %v7899_v49, %v6568_v48  ;;  %v7780_v56 = vld [vmem:[#allocation5 + $0x830] sm:$0xf0]  ;;  %v6316_v57 = vld [vmem:[#allocation5 + $0x9d8] sm:$0xf] }
  0x3b   :  { %2654 = vmatpush.bf16.msra.mxu1 %v5309_v19  ;;  %v127_v58 = vld [vmem:[#allocation2 + $0x8] sm:$0xff]  ;;  %v5229_v59 = vor.u32 %v7560_v50, %v5226_v51  ;;  %v7836_v60 = vld [vmem:[#allocation5 + $0x9f0] sm:$0xf0]  ;;  %v6540_v61 = vld [vmem:[#allocation5 + $0xb98] sm:$0xf]  ;;  %v6093_v3 = vor.u32 %v7780_v56, %v6092_v53  ;;  %s8362_s4 = smov [#allocation14]  }
  0x3c   :  { %2667 = vmatpush.bf16.msra.mxu2 %v5533_v20  ;;  %v7892_v62 = vld [vmem:[#allocation5 + $0xbb0] sm:$0xf0]  ;;  %v600_v63 = vunpack.c.l.b16 %v127_v58  ;;  %v601_v0 = vunpack.c.h.b16 %v127_v58  ;;  %v7553_v1 = vld [vmem:[#allocation5 + $0x11c] sm:$0xf]  ;;  %v5198_v2 = vld [vmem:[#allocation5 + $0x134] sm:$0xf0]  ;;  %v6317_v7 = vor.u32 %v7836_v60, %v6316_v57 }
  0x3d   :  { %2680 = vmatpush.bf16.msra.mxu3 %v5757_v24  ;;  %v126_v5 = vld [vmem:[#allocation2] sm:$0xff]  ;;  %v6541_v8 = vor.u32 %v7892_v62, %v6540_v61  ;;  %v6064_v9 = vld [vmem:[#allocation5 + $0x7e0] sm:$0xf]  ;;  %v7773_v10 = vld [vmem:[#allocation5 + $0x7f8] sm:$0xf0]  ;;  %v5201_v14 = vor.u32 %v7553_v1, %v5198_v2  ;;  %s5039_s6 = sshll.u32 %s8362_s4, 4  ;;  %s5040_s6 = int_to_ptr.vmem [resolvable:$true] %s5039_s6 }
  0x3e   :  { %2642 = vmatpush.bf16.msra.mxu0 %v5057_v31  ;;  %v8424_v4 = vpack.c.b16 %v600_v63, %v600_v63  ;;  %v8426_v6 = vpack.c.b16 %v601_v0, %v601_v0  ;;  %v6288_v11 = vld [vmem:[#allocation5 + $0x9a0] sm:$0xf]  ;;  %v598_v12 = vunpack.c.l.b16 %v126_v5  ;;  %v599_v13 = vunpack.c.h.b16 %v126_v5  ;;  %v7829_v15 = vld [vmem:[#allocation5 + $0x9b8] sm:$0xf0]  ;;  %v7546_v18 = vld [vmem:[#allocation5 + $0xe4] sm:$0xf] }
  0x3f   :  { %2655 = vmatpush.bf16.msra.mxu1 %v5281_v35  ;;  %v6512_v16 = vld [vmem:[#allocation5 + $0xb60] sm:$0xf]  ;;  %v7885_v17 = vld [vmem:[#allocation5 + $0xb78] sm:$0xf0]  ;;  %v6065_v22 = vor.u32 %v7773_v10, %v6064_v9  ;;  %v6289_v23 = vor.u32 %v7829_v15, %v6288_v11  ;;  %v6036_v25 = vld [vmem:[#allocation5 + $0x7a8] sm:$0xf] }
  0x40   :  { %2668 = vmatpush.bf16.msra.mxu2 %v5505_v36  ;;  %v5170_v19 = vld [vmem:[#allocation5 + $0xfc] sm:$0xf0]  ;;  %v8429_v20 = vpack.c.b16 %v598_v12, %v598_v12  ;;  %v8431_v21 = vpack.c.b16 %v599_v13, %v599_v13  ;;  %v6513_v24 = vor.u32 %v7885_v17, %v6512_v16  ;;  %v7766_v26 = vld [vmem:[#allocation5 + $0x7c0] sm:$0xf0]  ;;  %v6260_v27 = vld [vmem:[#allocation5 + $0x968] sm:$0xf] }
  0x41   :  { %2681 = vmatpush.bf16.msra.mxu3 %v5729_v39  ;;  %v5173_v28 = vor.u32 %v7546_v18, %v5170_v19  ;;  %v7822_v29 = vld [vmem:[#allocation5 + $0x980] sm:$0xf0]  ;;  %v6484_v30 = vld [vmem:[#allocation5 + $0xb28] sm:$0xf]  ;;  %v7539_v32 = vld [vmem:[#allocation5 + $0xac] sm:$0xf]  ;;  %v6037_v34 = vor.u32 %v7766_v26, %v6036_v25 }
  0x42   :  { %2687 = vmatpush.bf16.msrb.mxu0 %v6149_v40  ;;  %v7878_v31 = vld [vmem:[#allocation5 + $0xb40] sm:$0xf0]  ;;  %v5142_v33 = vld [vmem:[#allocation5 + $0xc4] sm:$0xf0]  ;;  %2656 = vmatmul.bf16.vlgmr.msra.gmra.mxu1 %v8431_v21  ;;  %v6261_v35 = vor.u32 %v7822_v29, %v6260_v27  ;;  %v6008_v37 = vld [vmem:[#allocation5 + $0x770] sm:$0xf] }
  0x43   :  { %2700 = vmatpush.bf16.msrb.mxu1 %v6373_v41  ;;  %2669 = vmatmul.bf16.vlgmr.msra.gmra.mxu2 %v8424_v4  ;;  %v6485_v36 = vor.u32 %v7878_v31, %v6484_v30  ;;  %v7759_v38 = vld [vmem:[#allocation5 + $0x788] sm:$0xf0]  ;;  %v6232_v39 = vld [vmem:[#allocation5 + $0x930] sm:$0xf]  ;;  %v5145_v40 = vor.u32 %v7539_v32, %v5142_v33  ;;  %v7532_v44 = vld [vmem:[#allocation5 + $0x74] sm:$0xf] }
  0x44   :  { %2713 = vmatpush.bf16.msrb.mxu2 %v6597_v42  ;;  %2682 = vmatmul.bf16.vlgmr.msra.gmra.mxu3 %v8426_v6  ;;  %v7815_v41 = vld [vmem:[#allocation5 + $0x948] sm:$0xf0]  ;;  %v6456_v42 = vld [vmem:[#allocation5 + $0xaf0] sm:$0xf]  ;;  %v5980_v49 = vld [vmem:[#allocation5 + $0x738] sm:$0xf] }
  0x45   :  { %2726 = vmatpush.bf16.msrb.mxu3 %v5257_v46  ;;  %2643 = vmatmul.bf16.vlgmr.msra.gmra.mxu0 %v8429_v20  ;;  %v7871_v43 = vld [vmem:[#allocation5 + $0xb08] sm:$0xf0]  ;;  %v5114_v45 = vld [vmem:[#allocation5 + $0x8c] sm:$0xf0]  ;;  %v6009_v46 = vor.u32 %v7759_v38, %v6008_v37  ;;  %v6233_v47 = vor.u32 %v7815_v41, %v6232_v39  ;;  %v7752_v50 = vld [vmem:[#allocation5 + $0x750] sm:$0xf0] }
  0x46   :  { %2688 = vmatpush.bf16.msrb.mxu0 %v6121_v52  ;;  %v6457_v48 = vor.u32 %v7871_v43, %v6456_v42  ;;  %v6204_v51 = vld [vmem:[#allocation5 + $0x8f8] sm:$0xf]  ;;  %v5117_v52 = vor.u32 %v7532_v44, %v5114_v45  ;;  %v7808_v53 = vld [vmem:[#allocation5 + $0x910] sm:$0xf0]  ;;  %v7525_v56 = vld [vmem:[#allocation5 + $0x3c] sm:$0xf] }
  0x47   :  { %2701 = vmatpush.bf16.msrb.mxu1 %v6345_v54  ;;  %v6428_v54 = vld [vmem:[#allocation5 + $0xab8] sm:$0xf]  ;;  %v5952_v58 = vld [vmem:[#allocation5 + $0x700] sm:$0xf]  ;;  %v7745_v60 = vld [vmem:[#allocation5 + $0x718] sm:$0xf0]  ;;  %v6205_v63 = vor.u32 %v7808_v53, %v6204_v51 }
  0x48   :  { %2714 = vmatpush.bf16.msrb.mxu2 %v6569_v55  ;;  %v7864_v55 = vld [vmem:[#allocation5 + $0xad0] sm:$0xf0]  ;;  %v5086_v57 = vld [vmem:[#allocation5 + $0x54] sm:$0xf0]  ;;  %v6176_v61 = vld [vmem:[#allocation5 + $0x8c0] sm:$0xf]  ;;  %v5953_v13 = vor.u32 %v7745_v60, %v5952_v58 }
  0x49   :  { %2727 = vmatpush.bf16.msrb.mxu3 %v5229_v59  ;;  %v5981_v59 = vor.u32 %v7752_v50, %v5980_v49  ;;  %v7801_v62 = vld [vmem:[#allocation5 + $0x8d8] sm:$0xf0]  ;;  %v6429_v0 = vor.u32 %v7864_v55, %v6428_v54  ;;  %v6400_v1 = vld [vmem:[#allocation5 + $0xa80] sm:$0xf]  ;;  %v5089_v5 = vor.u32 %v7525_v56, %v5086_v57  ;;  %v128_v9 = vld [vmem:[#allocation2 + $0x10] sm:$0xff]  ;;  %s5041_s14 = sshll.u32 %s8630_s7, 4  ;;  %s5042_s14 = int_to_ptr.hbm [resolvable:$true] %s5041_s14 }
  0x4a   :  { %2689 = vmatpush.bf16.msrb.mxu0 %v6093_v3  ;;  %v7857_v2 = vld [vmem:[#allocation5 + $0xa98] sm:$0xf0]  ;;  %v7623_v10 = vld [vmem:[#allocation5 + $0x34c] sm:$0xf]  ;;  %v5478_v11 = vld [vmem:[#allocation5 + $0x364] sm:$0xf0]  ;;  %v6177_v18 = vor.u32 %v7801_v62, %v6176_v61  ;;  %v603_v25 = vunpack.c.h.b16 %v128_v9 }
  0x4b   :  { %2702 = vmatpush.bf16.msrb.mxu1 %v6317_v7  ;;  %v129_v3 = vld [vmem:[#allocation2 + $0x18] sm:$0xf]  ;;  %v7518_v7 = vld [vmem:[#allocation5 + $0x4] sm:$0xf]  ;;  %v7679_v12 = vld [vmem:[#allocation5 + $0x50c] sm:$0xf]  ;;  %v6401_v19 = vor.u32 %v7857_v2, %v6400_v1  ;;  %v5481_v27 = vor.u32 %v7623_v10, %v5478_v11 }
  0x4c   :  { %2715 = vmatpush.bf16.msrb.mxu2 %v6541_v8  ;;  %v5058_v8 = vld [vmem:[#allocation5 + $0x1c] sm:$0xf0]  ;;  %v7735_v15 = vld [vmem:[#allocation5 + $0x6cc] sm:$0xf]  ;;  %v5926_v16 = vld [vmem:[#allocation5 + $0x6e4] sm:$0xf0]  ;;  %v604_v17 = vunpack.c.l.b16 %v129_v3  ;;  %v8440_v41 = vpack.c.b16 %v603_v25, %v603_v25 }
  0x4d   :  { %2728 = vmatpush.bf16.msrb.mxu3 %v5201_v14  ;;  %v5702_v14 = vld [vmem:[#allocation5 + $0x524] sm:$0xf0]  ;;  %v5061_v26 = vor.u32 %v7518_v7, %v5058_v8  ;;  %v5929_v29 = vor.u32 %v7735_v15, %v5926_v16  ;;  %v7616_v30 = vld [vmem:[#allocation5 + $0x314] sm:$0xf]  ;;  %v5450_v31 = vld [vmem:[#allocation5 + $0x32c] sm:$0xf0] }
  0x4e   :  { %2690 = vmatpush.bf16.msrb.mxu0 %v6065_v22  ;;  %v7791_v22 = vld [vmem:[#allocation5 + $0x88c] sm:$0xf]  ;;  %v7672_v32 = vld [vmem:[#allocation5 + $0x4d4] sm:$0xf]  ;;  %v8436_v37 = vpack.c.b16 %v604_v17, %v604_v17  ;;  %v6122_v39 = vld [vmem:[#allocation5 + $0x86c] sm:$0xf0]  ;;  %v5453_v42 = vor.u32 %v7616_v30, %v5450_v31 }
  0x4f   :  { %2703 = vmatpush.bf16.msrb.mxu1 %v6289_v23  ;;  %v6150_v23 = vld [vmem:[#allocation5 + $0x8a4] sm:$0xf0]  ;;  %v7784_v38 = vld [vmem:[#allocation5 + $0x854] sm:$0xf]  ;;  %v7609_v45 = vld [vmem:[#allocation5 + $0x2dc] sm:$0xf] }
  0x50   :  { %2716 = vmatpush.bf16.msrb.mxu2 %v6513_v24  ;;  %v602_v24 = vunpack.c.l.b16 %v128_v9  ;;  %v6153_v33 = vor.u32 %v7791_v22, %v6150_v23  ;;  %v5646_v49 = vld [vmem:[#allocation5 + $0x4b4] sm:$0xf0]  ;;  %v7721_v50 = vld [vmem:[#allocation5 + $0x65c] sm:$0xf]  ;;  %v7602_v57 = vld [vmem:[#allocation5 + $0x2a4] sm:$0xf] }
  0x51   :  { %2729 = vmatpush.bf16.msrb.mxu3 %v5173_v28  ;;  %v5705_v28 = vor.u32 %v7679_v12, %v5702_v14  ;;  %v5870_v51 = vld [vmem:[#allocation5 + $0x674] sm:$0xf0]  ;;  %v5394_v58 = vld [vmem:[#allocation5 + $0x2bc] sm:$0xf0]  ;;  %v7714_v62 = vld [vmem:[#allocation5 + $0x624] sm:$0xf] }
  0x52   :  { %2691 = vmatpush.bf16.msrb.mxu0 %v6037_v34  ;;  %v5674_v34 = vld [vmem:[#allocation5 + $0x4ec] sm:$0xf0]  ;;  %v6094_v53 = vld [vmem:[#allocation5 + $0x834] sm:$0xf0]  ;;  %v5873_v56 = vor.u32 %v7721_v50, %v5870_v51  ;;  %v5618_v61 = vld [vmem:[#allocation5 + $0x47c] sm:$0xf0]  ;;  %v5397_v2 = vor.u32 %v7602_v57, %v5394_v58 }
  0x53   :  { %2704 = vmatpush.bf16.msrb.mxu1 %v6261_v35  ;;  %v7728_v35 = vld [vmem:[#allocation5 + $0x694] sm:$0xf]  ;;  %v5677_v43 = vor.u32 %v7672_v32, %v5674_v34  ;;  %v6066_v1 = vld [vmem:[#allocation5 + $0x7fc] sm:$0xf0]  ;;  %v7595_v7 = vld [vmem:[#allocation5 + $0x26c] sm:$0xf] }
  0x54   :  { %2717 = vmatpush.bf16.msrb.mxu2 %v6485_v36  ;;  %v5898_v36 = vld [vmem:[#allocation5 + $0x6ac] sm:$0xf0]  ;;  %v5366_v8 = vld [vmem:[#allocation5 + $0x284] sm:$0xf0]  ;;  %v7651_v9 = vld [vmem:[#allocation5 + $0x42c] sm:$0xf] }
  0x55   :  { %2730 = vmatpush.bf16.msrb.mxu3 %v5145_v40  ;;  %v8438_v40 = vpack.c.b16 %v602_v24, %v602_v24  ;;  %v5901_v44 = vor.u32 %v7728_v35, %v5898_v36  ;;  %v5590_v11 = vld [vmem:[#allocation5 + $0x444] sm:$0xf0]  ;;  %v7707_v12 = vld [vmem:[#allocation5 + $0x5ec] sm:$0xf]  ;;  %v5369_v16 = vor.u32 %v7595_v7, %v5366_v8  ;;  %v5338_v22 = vld [vmem:[#allocation5 + $0x24c] sm:$0xf0] }
  0x56   :  { %2692 = vmatpush.bf16.msrb.mxu0 %v6009_v46  ;;  %v5422_v46 = vld [vmem:[#allocation5 + $0x2f4] sm:$0xf0]  ;;  %v7763_v14 = vld [vmem:[#allocation5 + $0x7ac] sm:$0xf]  ;;  %v6038_v15 = vld [vmem:[#allocation5 + $0x7c4] sm:$0xf0]  ;;  %v5593_v17 = vor.u32 %v7651_v9, %v5590_v11 }
  0x57   :  { %2705 = vmatpush.bf16.msrb.mxu1 %v6233_v47  ;;  %v7665_v47 = vld [vmem:[#allocation5 + $0x49c] sm:$0xf]  ;;  %v5425_v54 = vor.u32 %v7609_v45, %v5422_v46  ;;  %v7644_v23 = vld [vmem:[#allocation5 + $0x3f4] sm:$0xf]  ;;  %v6041_v24 = vor.u32 %v7763_v14, %v6038_v15  ;;  %v5562_v25 = vld [vmem:[#allocation5 + $0x40c] sm:$0xf0] }
  0x58   :  { %2718 = vmatpush.bf16.msrb.mxu2 %v6457_v48  ;;  %v6125_v48 = vor.u32 %v7784_v38, %v6122_v39  ;;  %v5649_v55 = vor.u32 %v7665_v47, %v5646_v49  ;;  %v5565_v31 = vor.u32 %v7644_v23, %v5562_v25  ;;  %v5310_v34 = vld [vmem:[#allocation5 + $0x214] sm:$0xf0]  ;;  %v7637_v35 = vld [vmem:[#allocation5 + $0x3bc] sm:$0xf]  ;;  %v7574_v46 = vld [vmem:[#allocation5 + $0x1c4] sm:$0xf] }
  0x59   :  { %2731 = vmatpush.bf16.msrb.mxu3 %v5117_v52  ;;  %v7777_v52 = vld [vmem:[#allocation5 + $0x81c] sm:$0xf]  ;;  %v5534_v38 = vld [vmem:[#allocation5 + $0x3d4] sm:$0xf0]  ;;  %v5282_v47 = vld [vmem:[#allocation5 + $0x1dc] sm:$0xf0] }
  0x5a   :  { %2693 = vmatpush.bf16.msrb.mxu0 %v5981_v59  ;;  %v7658_v59 = vld [vmem:[#allocation5 + $0x464] sm:$0xf]  ;;  %v6097_v60 = vor.u32 %v7777_v52, %v6094_v53  ;;  %v7693_v39 = vld [vmem:[#allocation5 + $0x57c] sm:$0xf]  ;;  %v5506_v51 = vld [vmem:[#allocation5 + $0x39c] sm:$0xf0] }
  0x5b   :  { %2706 = vmatpush.bf16.msrb.mxu1 %v6205_v63  ;;  %v5842_v63 = vld [vmem:[#allocation5 + $0x63c] sm:$0xf0]  ;;  %v5621_v3 = vor.u32 %v7658_v59, %v5618_v61  ;;  %v7630_v50 = vld [vmem:[#allocation5 + $0x384] sm:$0xf]  ;;  %v7847_v57 = vld [vmem:[#allocation5 + $0xa4c] sm:$0xf] }
  0x5c   :  { %2719 = vmatpush.bf16.msrb.mxu2 %v6429_v0  ;;  %v7770_v0 = vld [vmem:[#allocation5 + $0x7e4] sm:$0xf]  ;;  %v6374_v58 = vld [vmem:[#allocation5 + $0xa64] sm:$0xf0]  ;;  %v7903_v59 = vld [vmem:[#allocation5 + $0xc0c] sm:$0xf] }
  0x5d   :  { %2732 = vmatpush.bf16.msrb.mxu3 %v5089_v5  ;;  %v5845_v5 = vor.u32 %v7714_v62, %v5842_v63  ;;  %v6069_v10 = vor.u32 %v7770_v0, %v6066_v1  ;;  %v7686_v52 = vld [vmem:[#allocation5 + $0x544] sm:$0xf]  ;;  %v6598_v61 = vld [vmem:[#allocation5 + $0xc24] sm:$0xf0]  ;;  %v5260_v62 = vld [vmem:[#allocation5 + $0x190] sm:$0xf]  ;;  %v5509_v0 = vor.u32 %v7630_v50, %v5506_v51  ;;  %v6377_v7 = vor.u32 %v7847_v57, %v6374_v58 }
  0x5e   :  { %2694 = vmatpush.bf16.msrb.mxu0 %v5953_v13  ;;  %v5814_v13 = vld [vmem:[#allocation5 + $0x604] sm:$0xf0]  ;;  %v7571_v63 = vld [vmem:[#allocation5 + $0x1a8] sm:$0xf0]  ;;  %v6601_v8 = vor.u32 %v7903_v59, %v6598_v61  ;;  %v6346_v11 = vld [vmem:[#allocation5 + $0xa2c] sm:$0xf0] }
  0x5f   :  { %2707 = vmatpush.bf16.msrb.mxu1 %v6177_v18  ;;  %v5817_v18 = vor.u32 %v7707_v12, %v5814_v13  ;;  %v5261_v9 = vor.u32 %v7571_v63, %v5260_v62  ;;  %v7896_v12 = vld [vmem:[#allocation5 + $0xbd4] sm:$0xf]  ;;  %v6570_v14 = vld [vmem:[#allocation5 + $0xbec] sm:$0xf0]  ;;  %v5232_v15 = vld [vmem:[#allocation5 + $0x158] sm:$0xf] }
  0x60   :  { %2720 = vmatpush.bf16.msrb.mxu2 %v6401_v19  ;;  %v7588_v19 = vld [vmem:[#allocation5 + $0x234] sm:$0xf]  ;;  %v6318_v25 = vld [vmem:[#allocation5 + $0x9f4] sm:$0xf0]  ;;  %v7819_v51 = vld [vmem:[#allocation5 + $0x96c] sm:$0xf] }
  0x61   :  { %2733 = vmatpush.bf16.msrb.mxu3 %v5061_v26  ;;  %2695 = vmatmul.bf16.vlgmr.msrb.gmra.mxu0 %v8438_v40  ;;  %v7700_v26 = vld [vmem:[#allocation5 + $0x5b4] sm:$0xf]  ;;  %v5341_v30 = vor.u32 %v7588_v19, %v5338_v22  ;;  %v6573_v22 = vor.u32 %v7896_v12, %v6570_v14  ;;  %v7543_v57 = vld [vmem:[#allocation5 + $0xc8] sm:$0xf0]  ;;  %v5372_v58 = vld [vmem:[#allocation5 + $0x270] sm:$0xf] }
  0x62   :  { %2739 = vmatpush.bf16.msra.mxu0 %v5481_v27  ;;  %2708 = vmatmul.bf16.vlgmr.msrb.gmra.mxu1 %v8440_v41  ;;  %v5786_v27 = vld [vmem:[#allocation5 + $0x5cc] sm:$0xf0]  ;;  %v7599_v59 = vld [vmem:[#allocation5 + $0x288] sm:$0xf0]  ;;  %v7812_v63 = vld [vmem:[#allocation5 + $0x934] sm:$0xf] }
  0x63   :  { %2752 = vmatpush.bf16.msra.mxu1 %v5705_v28  ;;  %2721 = vmatmul.bf16.vlgmr.msrb.gmra.mxu2 %v8436_v37  ;;  %v7756_v28 = vld [vmem:[#allocation5 + $0x774] sm:$0xf]  ;;  %v5789_v32 = vor.u32 %v7700_v26, %v5786_v27  ;;  %v7889_v26 = vld [vmem:[#allocation5 + $0xb9c] sm:$0xf]  ;;  %v6206_v14 = vld [vmem:[#allocation5 + $0x914] sm:$0xf0] }
  0x64   :  { %2765 = vmatpush.bf16.msra.mxu2 %v5929_v29  ;;  %2734 = vmatmul.bf16.vlgmr.msrb.gmra.mxu3 %v8429_v20  ;;  %v6010_v29 = vld [vmem:[#allocation5 + $0x78c] sm:$0xf0] }
  0x65   :  { %2778 = vmatpush.bf16.msra.mxu3 %v6153_v33  ;;  %v7581_v33 = vld [vmem:[#allocation5 + $0x1fc] sm:$0xf]  ;;  %v6013_v36 = vor.u32 %v7756_v28, %v6010_v29  ;;  %v6542_v28 = vld [vmem:[#allocation5 + $0xbb4] sm:$0xf0]  ;;  %v5204_v29 = vld [vmem:[#allocation5 + $0x120] sm:$0xf] }
  0x66   :  { %2740 = vmatpush.bf16.msra.mxu0 %v5453_v42  ;;  %v5758_v42 = vld [vmem:[#allocation5 + $0x594] sm:$0xf0]  ;;  %v5313_v45 = vor.u32 %v7581_v33, %v5310_v34  ;;  %v6545_v34 = vor.u32 %v7889_v26, %v6542_v28  ;;  %v6178_v26 = vld [vmem:[#allocation5 + $0x8dc] sm:$0xf0] }
  0x67   :  { %2753 = vmatpush.bf16.msra.mxu1 %v5677_v43  ;;  %v7749_v43 = vld [vmem:[#allocation5 + $0x73c] sm:$0xf]  ;;  %v5761_v49 = vor.u32 %v7693_v39, %v5758_v42  ;;  %v7882_v39 = vld [vmem:[#allocation5 + $0xb64] sm:$0xf] }
  0x68   :  { %2766 = vmatpush.bf16.msra.mxu2 %v5901_v44  ;;  %v5982_v44 = vld [vmem:[#allocation5 + $0x754] sm:$0xf0] }
  0x69   :  { %2779 = vmatpush.bf16.msra.mxu3 %v6125_v48  ;;  %v5537_v48 = vor.u32 %v7637_v35, %v5534_v38  ;;  %v5985_v53 = vor.u32 %v7749_v43, %v5982_v44  ;;  %v6290_v38 = vld [vmem:[#allocation5 + $0x9bc] sm:$0xf0]  ;;  %v5176_v44 = vld [vmem:[#allocation5 + $0xe8] sm:$0xf] }
  0x6a   :  { %2741 = vmatpush.bf16.msra.mxu0 %v5425_v54  ;;  %v5730_v54 = vld [vmem:[#allocation5 + $0x55c] sm:$0xf0] }
  0x6b   :  { %2754 = vmatpush.bf16.msra.mxu1 %v5649_v55  ;;  %v7742_v55 = vld [vmem:[#allocation5 + $0x704] sm:$0xf]  ;;  %v5733_v1 = vor.u32 %v7686_v52, %v5730_v54  ;;  %v6514_v43 = vld [vmem:[#allocation5 + $0xb7c] sm:$0xf0]  ;;  %v6262_v52 = vld [vmem:[#allocation5 + $0x984] sm:$0xf0] }
  0x6c   :  { %2767 = vmatpush.bf16.msra.mxu2 %v5873_v56  ;;  %v5954_v56 = vld [vmem:[#allocation5 + $0x71c] sm:$0xf0] }
  0x6d   :  { %2780 = vmatpush.bf16.msra.mxu3 %v6097_v60  ;;  %v5285_v60 = vor.u32 %v7574_v46, %v5282_v47  ;;  %v5400_v46 = vld [vmem:[#allocation5 + $0x2a8] sm:$0xf]  ;;  %v7606_v47 = vld [vmem:[#allocation5 + $0x2c0] sm:$0xf0] }
  0x6e   :  { %2742 = vmatpush.bf16.msra.mxu0 %v5397_v2  ;;  %v5484_v2 = vld [vmem:[#allocation5 + $0x350] sm:$0xf]  ;;  %v5401_v54 = vor.u32 %v7606_v47, %v5400_v46 }
  0x6f   :  { %2755 = vmatpush.bf16.msra.mxu1 %v5621_v3  ;;  %v7627_v3 = vld [vmem:[#allocation5 + $0x368] sm:$0xf0] }
  0x70   :  { %2768 = vmatpush.bf16.msra.mxu2 %v5845_v5  ;;  %v5957_v5 = vor.u32 %v7742_v55, %v5954_v56  ;;  %v5485_v13 = vor.u32 %v7627_v3, %v5484_v2  ;;  %v6486_v55 = vld [vmem:[#allocation5 + $0xb44] sm:$0xf0]  ;;  %v5148_v56 = vld [vmem:[#allocation5 + $0xb0] sm:$0xf]  ;;  %v5373_v2 = vor.u32 %v7599_v59, %v5372_v58  ;;  %v7732_v58 = vld [vmem:[#allocation5 + $0x6b0] sm:$0xf0] }
  0x71   :  { %2781 = vmatpush.bf16.msra.mxu3 %v6069_v10  ;;  %v7840_v10 = vld [vmem:[#allocation5 + $0xa14] sm:$0xf]  ;;  %v5149_v62 = vor.u32 %v7543_v57, %v5148_v56  ;;  %v6458_v3 = vld [vmem:[#allocation5 + $0xb0c] sm:$0xf0]  ;;  %v5904_v56 = vld [vmem:[#allocation5 + $0x698] sm:$0xf] }
  0x72   :  { %2743 = vmatpush.bf16.msra.mxu0 %v5369_v16  ;;  %v7564_v16 = vld [vmem:[#allocation5 + $0x170] sm:$0xf0]  ;;  %v6349_v19 = vor.u32 %v7840_v10, %v6346_v11  ;;  %v6128_v59 = vld [vmem:[#allocation5 + $0x858] sm:$0xf] }
  0x73   :  { %2756 = vmatpush.bf16.msra.mxu1 %v5593_v17  ;;  %v5456_v17 = vld [vmem:[#allocation5 + $0x318] sm:$0xf]  ;;  %v5233_v23 = vor.u32 %v7564_v16, %v5232_v15  ;;  %v7861_v15 = vld [vmem:[#allocation5 + $0xabc] sm:$0xf] }
  0x74   :  { %2769 = vmatpush.bf16.msra.mxu2 %v5817_v18  ;;  %v7620_v18 = vld [vmem:[#allocation5 + $0x330] sm:$0xf0] }
  0x75   :  { %2782 = vmatpush.bf16.msra.mxu3 %v6041_v24  ;;  %v7833_v24 = vld [vmem:[#allocation5 + $0x9dc] sm:$0xf]  ;;  %v5457_v27 = vor.u32 %v7620_v18, %v5456_v17  ;;  %v6430_v17 = vld [vmem:[#allocation5 + $0xad4] sm:$0xf0]  ;;  %v5092_v18 = vld [vmem:[#allocation5 + $0x40] sm:$0xf] }
  0x76   :  { %2744 = vmatpush.bf16.msra.mxu0 %v5341_v30  ;;  %v7557_v30 = vld [vmem:[#allocation5 + $0x138] sm:$0xf0]  ;;  %v6321_v33 = vor.u32 %v7833_v24, %v6318_v25  ;;  %v7798_v25 = vld [vmem:[#allocation5 + $0x8c4] sm:$0xf] }
  0x77   :  { %2757 = vmatpush.bf16.msra.mxu1 %v5565_v31  ;;  %v5428_v31 = vld [vmem:[#allocation5 + $0x2e0] sm:$0xf]  ;;  %v5205_v35 = vor.u32 %v7557_v30, %v5204_v29  ;;  %v7854_v29 = vld [vmem:[#allocation5 + $0xa84] sm:$0xf] }
  0x78   :  { %2770 = vmatpush.bf16.msra.mxu2 %v5789_v32  ;;  %v7613_v32 = vld [vmem:[#allocation5 + $0x2f8] sm:$0xf0]  ;;  %v6402_v30 = vld [vmem:[#allocation5 + $0xa9c] sm:$0xf0] }
  0x79   :  { %2783 = vmatpush.bf16.msra.mxu3 %v6013_v36  ;;  %v7826_v36 = vld [vmem:[#allocation5 + $0x9a4] sm:$0xf]  ;;  %v5429_v42 = vor.u32 %v7613_v32, %v5428_v31  ;;  %v5064_v31 = vld [vmem:[#allocation5 + $0x8] sm:$0xf]  ;;  %v6405_v46 = vor.u32 %v7854_v29, %v6402_v30  ;;  %v5596_v30 = vld [vmem:[#allocation5 + $0x430] sm:$0xf] }
  0x7a   :  { %2745 = vmatpush.bf16.msra.mxu0 %v5313_v45  ;;  %v7550_v45 = vld [vmem:[#allocation5 + $0x100] sm:$0xf0] }
  0x7b   :  { %2758 = vmatpush.bf16.msra.mxu1 %v5537_v48  ;;  %v6293_v48 = vor.u32 %v7826_v36, %v6290_v38  ;;  %v5177_v50 = vor.u32 %v7550_v45, %v5176_v44  ;;  %v5708_v36 = vld [vmem:[#allocation5 + $0x510] sm:$0xf]  ;;  %v7683_v38 = vld [vmem:[#allocation5 + $0x528] sm:$0xf0] }
  0x7c   :  { %2771 = vmatpush.bf16.msra.mxu2 %v5761_v49  ;;  %v6517_v49 = vor.u32 %v7882_v39, %v6514_v43  ;;  %v5932_v39 = vld [vmem:[#allocation5 + $0x6d0] sm:$0xf]  ;;  %v7739_v43 = vld [vmem:[#allocation5 + $0x6e8] sm:$0xf0] }
  0x7d   :  { %2784 = vmatpush.bf16.msra.mxu3 %v5985_v53  ;;  %v7875_v53 = vld [vmem:[#allocation5 + $0xb2c] sm:$0xf]  ;;  %v6156_v44 = vld [vmem:[#allocation5 + $0x890] sm:$0xf] }
  0x7e   :  { %2746 = vmatpush.bf16.msra.mxu0 %v5285_v60  ;;  %v6265_v60 = vor.u32 %v7819_v51, %v6262_v52  ;;  %v6489_v61 = vor.u32 %v7875_v53, %v6486_v55  ;;  %v7795_v45 = vld [vmem:[#allocation5 + $0x8a8] sm:$0xf0]  ;;  %v5709_v51 = vor.u32 %v7683_v38, %v5708_v36  ;;  %v5933_v52 = vor.u32 %v7739_v43, %v5932_v39  ;;  %v7676_v55 = vld [vmem:[#allocation5 + $0x4f0] sm:$0xf0]  ;;  %v6268_v38 = vld [vmem:[#allocation5 + $0x970] sm:$0xf] }
  0x7f   :  { %2759 = vmatpush.bf16.msra.mxu1 %v5509_v0  ;;  %v6234_v0 = vld [vmem:[#allocation5 + $0x94c] sm:$0xf0]  ;;  %v6157_v53 = vor.u32 %v7795_v45, %v6156_v44  ;;  %v7767_v36 = vld [vmem:[#allocation5 + $0x7c8] sm:$0xf0]  ;;  %v5568_v45 = vld [vmem:[#allocation5 + $0x3f8] sm:$0xf] }
  0x80   :  { %2772 = vmatpush.bf16.msra.mxu2 %v5733_v1  ;;  %v7868_v1 = vld [vmem:[#allocation5 + $0xaf4] sm:$0xf]  ;;  %v6237_v10 = vor.u32 %v7812_v63, %v6234_v0  ;;  %v5905_v0 = vor.u32 %v7732_v58, %v5904_v56  ;;  %v7823_v39 = vld [vmem:[#allocation5 + $0x988] sm:$0xf0]  ;;  %v7641_v58 = vld [vmem:[#allocation5 + $0x3d8] sm:$0xf0] }
  0x81   :  { %2785 = vmatpush.bf16.msra.mxu3 %v5957_v5  ;;  %2747 = vmatmul.bf16.vlgmr.msra.gmra.mxu0 %v8431_v21  ;;  %v5120_v5 = vld [vmem:[#allocation5 + $0x78] sm:$0xf]  ;;  %v6461_v11 = vor.u32 %v7868_v1, %v6458_v3  ;;  %v7669_v3 = vld [vmem:[#allocation5 + $0x4b8] sm:$0xf0] }
  0x82   :  { %2791 = vmatpush.bf16.msrb.mxu0 %v6377_v7  ;;  %2760 = vmatmul.bf16.vlgmr.msra.gmra.mxu1 %v8424_v4  ;;  %v7536_v7 = vld [vmem:[#allocation5 + $0x90] sm:$0xf0] }
  0x83   :  { %2804 = vmatpush.bf16.msrb.mxu1 %v6601_v8  ;;  %2773 = vmatmul.bf16.vlgmr.msra.gmra.mxu2 %v8426_v6  ;;  %v5344_v8 = vld [vmem:[#allocation5 + $0x238] sm:$0xf]  ;;  %v5121_v12 = vor.u32 %v7536_v7, %v5120_v5  ;;  %v5876_v5 = vld [vmem:[#allocation5 + $0x660] sm:$0xf] }
  0x84   :  { %2817 = vmatpush.bf16.msrb.mxu2 %v5261_v9  ;;  %2786 = vmatmul.bf16.vlgmr.msra.gmra.mxu3 %v8438_v40  ;;  %v7592_v9 = vld [vmem:[#allocation5 + $0x250] sm:$0xf0] }
  0x85   :  { %2830 = vmatpush.bf16.msrb.mxu3 %v5485_v13  ;;  %v7805_v13 = vld [vmem:[#allocation5 + $0x8fc] sm:$0xf]  ;;  %v5345_v16 = vor.u32 %v7592_v9, %v5344_v8  ;;  %v6100_v9 = vld [vmem:[#allocation5 + $0x820] sm:$0xf] }
  0x86   :  { %2792 = vmatpush.bf16.msrb.mxu0 %v6349_v19  ;;  %v7529_v19 = vld [vmem:[#allocation5 + $0x58] sm:$0xf0]  ;;  %v6209_v24 = vor.u32 %v7805_v13, %v6206_v14 }
  0x87   :  { %2805 = vmatpush.bf16.msrb.mxu1 %v6573_v22  ;;  %v5316_v22 = vld [vmem:[#allocation5 + $0x200] sm:$0xf]  ;;  %v5093_v28 = vor.u32 %v7529_v19, %v5092_v18  ;;  %v7725_v8 = vld [vmem:[#allocation5 + $0x678] sm:$0xf0]  ;;  %v5848_v18 = vld [vmem:[#allocation5 + $0x628] sm:$0xf] }
  0x88   :  { %2818 = vmatpush.bf16.msrb.mxu2 %v5233_v23  ;;  %v7585_v23 = vld [vmem:[#allocation5 + $0x218] sm:$0xf0]  ;;  %v5877_v14 = vor.u32 %v7725_v8, %v5876_v5  ;;  %v7634_v5 = vld [vmem:[#allocation5 + $0x3a0] sm:$0xf0] }
  0x89   :  { %2831 = vmatpush.bf16.msrb.mxu3 %v5457_v27  ;;  %v6433_v27 = vor.u32 %v7861_v15, %v6430_v17  ;;  %v5317_v32 = vor.u32 %v7585_v23, %v5316_v22  ;;  %v7662_v17 = vld [vmem:[#allocation5 + $0x480] sm:$0xf0]  ;;  %v6072_v23 = vld [vmem:[#allocation5 + $0x7e8] sm:$0xf] }
  0x8a   :  { %2793 = vmatpush.bf16.msrb.mxu0 %v6321_v33  ;;  %v7522_v33 = vld [vmem:[#allocation5 + $0x20] sm:$0xf0] }
  0x8b   :  { %2806 = vmatpush.bf16.msrb.mxu1 %v6545_v34  ;;  %v5288_v34 = vld [vmem:[#allocation5 + $0x1c8] sm:$0xf]  ;;  %v5065_v47 = vor.u32 %v7522_v33, %v5064_v31  ;;  %v7718_v22 = vld [vmem:[#allocation5 + $0x640] sm:$0xf0]  ;;  %v7655_v31 = vld [vmem:[#allocation5 + $0x448] sm:$0xf0] }
  0x8c   :  { %2819 = vmatpush.bf16.msrb.mxu2 %v5205_v35  ;;  %v7578_v35 = vld [vmem:[#allocation5 + $0x1e0] sm:$0xf0] }
  0x8d   :  { %2832 = vmatpush.bf16.msrb.mxu3 %v5429_v42  ;;  %v6181_v42 = vor.u32 %v7798_v25, %v6178_v26  ;;  %v6296_v25 = vld [vmem:[#allocation5 + $0x9a8] sm:$0xf]  ;;  %v7830_v26 = vld [vmem:[#allocation5 + $0x9c0] sm:$0xf0] }
  0x8e   :  { %2794 = vmatpush.bf16.msrb.mxu0 %v6293_v48  ;;  %v6380_v48 = vld [vmem:[#allocation5 + $0xa50] sm:$0xf]  ;;  %v6297_v33 = vor.u32 %v7830_v26, %v6296_v25 }
  0x8f   :  { %2807 = vmatpush.bf16.msrb.mxu1 %v6517_v49  ;;  %v7851_v49 = vld [vmem:[#allocation5 + $0xa68] sm:$0xf0] }
  0x90   :  { %2820 = vmatpush.bf16.msrb.mxu2 %v5177_v50  ;;  %v5289_v50 = vor.u32 %v7578_v35, %v5288_v34  ;;  %v6381_v57 = vor.u32 %v7851_v49, %v6380_v48  ;;  %v7711_v34 = vld [vmem:[#allocation5 + $0x608] sm:$0xf0]  ;;  %v6044_v35 = vld [vmem:[#allocation5 + $0x7b0] sm:$0xf]  ;;  %v6269_v48 = vor.u32 %v7823_v39, %v6268_v38  ;;  %v7704_v49 = vld [vmem:[#allocation5 + $0x5d0] sm:$0xf0] }
  0x91   :  { %2833 = vmatpush.bf16.msrb.mxu3 %v5401_v54  ;;  %v5680_v54 = vld [vmem:[#allocation5 + $0x4d8] sm:$0xf]  ;;  %v6045_v44 = vor.u32 %v7767_v36, %v6044_v35  ;;  %v7561_v35 = vld [vmem:[#allocation5 + $0x15c] sm:$0xf] }
  0x92   :  { %2795 = vmatpush.bf16.msrb.mxu0 %v6265_v60  ;;  %v7788_v60 = vld [vmem:[#allocation5 + $0x870] sm:$0xf0]  ;;  %v5681_v63 = vor.u32 %v7676_v55, %v5680_v54  ;;  %v5234_v38 = vld [vmem:[#allocation5 + $0x174] sm:$0xf0]  ;;  %v7617_v39 = vld [vmem:[#allocation5 + $0x31c] sm:$0xf] }
  0x93   :  { %2808 = vmatpush.bf16.msrb.mxu1 %v6489_v61  ;;  %v6352_v61 = vld [vmem:[#allocation5 + $0xa18] sm:$0xf]  ;;  %v6129_v1 = vor.u32 %v7788_v60, %v6128_v59  ;;  %v5764_v59 = vld [vmem:[#allocation5 + $0x580] sm:$0xf] }
  0x94   :  { %2821 = vmatpush.bf16.msrb.mxu2 %v5149_v62  ;;  %v7844_v62 = vld [vmem:[#allocation5 + $0xa30] sm:$0xf0] }
  0x95   :  { %2834 = vmatpush.bf16.msrb.mxu3 %v5373_v2  ;;  %v5652_v2 = vld [vmem:[#allocation5 + $0x4a0] sm:$0xf]  ;;  %v6353_v7 = vor.u32 %v7844_v62, %v6352_v61  ;;  %v7697_v61 = vld [vmem:[#allocation5 + $0x598] sm:$0xf0] }
  0x96   :  { %2796 = vmatpush.bf16.msrb.mxu0 %v6237_v10  ;;  %v7781_v10 = vld [vmem:[#allocation5 + $0x838] sm:$0xf0]  ;;  %v5653_v13 = vor.u32 %v7669_v3, %v5652_v2  ;;  %v5988_v62 = vld [vmem:[#allocation5 + $0x740] sm:$0xf]  ;;  %v5512_v3 = vld [vmem:[#allocation5 + $0x388] sm:$0xf] }
  0x97   :  { %2809 = vmatpush.bf16.msrb.mxu1 %v6461_v11  ;;  %v6324_v11 = vld [vmem:[#allocation5 + $0x9e0] sm:$0xf]  ;;  %v6101_v15 = vor.u32 %v7781_v10, %v6100_v9  ;;  %v5736_v9 = vld [vmem:[#allocation5 + $0x548] sm:$0xf]  ;;  %v7690_v10 = vld [vmem:[#allocation5 + $0x560] sm:$0xf0] }
  0x98   :  { %2822 = vmatpush.bf16.msrb.mxu2 %v5121_v12  ;;  %v7837_v12 = vld [vmem:[#allocation5 + $0x9f8] sm:$0xf0]  ;;  %v5737_v25 = vor.u32 %v7690_v10, %v5736_v9 }
  0x99   :  { %2835 = vmatpush.bf16.msrb.mxu3 %v5345_v16  ;;  %v5624_v16 = vld [vmem:[#allocation5 + $0x468] sm:$0xf]  ;;  %v6325_v19 = vor.u32 %v7837_v12, %v6324_v11 }
  0x9a   :  { %2797 = vmatpush.bf16.msrb.mxu0 %v6209_v24  ;;  %v7774_v24 = vld [vmem:[#allocation5 + $0x800] sm:$0xf0]  ;;  %v5960_v11 = vld [vmem:[#allocation5 + $0x708] sm:$0xf] }
  0x9b   :  { %2810 = vmatpush.bf16.msrb.mxu1 %v6433_v27  ;;  %v5625_v27 = vor.u32 %v7662_v17, %v5624_v16  ;;  %v6073_v29 = vor.u32 %v7774_v24, %v6072_v23  ;;  %v6604_v16 = vld [vmem:[#allocation5 + $0xc10] sm:$0xf]  ;;  %v7907_v17 = vld [vmem:[#allocation5 + $0xc28] sm:$0xf0]  ;;  %v7624_v23 = vld [vmem:[#allocation5 + $0x354] sm:$0xf] }
  0x9c   :  { %2823 = vmatpush.bf16.msrb.mxu2 %v5093_v28  ;;  %v5849_v28 = vor.u32 %v7718_v22, %v5848_v18  ;;  %v7568_v18 = vld [vmem:[#allocation5 + $0x194] sm:$0xf]  ;;  %v5262_v22 = vld [vmem:[#allocation5 + $0x1ac] sm:$0xf0] }
  0x9d   :  { %2836 = vmatpush.bf16.msrb.mxu3 %v5317_v32  ;;  %v5820_v32 = vld [vmem:[#allocation5 + $0x5f0] sm:$0xf] }
  0x9e   :  { %2798 = vmatpush.bf16.msrb.mxu0 %v6181_v42  ;;  %v5597_v42 = vor.u32 %v7655_v31, %v5596_v30  ;;  %v5821_v43 = vor.u32 %v7711_v34, %v5820_v32  ;;  %v5486_v24 = vld [vmem:[#allocation5 + $0x36c] sm:$0xf0]  ;;  %v6605_v30 = vor.u32 %v7907_v17, %v6604_v16  ;;  %v5265_v31 = vor.u32 %v7568_v18, %v5262_v22  ;;  %v7900_v34 = vld [vmem:[#allocation5 + $0xbf0] sm:$0xf0] }
  0x9f   :  { %2811 = vmatpush.bf16.msrb.mxu1 %v6405_v46  ;;  %v7648_v46 = vld [vmem:[#allocation5 + $0x410] sm:$0xf0]  ;;  %v5489_v32 = vor.u32 %v7624_v23, %v5486_v24  ;;  %v5374_v17 = vld [vmem:[#allocation5 + $0x28c] sm:$0xf0] }
  0xa0   :  { %2824 = vmatpush.bf16.msrb.mxu2 %v5065_v47  ;;  %v5792_v47 = vld [vmem:[#allocation5 + $0x5b8] sm:$0xf]  ;;  %v5569_v54 = vor.u32 %v7648_v46, %v5568_v45  ;;  %v5237_v46 = vor.u32 %v7561_v35, %v5234_v38  ;;  %v7596_v16 = vld [vmem:[#allocation5 + $0x274] sm:$0xf] }
  0xa1   :  { %2837 = vmatpush.bf16.msrb.mxu3 %v5289_v50  ;;  %2799 = vmatmul.bf16.vlgmr.msrb.gmra.mxu0 %v8440_v41  ;;  %v6016_v50 = vld [vmem:[#allocation5 + $0x778] sm:$0xf]  ;;  %v5793_v55 = vor.u32 %v7704_v49, %v5792_v47  ;;  %v7893_v49 = vld [vmem:[#allocation5 + $0xbb8] sm:$0xf0]  ;;  %v7652_v18 = vld [vmem:[#allocation5 + $0x434] sm:$0xf] }
  0xa2   :  { %2843 = vmatpush.bf16.msra.mxu0 %v5709_v51  ;;  %2812 = vmatmul.bf16.vlgmr.msrb.gmra.mxu1 %v8436_v37  ;;  %v7760_v51 = vld [vmem:[#allocation5 + $0x790] sm:$0xf0] }
  0xa3   :  { %2856 = vmatpush.bf16.msra.mxu1 %v5933_v52  ;;  %2825 = vmatmul.bf16.vlgmr.msrb.gmra.mxu2 %v8429_v20  ;;  %v6240_v52 = vld [vmem:[#allocation5 + $0x938] sm:$0xf]  ;;  %v6017_v56 = vor.u32 %v7760_v51, %v6016_v50  ;;  %v7554_v50 = vld [vmem:[#allocation5 + $0x124] sm:$0xf] }
  0xa4   :  { %2869 = vmatpush.bf16.msra.mxu2 %v6157_v53  ;;  %2838 = vmatmul.bf16.vlgmr.msrb.gmra.mxu3 %v8431_v21  ;;  %v7816_v53 = vld [vmem:[#allocation5 + $0x950] sm:$0xf0] }
  0xa5   :  { %2882 = vmatpush.bf16.msra.mxu3 %v6381_v57  ;;  %v5540_v57 = vld [vmem:[#allocation5 + $0x3c0] sm:$0xf]  ;;  %v6241_v60 = vor.u32 %v7816_v53, %v6240_v52  ;;  %v7610_v53 = vld [vmem:[#allocation5 + $0x2e4] sm:$0xf] }
  0xa6   :  { %2844 = vmatpush.bf16.msra.mxu0 %v5681_v63  ;;  %v7753_v63 = vld [vmem:[#allocation5 + $0x758] sm:$0xf0]  ;;  %v5541_v2 = vor.u32 %v7641_v58, %v5540_v57  ;;  %v5206_v52 = vld [vmem:[#allocation5 + $0x13c] sm:$0xf0] }
  0xa7   :  { %2857 = vmatpush.bf16.msra.mxu1 %v5905_v0  ;;  %v6212_v0 = vld [vmem:[#allocation5 + $0x900] sm:$0xf]  ;;  %v5989_v8 = vor.u32 %v7753_v63, %v5988_v62  ;;  %v5209_v58 = vor.u32 %v7554_v50, %v5206_v52  ;;  %v7547_v62 = vld [vmem:[#allocation5 + $0xec] sm:$0xf]  ;;  %v7582_v50 = vld [vmem:[#allocation5 + $0x204] sm:$0xf] }
  0xa8   :  { %2870 = vmatpush.bf16.msra.mxu2 %v6129_v1  ;;  %v7809_v1 = vld [vmem:[#allocation5 + $0x918] sm:$0xf0] }
  0xa9   :  { %2883 = vmatpush.bf16.msra.mxu3 %v6353_v7  ;;  %v5765_v7 = vor.u32 %v7697_v61, %v5764_v59  ;;  %v6213_v12 = vor.u32 %v7809_v1, %v6212_v0  ;;  %v7886_v61 = vld [vmem:[#allocation5 + $0xb80] sm:$0xf0]  ;;  %v5178_v0 = vld [vmem:[#allocation5 + $0x104] sm:$0xf0]  ;;  %v7603_v1 = vld [vmem:[#allocation5 + $0x2ac] sm:$0xf] }
  0xaa   :  { %2845 = vmatpush.bf16.msra.mxu0 %v5653_v13  ;;  %v7746_v13 = vld [vmem:[#allocation5 + $0x720] sm:$0xf0]  ;;  %v5181_v9 = vor.u32 %v7547_v62, %v5178_v0  ;;  %v7519_v62 = vld [vmem:[#allocation5 + $0xc] sm:$0xf] }
  0xab   :  { %2858 = vmatpush.bf16.msra.mxu1 %v5877_v14  ;;  %v6184_v14 = vld [vmem:[#allocation5 + $0x8c8] sm:$0xf]  ;;  %v5961_v26 = vor.u32 %v7746_v13, %v5960_v11  ;;  %v7879_v11 = vld [vmem:[#allocation5 + $0xb48] sm:$0xf0]  ;;  %v8458_v13 = vld [vmem:[#allocation7] sm:$0xff] }
  0xac   :  { %2871 = vmatpush.bf16.msra.mxu2 %v6101_v15  ;;  %v7802_v15 = vld [vmem:[#allocation5 + $0x8e0] sm:$0xf0]  ;;  %v580_v23 = vperm.slane %v8458_v13, 0  ;;  %v7575_v0 = vld [vmem:[#allocation5 + $0x1cc] sm:$0xf] }
  0xad   :  { %2884 = vmatpush.bf16.msra.mxu3 %v6325_v19  ;;  %v5513_v19 = vor.u32 %v7634_v5, %v5512_v3  ;;  %v7659_v3 = vld [vmem:[#allocation5 + $0x46c] sm:$0xf]  ;;  %v5626_v5 = vld [vmem:[#allocation5 + $0x484] sm:$0xf0] }
  0xae   :  { %2846 = vmatpush.bf16.msra.mxu0 %v5625_v27  ;;  %v7680_v27 = vld [vmem:[#allocation5 + $0x514] sm:$0xf] }
  0xaf   :  { %2859 = vmatpush.bf16.msra.mxu1 %v5849_v28  ;;  %v5710_v28 = vld [vmem:[#allocation5 + $0x52c] sm:$0xf0] }
  0xb0   :  { %2872 = vmatpush.bf16.msra.mxu2 %v6073_v29  ;;  %v6185_v29 = vor.u32 %v7802_v15, %v6184_v14  ;;  %v5713_v36 = vor.u32 %v7680_v27, %v5710_v28  ;;  %v5629_v14 = vor.u32 %v7659_v3, %v5626_v5  ;;  %v5150_v15 = vld [vmem:[#allocation5 + $0xcc] sm:$0xf0]  ;;  %v7872_v27 = vld [vmem:[#allocation5 + $0xb10] sm:$0xf0]  ;;  %v7533_v28 = vld [vmem:[#allocation5 + $0x7c] sm:$0xf] }
  0xb1   :  { %2885 = vmatpush.bf16.msra.mxu3 %v6297_v33  ;;  %v6576_v33 = vld [vmem:[#allocation5 + $0xbd8] sm:$0xf]  ;;  %v7631_v3 = vld [vmem:[#allocation5 + $0x38c] sm:$0xf]  ;;  %v5514_v5 = vld [vmem:[#allocation5 + $0x3a4] sm:$0xf0] }
  0xb2   :  { %2847 = vmatpush.bf16.msra.mxu0 %v5597_v42  ;;  %v5458_v42 = vld [vmem:[#allocation5 + $0x334] sm:$0xf0]  ;;  %v6577_v45 = vor.u32 %v7900_v34, %v6576_v33  ;;  %v7645_v33 = vld [vmem:[#allocation5 + $0x3fc] sm:$0xf] }
  0xb3   :  { %2860 = vmatpush.bf16.msra.mxu1 %v5821_v43  ;;  %v7673_v43 = vld [vmem:[#allocation5 + $0x4dc] sm:$0xf]  ;;  %v5461_v47 = vor.u32 %v7617_v39, %v5458_v42  ;;  %v5570_v34 = vld [vmem:[#allocation5 + $0x414] sm:$0xf0] }
  0xb4   :  { %2873 = vmatpush.bf16.msra.mxu2 %v6045_v44  ;;  %v5682_v44 = vld [vmem:[#allocation5 + $0x4f4] sm:$0xf0] }
  0xb5   :  { %2886 = vmatpush.bf16.msra.mxu3 %v6269_v48  ;;  %v6548_v48 = vld [vmem:[#allocation5 + $0xba0] sm:$0xf]  ;;  %v5685_v51 = vor.u32 %v7673_v43, %v5682_v44 }
  0xb6   :  { %2848 = vmatpush.bf16.msra.mxu0 %v5569_v54  ;;  %v5430_v54 = vld [vmem:[#allocation5 + $0x2fc] sm:$0xf0]  ;;  %v6549_v57 = vor.u32 %v7893_v49, %v6548_v48  ;;  %v5573_v48 = vor.u32 %v7645_v33, %v5570_v34  ;;  %v6130_v34 = vld [vmem:[#allocation5 + $0x874] sm:$0xf0] }
  0xb7   :  { %2861 = vmatpush.bf16.msra.mxu1 %v5793_v55  ;;  %v7666_v55 = vld [vmem:[#allocation5 + $0x4a4] sm:$0xf]  ;;  %v5433_v59 = vor.u32 %v7610_v53, %v5430_v54  ;;  %v6436_v44 = vld [vmem:[#allocation5 + $0xac0] sm:$0xf] }
  0xb8   :  { %2874 = vmatpush.bf16.msra.mxu2 %v6017_v56  ;;  %v5654_v56 = vld [vmem:[#allocation5 + $0x4bc] sm:$0xf0]  ;;  %v7638_v54 = vld [vmem:[#allocation5 + $0x3c4] sm:$0xf] }
  0xb9   :  { %2887 = vmatpush.bf16.msra.mxu3 %v6241_v60  ;;  %v6520_v60 = vld [vmem:[#allocation5 + $0xb68] sm:$0xf]  ;;  %v5657_v63 = vor.u32 %v7666_v55, %v5654_v56  ;;  %v5094_v49 = vld [vmem:[#allocation5 + $0x5c] sm:$0xf0] }
  0xba   :  { %2849 = vmatpush.bf16.msra.mxu0 %v5541_v2  ;;  %v5402_v2 = vld [vmem:[#allocation5 + $0x2c4] sm:$0xf0]  ;;  %v5542_v55 = vld [vmem:[#allocation5 + $0x3dc] sm:$0xf0] }
  0xbb   :  { %2862 = vmatpush.bf16.msra.mxu1 %v5765_v7  ;;  %v6521_v7 = vor.u32 %v7886_v61, %v6520_v60  ;;  %v5405_v10 = vor.u32 %v7603_v1, %v5402_v2  ;;  %v5545_v1 = vor.u32 %v7638_v54, %v5542_v55  ;;  %v5290_v2 = vld [vmem:[#allocation5 + $0x1e4] sm:$0xf0] }
  0xbc   :  { %2875 = vmatpush.bf16.msra.mxu2 %v5989_v8  ;;  %v6492_v8 = vld [vmem:[#allocation5 + $0xb30] sm:$0xf] }
  0xbd   :  { %2888 = vmatpush.bf16.msra.mxu3 %v6213_v12  ;;  %v7540_v12 = vld [vmem:[#allocation5 + $0xb4] sm:$0xf]  ;;  %v6493_v22 = vor.u32 %v7879_v11, %v6492_v8 }
  0xbe   :  { %2850 = vmatpush.bf16.msra.mxu0 %v5513_v19  ;;  %v5598_v19 = vld [vmem:[#allocation5 + $0x44c] sm:$0xf0]  ;;  %v5153_v24 = vor.u32 %v7540_v12, %v5150_v15  ;;  %v7736_v8 = vld [vmem:[#allocation5 + $0x6d4] sm:$0xf] }
  0xbf   :  { %2863 = vmatpush.bf16.msra.mxu1 %v5737_v25  ;;  %v5377_v25 = vor.u32 %v7596_v16, %v5374_v17  ;;  %v2657_v39 = vpop.f32.mrf.mxu1  ;;  %v7848_v15 = vld [vmem:[#allocation5 + $0xa54] sm:$0xf]  ;;  %v6382_v16 = vld [vmem:[#allocation5 + $0xa6c] sm:$0xf0] }
  0xc0   :  { %2876 = vmatpush.bf16.msra.mxu2 %v5961_v26  ;;  %v6464_v26 = vld [vmem:[#allocation5 + $0xaf8] sm:$0xf] }
  0xc1   :  { %2889 = vmatpush.bf16.msra.mxu3 %v6185_v29  ;;  %2851 = vmatmul.bf16.vlgmr.msra.gmra.mxu0 %v8424_v4  ;;  %v5601_v29 = vor.u32 %v7652_v18, %v5598_v19  ;;  %v5293_v19 = vor.u32 %v7575_v0, %v5290_v2  ;;  %v7883_v0 = vld [vmem:[#allocation5 + $0xb6c] sm:$0xf] }
  0xc2   :  { %2895 = vmatpush.bf16.msrb.mxu0 %v6605_v30  ;;  %2864 = vmatmul.bf16.vlgmr.msra.gmra.mxu1 %v8426_v6  ;;  %v5122_v30 = vld [vmem:[#allocation5 + $0x94] sm:$0xf0]  ;;  %v2644_v35 = vpop.f32.mrf.mxu0 }
  0xc3   :  { %2908 = vmatpush.bf16.msrb.mxu1 %v5265_v31  ;;  %2877 = vmatmul.bf16.vlgmr.msra.gmra.mxu2 %v8438_v40  ;;  %v7589_v31 = vld [vmem:[#allocation5 + $0x23c] sm:$0xf]  ;;  %v2645_v38 = vadd.f32 %v2644_v35, %v580_v23  ;;  %v5125_v42 = vor.u32 %v7533_v28, %v5122_v30  ;;  %v6606_v23 = vld [vmem:[#allocation5 + $0xc2c] sm:$0xf0] }
  0xc4   :  { %2921 = vmatpush.bf16.msrb.mxu2 %v5489_v32  ;;  %2890 = vmatmul.bf16.vlgmr.msra.gmra.mxu3 %v8440_v41  ;;  %v5346_v32 = vld [vmem:[#allocation5 + $0x254] sm:$0xf0]  ;;  %v7729_v30 = vld [vmem:[#allocation5 + $0x69c] sm:$0xf] }
  0xc5   :  { %2934 = vmatpush.bf16.msrb.mxu3 %v5713_v36  ;;  %v6465_v36 = vor.u32 %v7872_v27, %v6464_v26  ;;  %v5349_v43 = vor.u32 %v7589_v31, %v5346_v32  ;;  %v2658_v52 = vadd.f32 %v2657_v39, %v2645_v38  ;;  %v5906_v31 = vld [vmem:[#allocation5 + $0x6b4] sm:$0xf0]  ;;  %v7785_v32 = vld [vmem:[#allocation5 + $0x85c] sm:$0xf] }
  0xc6   :  { %2896 = vmatpush.bf16.msrb.mxu0 %v6577_v45  ;;  %v7865_v45 = vld [vmem:[#allocation5 + $0xad8] sm:$0xf0]  ;;  %v6578_v39 = vld [vmem:[#allocation5 + $0xbf4] sm:$0xf0] }
  0xc7   :  { %2909 = vmatpush.bf16.msrb.mxu1 %v5237_v46  ;;  %v7526_v46 = vld [vmem:[#allocation5 + $0x44] sm:$0xf]  ;;  %v2683_v53 = vpop.f32.mrf.mxu3  ;;  %v6437_v56 = vor.u32 %v7865_v45, %v6436_v44  ;;  %v2659_v17 = vpop.f32.mrf.mxu1  ;;  %v7841_v35 = vld [vmem:[#allocation5 + $0xa1c] sm:$0xf] }
  0xc8   :  { %2922 = vmatpush.bf16.msrb.mxu2 %v5461_v47  ;;  %v2670_v47 = vpop.f32.mrf.mxu2  ;;  %v5097_v60 = vor.u32 %v7526_v46, %v5094_v49  ;;  %v7897_v38 = vld [vmem:[#allocation5 + $0xbdc] sm:$0xf]  ;;  %v7722_v45 = vld [vmem:[#allocation5 + $0x664] sm:$0xf]  ;;  %v5878_v46 = vld [vmem:[#allocation5 + $0x67c] sm:$0xf0] }
  0xc9   :  { %2935 = vmatpush.bf16.msrb.mxu3 %v5685_v51  ;;  %v5318_v51 = vld [vmem:[#allocation5 + $0x21c] sm:$0xf0]  ;;  %v5881_v54 = vor.u32 %v7722_v45, %v5878_v46  ;;  %v7820_v17 = vld [vmem:[#allocation5 + $0x974] sm:$0xf]  ;;  %v7694_v45 = vld [vmem:[#allocation5 + $0x584] sm:$0xf] }
  0xca   :  { %2897 = vmatpush.bf16.msrb.mxu0 %v6549_v57  ;;  %v6408_v57 = vld [vmem:[#allocation5 + $0xa88] sm:$0xf]  ;;  %v5321_v61 = vor.u32 %v7582_v50, %v5318_v51  ;;  %v2646_v11 = vpop.f32.mrf.mxu0  ;;  %v6102_v49 = vld [vmem:[#allocation5 + $0x83c] sm:$0xf0]  ;;  %v7834_v50 = vld [vmem:[#allocation5 + $0x9e4] sm:$0xf] }
  0xcb   :  { %2910 = vmatpush.bf16.msrb.mxu1 %v5209_v58  ;;  %v7858_v58 = vld [vmem:[#allocation5 + $0xaa0] sm:$0xf0]  ;;  %v6326_v51 = vld [vmem:[#allocation5 + $0x9fc] sm:$0xf0]  ;;  %v5822_v11 = vld [vmem:[#allocation5 + $0x60c] sm:$0xf0] }
  0xcc   :  { %2923 = vmatpush.bf16.msrb.mxu2 %v5433_v59  ;;  %v2671_v59 = vadd.f32 %v2670_v47, %v2658_v52  ;;  %v6409_v12 = vor.u32 %v7858_v58, %v6408_v57  ;;  %v7778_v47 = vld [vmem:[#allocation5 + $0x824] sm:$0xf]  ;;  %v7715_v57 = vld [vmem:[#allocation5 + $0x62c] sm:$0xf]  ;;  %v5850_v58 = vld [vmem:[#allocation5 + $0x644] sm:$0xf0] }
  0xcd   :  { %2936 = vmatpush.bf16.msrb.mxu3 %v5657_v63  ;;  %v5066_v63 = vld [vmem:[#allocation5 + $0x24] sm:$0xf0]  ;;  %v7890_v52 = vld [vmem:[#allocation5 + $0xba4] sm:$0xf]  ;;  %v6105_v55 = vor.u32 %v7778_v47, %v6102_v49  ;;  %v5853_v2 = vor.u32 %v7715_v57, %v5850_v58  ;;  %v5766_v46 = vld [vmem:[#allocation5 + $0x59c] sm:$0xf0] }
  0xce   :  { %2898 = vmatpush.bf16.msrb.mxu0 %v6521_v7  ;;  %v8461_v7 = vadd.f32 %v2683_v53, %v2671_v59  ;;  %v5069_v18 = vor.u32 %v7519_v62, %v5066_v63  ;;  %v6550_v53 = vld [vmem:[#allocation5 + $0xbbc] sm:$0xf0]  ;;  %v7771_v59 = vld [vmem:[#allocation5 + $0x7ec] sm:$0xf]  ;;  %v6298_v63 = vld [vmem:[#allocation5 + $0x9c4] sm:$0xf0] }
  0xcf   :  { %2911 = vmatpush.bf16.msrb.mxu1 %v5181_v9  ;;  %v5934_v9 = vld [vmem:[#allocation5 + $0x6ec] sm:$0xf0]  ;;  %v2685_v27 = vpop.f32.mrf.mxu3  ;;  %v7827_v62 = vld [vmem:[#allocation5 + $0x9ac] sm:$0xf]  ;;  %v7750_v47 = vld [vmem:[#allocation5 + $0x744] sm:$0xf] }
  0xd0   :  { %2924 = vmatpush.bf16.msrb.mxu2 %v5405_v10  ;;  %v7792_v10 = vld [vmem:[#allocation5 + $0x894] sm:$0xf]  ;;  %v5937_v26 = vor.u32 %v7736_v8, %v5934_v9  ;;  %v6301_v9 = vor.u32 %v7827_v62, %v6298_v63  ;;  %v7701_v27 = vld [vmem:[#allocation5 + $0x5bc] sm:$0xf]  ;;  %v5990_v49 = vld [vmem:[#allocation5 + $0x75c] sm:$0xf0] }
  0xd1   :  { %2937 = vmatpush.bf16.msrb.mxu3 %v5629_v14  ;;  %v6158_v14 = vld [vmem:[#allocation5 + $0x8ac] sm:$0xf0]  ;;  %v5993_v57 = vor.u32 %v7750_v47, %v5990_v49  ;;  %v7670_v47 = vld [vmem:[#allocation5 + $0x4c0] sm:$0xf0]  ;;  %v5884_v49 = vld [vmem:[#allocation5 + $0x668] sm:$0xf] }
  0xd2   :  { %2899 = vmatpush.bf16.msrb.mxu0 %v6493_v22  ;;  %v7904_v22 = vld [vmem:[#allocation5 + $0xc14] sm:$0xf]  ;;  %v6161_v28 = vor.u32 %v7792_v10, %v6158_v14 }
  0xd3   :  { %2912 = vmatpush.bf16.msrb.mxu1 %v5153_v24  ;;  %v2672_v24 = vpop.f32.mrf.mxu2  ;;  %v6609_v33 = vor.u32 %v7904_v22, %v6606_v23  ;;  %v7708_v10 = vld [vmem:[#allocation5 + $0x5f4] sm:$0xf]  ;;  %v6494_v22 = vld [vmem:[#allocation5 + $0xb4c] sm:$0xf0] }
  0xd4   :  { %2925 = vmatpush.bf16.msrb.mxu2 %v5377_v25  ;;  %v5517_v25 = vor.u32 %v7631_v3, %v5514_v5  ;;  %v5825_v24 = vor.u32 %v7708_v10, %v5822_v11  ;;  %v7628_v10 = vld [vmem:[#allocation5 + $0x370] sm:$0xf0]  ;;  %v5716_v11 = vld [vmem:[#allocation5 + $0x518] sm:$0xf] }
  0xd5   :  { %2938 = vmatpush.bf16.msrb.mxu3 %v5601_v29  ;;  %v6385_v29 = vor.u32 %v7848_v15, %v6382_v16  ;;  %v6046_v16 = vld [vmem:[#allocation5 + $0x7cc] sm:$0xf0] }
  0xd6   :  { %2900 = vmatpush.bf16.msrb.mxu0 %v6465_v36  ;;  %v6354_v36 = vld [vmem:[#allocation5 + $0xa34] sm:$0xf0] }
  0xd7   :  { %2913 = vmatpush.bf16.msrb.mxu1 %v5125_v42  ;;  %v5909_v42 = vor.u32 %v7729_v30, %v5906_v31  ;;  %v6357_v44 = vor.u32 %v7841_v35, %v6354_v36  ;;  %v6018_v31 = vld [vmem:[#allocation5 + $0x794] sm:$0xf0]  ;;  %v7869_v35 = vld [vmem:[#allocation5 + $0xafc] sm:$0xf] }
  0xd8   :  { %2926 = vmatpush.bf16.msrb.mxu2 %v5349_v43  ;;  %v6133_v43 = vor.u32 %v7785_v32, %v6130_v34  ;;  %v7813_v32 = vld [vmem:[#allocation5 + $0x93c] sm:$0xf]  ;;  %v6466_v36 = vld [vmem:[#allocation5 + $0xb14] sm:$0xf0] }
  0xd9   :  { %2939 = vmatpush.bf16.msrb.mxu3 %v5573_v48  ;;  %v6581_v48 = vor.u32 %v7897_v38, %v6578_v39 }
  0xda   :  { %2901 = vmatpush.bf16.msrb.mxu0 %v6437_v56  ;;  %v6329_v56 = vor.u32 %v7834_v50, %v6326_v51  ;;  %v7806_v50 = vld [vmem:[#allocation5 + $0x904] sm:$0xf]  ;;  %v6214_v51 = vld [vmem:[#allocation5 + $0x91c] sm:$0xf0] }
  0xdb   :  { %2914 = vmatpush.bf16.msrb.mxu1 %v5097_v60  ;;  %v6553_v60 = vor.u32 %v7890_v52, %v6550_v53  ;;  %v7862_v52 = vld [vmem:[#allocation5 + $0xac4] sm:$0xf]  ;;  %v6438_v53 = vld [vmem:[#allocation5 + $0xadc] sm:$0xf0]  ;;  %v6217_v58 = vor.u32 %v7806_v50, %v6214_v51 }
  0xdc   :  { %2927 = vmatpush.bf16.msrb.mxu2 %v5321_v61  ;;  %v6074_v61 = vld [vmem:[#allocation5 + $0x804] sm:$0xf0]  ;;  %v6441_v63 = vor.u32 %v7862_v52, %v6438_v53  ;;  %v7726_v50 = vld [vmem:[#allocation5 + $0x680] sm:$0xf0] }
  0xdd   :  { %2940 = vmatpush.bf16.msrb.mxu3 %v5545_v1  ;;  %v6522_v1 = vld [vmem:[#allocation5 + $0xb84] sm:$0xf0]  ;;  %v6077_v8 = vor.u32 %v7771_v59, %v6074_v61  ;;  %v7743_v59 = vld [vmem:[#allocation5 + $0x70c] sm:$0xf] }
  0xde   :  { %2902 = vmatpush.bf16.msrb.mxu0 %v6409_v12  ;;  %v2696_v3 = vpop.f32.mrf.mxu0  ;;  %v7764_v12 = vld [vmem:[#allocation5 + $0x7b4] sm:$0xf]  ;;  %v6525_v15 = vor.u32 %v7883_v0, %v6522_v1  ;;  %v7799_v61 = vld [vmem:[#allocation5 + $0x8cc] sm:$0xf]  ;;  %v6186_v0 = vld [vmem:[#allocation5 + $0x8e4] sm:$0xf0] }
  0xdf   :  { %2915 = vmatpush.bf16.msrb.mxu1 %v5069_v18  ;;  %v2709_v5 = vpop.f32.mrf.mxu1  ;;  %v2697_v14 = vadd.f32 %v2696_v3, %v8461_v7  ;;  %v6270_v18 = vld [vmem:[#allocation5 + $0x98c] sm:$0xf0]  ;;  %v7855_v1 = vld [vmem:[#allocation5 + $0xa8c] sm:$0xf]  ;;  %v5268_v3 = vld [vmem:[#allocation5 + $0x198] sm:$0xf] }
  0xe0   :  { %2928 = vmatpush.bf16.msrb.mxu2 %v5293_v19  ;;  %v7876_v19 = vld [vmem:[#allocation5 + $0xb34] sm:$0xf] }
  0xe1   :  { %2941 = vmatpush.bf16.msrb.mxu3 %v5517_v25  ;;  %2903 = vmatmul.bf16.vlgmr.msrb.gmra.mxu0 %v8436_v37  ;;  %v2710_v23 = vadd.f32 %v2709_v5, %v2697_v14  ;;  %v6049_v25 = vor.u32 %v7764_v12, %v6046_v16  ;;  %v6497_v7 = vor.u32 %v7876_v19, %v6494_v22  ;;  %v7572_v5 = vld [vmem:[#allocation5 + $0x1b0] sm:$0xf0] }
  0xe2   :  { %2947 = vmatpush.bf16.msra.mxu0 %v5937_v26  ;;  %2916 = vmatmul.bf16.vlgmr.msrb.gmra.mxu1 %v8429_v20  ;;  %v6273_v26 = vor.u32 %v7820_v17, %v6270_v18  ;;  %v7684_v12 = vld [vmem:[#allocation5 + $0x530] sm:$0xf0]  ;;  %v6189_v16 = vor.u32 %v7799_v61, %v6186_v0  ;;  %v5940_v17 = vld [vmem:[#allocation5 + $0x6d8] sm:$0xf]  ;;  %v5269_v22 = vor.u32 %v7572_v5, %v5268_v3  ;;  %v7663_v61 = vld [vmem:[#allocation5 + $0x488] sm:$0xf0] }
  0xe3   :  { %2960 = vmatpush.bf16.msra.mxu1 %v6161_v28  ;;  %2929 = vmatmul.bf16.vlgmr.msrb.gmra.mxu2 %v8431_v21  ;;  %v5794_v28 = vld [vmem:[#allocation5 + $0x5d4] sm:$0xf0]  ;;  %v7740_v18 = vld [vmem:[#allocation5 + $0x6f0] sm:$0xf0] }
  0xe4   :  { %2973 = vmatpush.bf16.msra.mxu2 %v6385_v29  ;;  %2942 = vmatmul.bf16.vlgmr.msrb.gmra.mxu3 %v8424_v4  ;;  %v7757_v29 = vld [vmem:[#allocation5 + $0x77c] sm:$0xf]  ;;  %v5797_v38 = vor.u32 %v7701_v27, %v5794_v28  ;;  %v5464_v27 = vld [vmem:[#allocation5 + $0x320] sm:$0xf]  ;;  %v5941_v28 = vor.u32 %v7740_v18, %v5940_v17  ;;  %v5828_v18 = vld [vmem:[#allocation5 + $0x5f8] sm:$0xf] }
  0xe5   :  { %2986 = vmatpush.bf16.msra.mxu3 %v6609_v33  ;;  %v6242_v33 = vld [vmem:[#allocation5 + $0x954] sm:$0xf0] }
  0xe6   :  { %2948 = vmatpush.bf16.msra.mxu0 %v5909_v42  ;;  %v2722_v30 = vpop.f32.mrf.mxu2  ;;  %v2698_v39 = vpop.f32.mrf.mxu0 }
  0xe7   :  { %2961 = vmatpush.bf16.msra.mxu1 %v6133_v43  ;;  %v8468_v34 = vadd.f32 %v2722_v30, %v2710_v23  ;;  %v2711_v42 = vpop.f32.mrf.mxu1  ;;  %v6021_v43 = vor.u32 %v7757_v29, %v6018_v31  ;;  %v2735_v14 = vpop.f32.mrf.mxu3  ;;  %v7621_v29 = vld [vmem:[#allocation5 + $0x338] sm:$0xf0]  ;;  %v5688_v30 = vld [vmem:[#allocation5 + $0x4e0] sm:$0xf]  ;;  %v5212_v39 = vld [vmem:[#allocation5 + $0x128] sm:$0xf] }
  0xe8   :  { %2974 = vmatpush.bf16.msra.mxu2 %v6357_v44  ;;  %v6245_v44 = vor.u32 %v7813_v32, %v6242_v33  ;;  %v5912_v31 = vld [vmem:[#allocation5 + $0x6a0] sm:$0xf]  ;;  %v7733_v32 = vld [vmem:[#allocation5 + $0x6b8] sm:$0xf0]  ;;  %v7558_v42 = vld [vmem:[#allocation5 + $0x140] sm:$0xf0] }
  0xe9   :  { %2987 = vmatpush.bf16.msra.mxu3 %v6581_v48  ;;  %v6469_v48 = vor.u32 %v7869_v35, %v6466_v36  ;;  %v581_v35 = vperm.slane %v8458_v13, 1  ;;  %v5465_v36 = vor.u32 %v7621_v29, %v5464_v27  ;;  %v5213_v51 = vor.u32 %v7558_v42, %v5212_v39  ;;  %v5352_v27 = vld [vmem:[#allocation5 + $0x240] sm:$0xf]  ;;  %v7593_v29 = vld [vmem:[#allocation5 + $0x258] sm:$0xf0] }
  0xea   :  { %2949 = vmatpush.bf16.msra.mxu0 %v5881_v54  ;;  %v5769_v54 = vor.u32 %v7694_v45, %v5766_v46  ;;  %v7614_v45 = vld [vmem:[#allocation5 + $0x300] sm:$0xf0]  ;;  %v5660_v46 = vld [vmem:[#allocation5 + $0x4a8] sm:$0xf] }
  0xeb   :  { %2962 = vmatpush.bf16.msra.mxu1 %v6105_v55  ;;  %v7687_v55 = vld [vmem:[#allocation5 + $0x54c] sm:$0xf]  ;;  %v2736_v52 = vadd.f32 %v2735_v14, %v581_v35  ;;  %v7600_v14 = vld [vmem:[#allocation5 + $0x290] sm:$0xf0] }
  0xec   :  { %2975 = vmatpush.bf16.msra.mxu2 %v6329_v56  ;;  %v5738_v56 = vld [vmem:[#allocation5 + $0x564] sm:$0xf0] }
  0xed   :  { %2988 = vmatpush.bf16.msra.mxu3 %v6553_v60  ;;  %v5962_v60 = vld [vmem:[#allocation5 + $0x724] sm:$0xf0] }
  0xee   :  { %2950 = vmatpush.bf16.msra.mxu0 %v5853_v2  ;;  %v2724_v62 = vpop.f32.mrf.mxu2  ;;  %v6410_v2 = vld [vmem:[#allocation5 + $0xaa4] sm:$0xf0] }
  0xef   :  { %2963 = vmatpush.bf16.msra.mxu1 %v6077_v8  ;;  %v5492_v8 = vld [vmem:[#allocation5 + $0x358] sm:$0xf]  ;;  %v6413_v19 = vor.u32 %v7855_v1, %v6410_v2  ;;  %v5856_v62 = vld [vmem:[#allocation5 + $0x630] sm:$0xf] }
  0xf0   :  { %2976 = vmatpush.bf16.msra.mxu2 %v6301_v9  ;;  %v5741_v9 = vor.u32 %v7687_v55, %v5738_v56  ;;  %v5493_v23 = vor.u32 %v7628_v10, %v5492_v8  ;;  %v5184_v55 = vld [vmem:[#allocation5 + $0xf0] sm:$0xf]  ;;  %v7551_v56 = vld [vmem:[#allocation5 + $0x108] sm:$0xf0]  ;;  %v7544_v10 = vld [vmem:[#allocation5 + $0xd0] sm:$0xf0] }
  0xf1   :  { %2989 = vmatpush.bf16.msra.mxu3 %v6525_v15  ;;  %v5965_v15 = vor.u32 %v7743_v59, %v5962_v60  ;;  %v7607_v59 = vld [vmem:[#allocation5 + $0x2c8] sm:$0xf0]  ;;  %v5632_v60 = vld [vmem:[#allocation5 + $0x470] sm:$0xf]  ;;  %v5185_v1 = vor.u32 %v7551_v56, %v5184_v55 }
  0xf2   :  { %2951 = vmatpush.bf16.msra.mxu0 %v5825_v24  ;;  %v5717_v24 = vor.u32 %v7684_v12, %v5716_v11  ;;  %v5633_v8 = vor.u32 %v7663_v61, %v5632_v60  ;;  %v5380_v11 = vld [vmem:[#allocation5 + $0x278] sm:$0xf]  ;;  %v5072_v56 = vld [vmem:[#allocation5 + $0x10] sm:$0xf]  ;;  %v7579_v61 = vld [vmem:[#allocation5 + $0x1e8] sm:$0xf0] }
  0xf3   :  { %2964 = vmatpush.bf16.msra.mxu1 %v6049_v25  ;;  %v5240_v25 = vld [vmem:[#allocation5 + $0x160] sm:$0xf]  ;;  %v5296_v60 = vld [vmem:[#allocation5 + $0x1d0] sm:$0xf] }
  0xf4   :  { %2977 = vmatpush.bf16.msra.mxu2 %v6273_v26  ;;  %v7565_v26 = vld [vmem:[#allocation5 + $0x178] sm:$0xf0] }
  0xf5   :  { %2990 = vmatpush.bf16.msra.mxu3 %v6497_v7  ;;  %v7677_v7 = vld [vmem:[#allocation5 + $0x4f8] sm:$0xf0]  ;;  %v5241_v33 = vor.u32 %v7565_v26, %v5240_v25  ;;  %v5128_v25 = vld [vmem:[#allocation5 + $0x80] sm:$0xf] }
  0xf6   :  { %2952 = vmatpush.bf16.msra.mxu0 %v5797_v38  ;;  %v5689_v38 = vor.u32 %v7677_v7, %v5688_v30  ;;  %v7537_v26 = vld [vmem:[#allocation5 + $0x98] sm:$0xf0]  ;;  %v5576_v30 = vld [vmem:[#allocation5 + $0x400] sm:$0xf] }
  0xf7   :  { %2965 = vmatpush.bf16.msra.mxu1 %v6021_v43  ;;  %v5436_v43 = vld [vmem:[#allocation5 + $0x2e8] sm:$0xf]  ;;  %v7649_v7 = vld [vmem:[#allocation5 + $0x418] sm:$0xf0]  ;;  %v5129_v39 = vor.u32 %v7537_v26, %v5128_v25  ;;  %v6136_v26 = vld [vmem:[#allocation5 + $0x860] sm:$0xf] }
  0xf8   :  { %2978 = vmatpush.bf16.msra.mxu2 %v6245_v44  ;;  %v5913_v44 = vor.u32 %v7733_v32, %v5912_v31  ;;  %v5437_v53 = vor.u32 %v7614_v45, %v5436_v43  ;;  %v5800_v32 = vld [vmem:[#allocation5 + $0x5c0] sm:$0xf]  ;;  %v5353_v43 = vor.u32 %v7593_v29, %v5352_v27  ;;  %v5100_v45 = vld [vmem:[#allocation5 + $0x48] sm:$0xf]  ;;  %v7789_v27 = vld [vmem:[#allocation5 + $0x878] sm:$0xf0] }
  0xf9   :  { %2991 = vmatpush.bf16.msra.mxu3 %v6469_v48  ;;  %v2737_v48 = vpop.f32.mrf.mxu3 }
  0xfa   :  { %2953 = vmatpush.bf16.msra.mxu0 %v5769_v54  ;;  %v5661_v54 = vor.u32 %v7670_v47, %v5660_v46  ;;  %v7530_v46 = vld [vmem:[#allocation5 + $0x60] sm:$0xf0]  ;;  %v5324_v47 = vld [vmem:[#allocation5 + $0x208] sm:$0xf] }
  0xfb   :  { %2966 = vmatpush.bf16.msra.mxu1 %v5993_v57  ;;  %v5408_v57 = vld [vmem:[#allocation5 + $0x2b0] sm:$0xf]  ;;  %v5101_v55 = vor.u32 %v7530_v46, %v5100_v45  ;;  %v7838_v45 = vld [vmem:[#allocation5 + $0xa00] sm:$0xf0]  ;;  %v6556_v46 = vld [vmem:[#allocation5 + $0xba8] sm:$0xf] }
  0xfc   :  { %2979 = vmatpush.bf16.msra.mxu2 %v6217_v58  ;;  %v5885_v58 = vor.u32 %v7726_v50, %v5884_v49  ;;  %v5409_v5 = vor.u32 %v7607_v59, %v5408_v57  ;;  %v7586_v50 = vld [vmem:[#allocation5 + $0x220] sm:$0xf0]  ;;  %v7523_v57 = vld [vmem:[#allocation5 + $0x28] sm:$0xf0] }
  0xfd   :  { %2992 = vmatpush.bf16.msra.mxu3 %v6441_v63  ;;  %v7719_v63 = vld [vmem:[#allocation5 + $0x648] sm:$0xf0] }
  0xfe   :  { %2954 = vmatpush.bf16.msra.mxu0 %v5741_v9  ;;  %v2748_v0 = vpop.f32.mrf.mxu0  ;;  %v5156_v9 = vld [vmem:[#allocation5 + $0xb8] sm:$0xf]  ;;  %v5857_v12 = vor.u32 %v7719_v63, %v5856_v62  ;;  %v5520_v62 = vld [vmem:[#allocation5 + $0x390] sm:$0xf] }
  0xff   :  { %2967 = vmatpush.bf16.msra.mxu1 %v5965_v15  ;;  %v2749_v2 = vadd.f32 %v2748_v0, %v2736_v52  ;;  %v2761_v3 = vpop.f32.mrf.mxu1  ;;  %v5604_v15 = vld [vmem:[#allocation5 + $0x438] sm:$0xf]  ;;  %v7642_v52 = vld [vmem:[#allocation5 + $0x3e0] sm:$0xf0]  ;;  %v7635_v0 = vld [vmem:[#allocation5 + $0x3a8] sm:$0xf0] }
 0x100   :  { %2980 = vmatpush.bf16.msra.mxu2 %v6189_v16  ;;  %v7656_v16 = vld [vmem:[#allocation5 + $0x450] sm:$0xf0] }
 0x101   :  { %2993 = vmatpush.bf16.msra.mxu3 %v6413_v19  ;;  %2955 = vmatmul.bf16.vlgmr.msra.gmra.mxu0 %v8426_v6  ;;  %v2762_v17 = vadd.f32 %v2761_v3, %v2749_v2  ;;  %v7712_v19 = vld [vmem:[#allocation5 + $0x610] sm:$0xf0]  ;;  %v7691_v2 = vld [vmem:[#allocation5 + $0x568] sm:$0xf0] }
 0x102   :  { %2999 = vmatpush.bf16.msrb.mxu0 %v5269_v22  ;;  %2968 = vmatmul.bf16.vlgmr.msra.gmra.mxu1 %v8438_v40  ;;  %v5157_v22 = vor.u32 %v7544_v10, %v5156_v9  ;;  %v6388_v9 = vld [vmem:[#allocation5 + $0xa58] sm:$0xf] }
 0x103   :  { %3012 = vmatpush.bf16.msrb.mxu1 %v5493_v23  ;;  %2981 = vmatmul.bf16.vlgmr.msra.gmra.mxu2 %v8440_v41  ;;  %v5381_v23 = vor.u32 %v7600_v14, %v5380_v11  ;;  %v5073_v11 = vor.u32 %v7523_v57, %v5072_v56  ;;  %v6612_v14 = vld [vmem:[#allocation5 + $0xc18] sm:$0xf]  ;;  %v6304_v56 = vld [vmem:[#allocation5 + $0x9b0] sm:$0xf] }
 0x104   :  { %3025 = vmatpush.bf16.msrb.mxu2 %v5717_v24  ;;  %2994 = vmatmul.bf16.vlgmr.msra.gmra.mxu3 %v8436_v37  ;;  %v5605_v24 = vor.u32 %v7656_v16, %v5604_v15  ;;  %v7908_v15 = vld [vmem:[#allocation5 + $0xc30] sm:$0xf0]  ;;  %v5297_v16 = vor.u32 %v7579_v61, %v5296_v60  ;;  %v7887_v60 = vld [vmem:[#allocation5 + $0xb88] sm:$0xf0] }
 0x105   :  { %3038 = vmatpush.bf16.msrb.mxu3 %v5941_v28  ;;  %v5829_v28 = vor.u32 %v7712_v19, %v5828_v18  ;;  %v7569_v18 = vld [vmem:[#allocation5 + $0x19c] sm:$0xf]  ;;  %v5270_v19 = vld [vmem:[#allocation5 + $0x1b4] sm:$0xf0]  ;;  %v6613_v25 = vor.u32 %v7908_v15, %v6612_v14  ;;  %v7548_v61 = vld [vmem:[#allocation5 + $0xf4] sm:$0xf] }
 0x106   :  { %3000 = vmatpush.bf16.msrb.mxu0 %v5241_v33  ;;  %v2774_v31 = vpop.f32.mrf.mxu2  ;;  %v7705_v33 = vld [vmem:[#allocation5 + $0x5d8] sm:$0xf0]  ;;  %v2750_v35 = vpop.f32.mrf.mxu0  ;;  %v5273_v29 = vor.u32 %v7569_v18, %v5270_v19  ;;  %v6500_v14 = vld [vmem:[#allocation5 + $0xb38] sm:$0xf]  ;;  %v7880_v15 = vld [vmem:[#allocation5 + $0xb50] sm:$0xf0] }
 0x107   :  { %3013 = vmatpush.bf16.msrb.mxu1 %v5465_v36  ;;  %v2775_v36 = vadd.f32 %v2774_v31, %v2762_v17  ;;  %v2763_v42 = vpop.f32.mrf.mxu1  ;;  %v5801_v49 = vor.u32 %v7705_v33, %v5800_v32  ;;  %v5521_v17 = vor.u32 %v7635_v0, %v5520_v62  ;;  %v7901_v31 = vld [vmem:[#allocation5 + $0xbf8] sm:$0xf0]  ;;  %v7562_v32 = vld [vmem:[#allocation5 + $0x164] sm:$0xf]  ;;  %v5242_v33 = vld [vmem:[#allocation5 + $0x17c] sm:$0xf0]  ;;  %v6137_v35 = vor.u32 %v7789_v27, %v6136_v26 }
 0x108   :  { %3026 = vmatpush.bf16.msrb.mxu2 %v5689_v38  ;;  %v2787_v38 = vpop.f32.mrf.mxu3  ;;  %v7782_v42 = vld [vmem:[#allocation5 + $0x840] sm:$0xf0]  ;;  %v5186_v62 = vld [vmem:[#allocation5 + $0x10c] sm:$0xf0]  ;;  %v5158_v18 = vld [vmem:[#allocation5 + $0xd4] sm:$0xf0] }
 0x109   :  { %3039 = vmatpush.bf16.msrb.mxu3 %v5913_v44  ;;  %v5577_v44 = vor.u32 %v7649_v7, %v5576_v30  ;;  %v8475_v48 = vadd.f32 %v2787_v38, %v2775_v36  ;;  %v7845_v30 = vld [vmem:[#allocation5 + $0xa38] sm:$0xf0]  ;;  %v6584_v7 = vld [vmem:[#allocation5 + $0xbe0] sm:$0xf] }
 0x10a   :  { %3001 = vmatpush.bf16.msrb.mxu0 %v5213_v51  ;;  %v5548_v51 = vld [vmem:[#allocation5 + $0x3c8] sm:$0xf]  ;;  %v6585_v38 = vor.u32 %v7901_v31, %v6584_v7  ;;  %v7817_v27 = vld [vmem:[#allocation5 + $0x958] sm:$0xf0]  ;;  %v5130_v7 = vld [vmem:[#allocation5 + $0x9c] sm:$0xf0] }
 0x10b   :  { %3014 = vmatpush.bf16.msrb.mxu1 %v5437_v53  ;;  %v5772_v53 = vld [vmem:[#allocation5 + $0x588] sm:$0xf]  ;;  %v5549_v59 = vor.u32 %v7642_v52, %v5548_v51 }
 0x10c   :  { %3027 = vmatpush.bf16.msrb.mxu2 %v5661_v54  ;;  %v7698_v54 = vld [vmem:[#allocation5 + $0x5a0] sm:$0xf0] }
 0x10d   :  { %3040 = vmatpush.bf16.msrb.mxu3 %v5885_v58  ;;  %v5325_v58 = vor.u32 %v7586_v50, %v5324_v47  ;;  %v5773_v63 = vor.u32 %v7698_v54, %v5772_v53  ;;  %v7894_v47 = vld [vmem:[#allocation5 + $0xbc0] sm:$0xf0]  ;;  %v5214_v50 = vld [vmem:[#allocation5 + $0x144] sm:$0xf0]  ;;  %v6080_v54 = vld [vmem:[#allocation5 + $0x7f0] sm:$0xf] }
 0x10e   :  { %3002 = vmatpush.bf16.msrb.mxu0 %v5185_v1  ;;  %v5744_v1 = vld [vmem:[#allocation5 + $0x550] sm:$0xf]  ;;  %v2776_v3 = vpop.f32.mrf.mxu2  ;;  %v6557_v53 = vor.u32 %v7894_v47, %v6556_v46  ;;  %v7866_v46 = vld [vmem:[#allocation5 + $0xae0] sm:$0xf0]  ;;  %v7527_v47 = vld [vmem:[#allocation5 + $0x4c] sm:$0xf] }
 0x10f   :  { %3015 = vmatpush.bf16.msrb.mxu1 %v5409_v5  ;;  %v6164_v5 = vld [vmem:[#allocation5 + $0x898] sm:$0xf] }
 0x110   :  { %3028 = vmatpush.bf16.msrb.mxu2 %v5633_v8  ;;  %v7796_v8 = vld [vmem:[#allocation5 + $0x8b0] sm:$0xf0]  ;;  %v2789_v10 = vpop.f32.mrf.mxu3 }
 0x111   :  { %3041 = vmatpush.bf16.msrb.mxu3 %v5857_v12  ;;  %v7852_v12 = vld [vmem:[#allocation5 + $0xa70] sm:$0xf0]  ;;  %v6276_v10 = vld [vmem:[#allocation5 + $0x978] sm:$0xf] }
 0x112   :  { %3003 = vmatpush.bf16.msrb.mxu0 %v5157_v22  ;;  %v5745_v22 = vor.u32 %v7691_v2, %v5744_v1 }
 0x113   :  { %3016 = vmatpush.bf16.msrb.mxu1 %v5381_v23  ;;  %v6165_v23 = vor.u32 %v7796_v8, %v6164_v5  ;;  %v6052_v8 = vld [vmem:[#allocation5 + $0x7b8] sm:$0xf] }
 0x114   :  { %3029 = vmatpush.bf16.msrb.mxu2 %v5605_v24  ;;  %v6389_v24 = vor.u32 %v7852_v12, %v6388_v9  ;;  %v7768_v9 = vld [vmem:[#allocation5 + $0x7d0] sm:$0xf0] }
 0x115   :  { %3042 = vmatpush.bf16.msrb.mxu3 %v5829_v28  ;;  %v6360_v28 = vld [vmem:[#allocation5 + $0xa20] sm:$0xf]  ;;  %v7824_v12 = vld [vmem:[#allocation5 + $0x990] sm:$0xf0]  ;;  %v6053_v19 = vor.u32 %v7768_v9, %v6052_v8  ;;  %v582_v8 = vperm.slane %v8458_v13, 2 }
 0x116   :  { %3004 = vmatpush.bf16.msrb.mxu0 %v5129_v39  ;;  %v6361_v36 = vor.u32 %v7845_v30, %v6360_v28  ;;  %v6108_v39 = vld [vmem:[#allocation5 + $0x828] sm:$0xf]  ;;  %v6472_v28 = vld [vmem:[#allocation5 + $0xb00] sm:$0xf]  ;;  %v7534_v30 = vld [vmem:[#allocation5 + $0x84] sm:$0xf] }
 0x117   :  { %3017 = vmatpush.bf16.msrb.mxu1 %v5353_v43  ;;  %v6332_v43 = vld [vmem:[#allocation5 + $0x9e8] sm:$0xf]  ;;  %v6109_v51 = vor.u32 %v7782_v42, %v6108_v39  ;;  %v7754_v39 = vld [vmem:[#allocation5 + $0x760] sm:$0xf0]  ;;  %v5690_v13 = vld [vmem:[#allocation5 + $0x4fc] sm:$0xf0] }
 0x118   :  { %3030 = vmatpush.bf16.msrb.mxu2 %v5577_v44  ;;  %v5245_v44 = vor.u32 %v7562_v32, %v5242_v33  ;;  %v6333_v52 = vor.u32 %v7838_v45, %v6332_v43  ;;  %v6220_v42 = vld [vmem:[#allocation5 + $0x908] sm:$0xf]  ;;  %v5133_v43 = vor.u32 %v7534_v30, %v5130_v7  ;;  %v7786_v30 = vld [vmem:[#allocation5 + $0x864] sm:$0xf]  ;;  %v6138_v7 = vld [vmem:[#allocation5 + $0x87c] sm:$0xf0] }
 0x119   :  { %3043 = vmatpush.bf16.msrb.mxu3 %v5801_v49  ;;  %v7555_v49 = vld [vmem:[#allocation5 + $0x12c] sm:$0xf]  ;;  %v6444_v45 = vld [vmem:[#allocation5 + $0xac8] sm:$0xf] }
 0x11a   :  { %3005 = vmatpush.bf16.msrb.mxu0 %v5101_v55  ;;  %v7775_v55 = vld [vmem:[#allocation5 + $0x808] sm:$0xf0]  ;;  %v5217_v57 = vor.u32 %v7555_v49, %v5214_v50  ;;  %v5102_v49 = vld [vmem:[#allocation5 + $0x64] sm:$0xf0] }
 0x11b   :  { %3018 = vmatpush.bf16.msrb.mxu1 %v5325_v58  ;;  %v7831_v58 = vld [vmem:[#allocation5 + $0x9c8] sm:$0xf0]  ;;  %v6081_v0 = vor.u32 %v7775_v55, %v6080_v54  ;;  %v6445_v55 = vor.u32 %v7866_v46, %v6444_v45 }
 0x11c   :  { %3031 = vmatpush.bf16.msrb.mxu2 %v5549_v59  ;;  %v6528_v59 = vld [vmem:[#allocation5 + $0xb70] sm:$0xf]  ;;  %v6305_v3 = vor.u32 %v7831_v58, %v6304_v56  ;;  %v7803_v56 = vld [vmem:[#allocation5 + $0x8e8] sm:$0xf0] }
 0x11d   :  { %3044 = vmatpush.bf16.msrb.mxu3 %v5773_v63  ;;  %v6529_v5 = vor.u32 %v7887_v60, %v6528_v59  ;;  %v7859_v58 = vld [vmem:[#allocation5 + $0xaa8] sm:$0xf0]  ;;  %v5105_v59 = vor.u32 %v7527_v47, %v5102_v49  ;;  %v7520_v60 = vld [vmem:[#allocation5 + $0x14] sm:$0xf]  ;;  %v6110_v49 = vld [vmem:[#allocation5 + $0x844] sm:$0xf0] }
 0x11e   :  { %3006 = vmatpush.bf16.msrb.mxu0 %v5073_v11  ;;  %v2800_v63 = vpop.f32.mrf.mxu0  ;;  %v5189_v11 = vor.u32 %v7548_v61, %v5186_v62  ;;  %v5074_v61 = vld [vmem:[#allocation5 + $0x2c] sm:$0xf0]  ;;  %v7625_v62 = vld [vmem:[#allocation5 + $0x35c] sm:$0xf]  ;;  %v7779_v47 = vld [vmem:[#allocation5 + $0x82c] sm:$0xf] }
 0x11f   :  { %3019 = vmatpush.bf16.msrb.mxu1 %v5297_v16  ;;  %v2801_v1 = vadd.f32 %v2800_v63, %v8475_v48  ;;  %v2813_v2 = vpop.f32.mrf.mxu1  ;;  %v6277_v48 = vor.u32 %v7824_v12, %v6276_v10  ;;  %v5494_v63 = vld [vmem:[#allocation5 + $0x374] sm:$0xf0] }
 0x120   :  { %3032 = vmatpush.bf16.msrb.mxu2 %v5521_v17  ;;  %v7541_v17 = vld [vmem:[#allocation5 + $0xbc] sm:$0xf] }
 0x121   :  { %3045 = vmatpush.bf16.msrb.mxu3 %v5745_v22  ;;  %3007 = vmatmul.bf16.vlgmr.msrb.gmra.mxu0 %v8429_v20  ;;  %v8482_v16 = vadd.f32 %v2813_v2, %v2801_v1  ;;  %v6501_v22 = vor.u32 %v7880_v15, %v6500_v14  ;;  %v5161_v26 = vor.u32 %v7541_v17, %v5158_v18  ;;  %v5718_v1 = vld [vmem:[#allocation5 + $0x534] sm:$0xf0]  ;;  %v7793_v14 = vld [vmem:[#allocation5 + $0x89c] sm:$0xf] }
 0x122   :  { %3051 = vmatpush.bf16.msra.mxu0 %v6165_v23  ;;  %3020 = vmatmul.bf16.vlgmr.msrb.gmra.mxu1 %v8431_v21  ;;  %v6024_v23 = vld [vmem:[#allocation5 + $0x780] sm:$0xf]  ;;  %v6166_v15 = vld [vmem:[#allocation5 + $0x8b4] sm:$0xf0]  ;;  %v5077_v17 = vor.u32 %v7520_v60, %v5074_v61  ;;  %v5497_v18 = vor.u32 %v7625_v62, %v5494_v63  ;;  %v7772_v60 = vld [vmem:[#allocation5 + $0x7f4] sm:$0xf] }
 0x123   :  { %3064 = vmatpush.bf16.msra.mxu1 %v6389_v24  ;;  %3033 = vmatmul.bf16.vlgmr.msrb.gmra.mxu2 %v8424_v4  ;;  %v7761_v24 = vld [vmem:[#allocation5 + $0x798] sm:$0xf0]  ;;  %v6082_v61 = vld [vmem:[#allocation5 + $0x80c] sm:$0xf0] }
 0x124   :  { %3077 = vmatpush.bf16.msra.mxu2 %v6613_v25  ;;  %3046 = vmatmul.bf16.vlgmr.msrb.gmra.mxu3 %v8426_v6  ;;  %v6248_v25 = vld [vmem:[#allocation5 + $0x940] sm:$0xf]  ;;  %v6025_v32 = vor.u32 %v7761_v24, %v6024_v23  ;;  %v7618_v23 = vld [vmem:[#allocation5 + $0x324] sm:$0xf] }
 0x125   :  { %3090 = vmatpush.bf16.msra.mxu3 %v5273_v29  ;;  %v7873_v29 = vld [vmem:[#allocation5 + $0xb18] sm:$0xf0]  ;;  %v5466_v24 = vld [vmem:[#allocation5 + $0x33c] sm:$0xf0] }
 0x126   :  { %3052 = vmatpush.bf16.msra.mxu0 %v6137_v35  ;;  %v2802_v31 = vpop.f32.mrf.mxu0  ;;  %v6249_v35 = vor.u32 %v7817_v27, %v6248_v25  ;;  %v2826_v9 = vpop.f32.mrf.mxu2  ;;  %v7674_v25 = vld [vmem:[#allocation5 + $0x4e4] sm:$0xf] }
 0x127   :  { %3065 = vmatpush.bf16.msra.mxu1 %v6361_v36  ;;  %v2815_v33 = vpop.f32.mrf.mxu1  ;;  %v6473_v36 = vor.u32 %v7873_v29, %v6472_v28  ;;  %v2839_v10 = vpop.f32.mrf.mxu3  ;;  %v7730_v27 = vld [vmem:[#allocation5 + $0x6a4] sm:$0xf]  ;;  %v5914_v28 = vld [vmem:[#allocation5 + $0x6bc] sm:$0xf0]  ;;  %v5469_v31 = vor.u32 %v7618_v23, %v5466_v24 }
 0x128   :  { %3078 = vmatpush.bf16.msra.mxu2 %v6585_v38  ;;  %v5996_v38 = vld [vmem:[#allocation5 + $0x748] sm:$0xf]  ;;  %v5917_v33 = vor.u32 %v7730_v27, %v5914_v28  ;;  %v7590_v23 = vld [vmem:[#allocation5 + $0x244] sm:$0xf]  ;;  %v5354_v24 = vld [vmem:[#allocation5 + $0x25c] sm:$0xf0] }
 0x129   :  { %3091 = vmatpush.bf16.msra.mxu3 %v5245_v44  ;;  %v7810_v44 = vld [vmem:[#allocation5 + $0x920] sm:$0xf0]  ;;  %v5997_v50 = vor.u32 %v7754_v39, %v5996_v38  ;;  %v7667_v38 = vld [vmem:[#allocation5 + $0x4ac] sm:$0xf]  ;;  %v6141_v39 = vor.u32 %v7786_v30, %v6138_v7  ;;  %v5802_v28 = vld [vmem:[#allocation5 + $0x5dc] sm:$0xf0] }
 0x12a   :  { %3053 = vmatpush.bf16.msra.mxu0 %v6109_v51  ;;  %v5968_v51 = vld [vmem:[#allocation5 + $0x710] sm:$0xf]  ;;  %v6221_v54 = vor.u32 %v7810_v44, %v6220_v42  ;;  %v5662_v42 = vld [vmem:[#allocation5 + $0x4c4] sm:$0xf0]  ;;  %v7702_v27 = vld [vmem:[#allocation5 + $0x5c4] sm:$0xf] }
 0x12b   :  { %3066 = vmatpush.bf16.msra.mxu1 %v6333_v52  ;;  %v7747_v52 = vld [vmem:[#allocation5 + $0x728] sm:$0xf0]  ;;  %v5886_v44 = vld [vmem:[#allocation5 + $0x684] sm:$0xf0]  ;;  %v7758_v30 = vld [vmem:[#allocation5 + $0x784] sm:$0xf] }
 0x12c   :  { %3079 = vmatpush.bf16.msra.mxu2 %v6557_v53  ;;  %v6192_v53 = vld [vmem:[#allocation5 + $0x8d0] sm:$0xf]  ;;  %v5969_v2 = vor.u32 %v7747_v52, %v5968_v51  ;;  %v5665_v51 = vor.u32 %v7667_v38, %v5662_v42  ;;  %v6026_v7 = vld [vmem:[#allocation5 + $0x79c] sm:$0xf0]  ;;  %v7583_v42 = vld [vmem:[#allocation5 + $0x20c] sm:$0xf] }
 0x12d   :  { %3092 = vmatpush.bf16.msra.mxu3 %v5217_v57  ;;  %v6416_v57 = vld [vmem:[#allocation5 + $0xa90] sm:$0xf] }
 0x12e   :  { %3054 = vmatpush.bf16.msra.mxu0 %v6081_v0  ;;  %v7681_v0 = vld [vmem:[#allocation5 + $0x51c] sm:$0xf]  ;;  %v6417_v12 = vor.u32 %v7859_v58, %v6416_v57  ;;  %v2828_v45 = vpop.f32.mrf.mxu2  ;;  %v5634_v57 = vld [vmem:[#allocation5 + $0x48c] sm:$0xf0]  ;;  %v7716_v58 = vld [vmem:[#allocation5 + $0x634] sm:$0xf] }
 0x12f   :  { %3067 = vmatpush.bf16.msra.mxu1 %v6305_v3  ;;  %v7737_v3 = vld [vmem:[#allocation5 + $0x6dc] sm:$0xf]  ;;  %v2841_v46 = vpop.f32.mrf.mxu3 }
 0x130   :  { %3080 = vmatpush.bf16.msra.mxu2 %v6529_v5  ;;  %v5942_v5 = vld [vmem:[#allocation5 + $0x6f4] sm:$0xf0]  ;;  %v6029_v46 = vor.u32 %v7758_v30, %v6026_v7  ;;  %v5472_v30 = vld [vmem:[#allocation5 + $0x328] sm:$0xf]  ;;  %v7622_v7 = vld [vmem:[#allocation5 + $0x340] sm:$0xf0] }
 0x131   :  { %3093 = vmatpush.bf16.msra.mxu3 %v5189_v11  ;;  %v6193_v11 = vor.u32 %v7803_v56, %v6192_v53  ;;  %v7604_v53 = vld [vmem:[#allocation5 + $0x2b4] sm:$0xf]  ;;  %v6113_v56 = vor.u32 %v7779_v47, %v6110_v49  ;;  %v5550_v47 = vld [vmem:[#allocation5 + $0x3e4] sm:$0xf0]  ;;  %v7695_v49 = vld [vmem:[#allocation5 + $0x58c] sm:$0xf] }
 0x132   :  { %3055 = vmatpush.bf16.msra.mxu0 %v6053_v19  ;;  %v2827_v19 = vadd.f32 %v2826_v9, %v582_v8  ;;  %v5382_v8 = vld [vmem:[#allocation5 + $0x294] sm:$0xf0]  ;;  %v7653_v9 = vld [vmem:[#allocation5 + $0x43c] sm:$0xf] }
 0x133   :  { %3068 = vmatpush.bf16.msra.mxu1 %v6277_v48  ;;  %v5721_v48 = vor.u32 %v7681_v0, %v5718_v1 }
 0x134   :  { %3081 = vmatpush.bf16.msra.mxu2 %v6501_v22  ;;  %v5945_v22 = vor.u32 %v7737_v3, %v5942_v5  ;;  %v2840_v29 = vadd.f32 %v2839_v10, %v2827_v19  ;;  %v7597_v5 = vld [vmem:[#allocation5 + $0x27c] sm:$0xf]  ;;  %v6085_v10 = vor.u32 %v7772_v60, %v6082_v61  ;;  %v7688_v60 = vld [vmem:[#allocation5 + $0x554] sm:$0xf] }
 0x135   :  { %3094 = vmatpush.bf16.msra.mxu3 %v5161_v26  ;;  %v6169_v26 = vor.u32 %v7793_v14, %v6166_v15  ;;  %v5830_v14 = vld [vmem:[#allocation5 + $0x614] sm:$0xf0]  ;;  %v5385_v19 = vor.u32 %v7597_v5, %v5382_v8  ;;  %v7905_v5 = vld [vmem:[#allocation5 + $0xc1c] sm:$0xf] }
 0x136   :  { %3056 = vmatpush.bf16.msra.mxu0 %v6025_v32  ;;  %v5693_v32 = vor.u32 %v7674_v25, %v5690_v13  ;;  %v7646_v25 = vld [vmem:[#allocation5 + $0x404] sm:$0xf]  ;;  %v5578_v13 = vld [vmem:[#allocation5 + $0x41c] sm:$0xf0] }
 0x137   :  { %3069 = vmatpush.bf16.msra.mxu1 %v6249_v35  ;;  %v7611_v35 = vld [vmem:[#allocation5 + $0x2ec] sm:$0xf]  ;;  %v5581_v38 = vor.u32 %v7646_v25, %v5578_v13  ;;  %v6362_v25 = vld [vmem:[#allocation5 + $0xa3c] sm:$0xf0] }
 0x138   :  { %3082 = vmatpush.bf16.msra.mxu2 %v6473_v36  ;;  %v5438_v36 = vld [vmem:[#allocation5 + $0x304] sm:$0xf0] }
 0x139   :  { %3095 = vmatpush.bf16.msra.mxu3 %v5133_v43  ;;  %v7723_v43 = vld [vmem:[#allocation5 + $0x66c] sm:$0xf] }
 0x13a   :  { %3057 = vmatpush.bf16.msra.mxu0 %v5997_v50  ;;  %v5441_v50 = vor.u32 %v7611_v35, %v5438_v36  ;;  %v5889_v52 = vor.u32 %v7723_v43, %v5886_v44  ;;  %v5357_v35 = vor.u32 %v7590_v23, %v5354_v24  ;;  %v5326_v43 = vld [vmem:[#allocation5 + $0x224] sm:$0xf0]  ;;  %v7639_v44 = vld [vmem:[#allocation5 + $0x3cc] sm:$0xf]  ;;  %v7842_v24 = vld [vmem:[#allocation5 + $0xa24] sm:$0xf] }
 0x13b   :  { %3070 = vmatpush.bf16.msra.mxu1 %v6221_v54  ;;  %v5410_v54 = vld [vmem:[#allocation5 + $0x2cc] sm:$0xf0] }
 0x13c   :  { %3083 = vmatpush.bf16.msra.mxu2 %v6445_v55  ;;  %v7660_v55 = vld [vmem:[#allocation5 + $0x474] sm:$0xf]  ;;  %v5413_v63 = vor.u32 %v7604_v53, %v5410_v54  ;;  %v5329_v53 = vor.u32 %v7583_v42, %v5326_v43  ;;  %v6558_v42 = vld [vmem:[#allocation5 + $0xbc4] sm:$0xf0]  ;;  %v5220_v43 = vld [vmem:[#allocation5 + $0x130] sm:$0xf] }
 0x13d   :  { %3096 = vmatpush.bf16.msra.mxu3 %v5105_v59  ;;  %v5858_v59 = vld [vmem:[#allocation5 + $0x64c] sm:$0xf0]  ;;  %v7576_v54 = vld [vmem:[#allocation5 + $0x1d4] sm:$0xf] }
 0x13e   :  { %3058 = vmatpush.bf16.msra.mxu0 %v5969_v2  ;;  %v2852_v62 = vpop.f32.mrf.mxu0  ;;  %v5637_v2 = vor.u32 %v7660_v55, %v5634_v57  ;;  %v5861_v3 = vor.u32 %v7716_v58, %v5858_v59  ;;  %v5298_v55 = vld [vmem:[#allocation5 + $0x1ec] sm:$0xf0]  ;;  %v7632_v58 = vld [vmem:[#allocation5 + $0x394] sm:$0xf] }
 0x13f   :  { %3071 = vmatpush.bf16.msra.mxu1 %v6193_v11  ;;  %v2853_v0 = vadd.f32 %v2852_v62, %v2840_v29  ;;  %v2865_v1 = vpop.f32.mrf.mxu1  ;;  %v5606_v11 = vld [vmem:[#allocation5 + $0x454] sm:$0xf0]  ;;  %v5522_v59 = vld [vmem:[#allocation5 + $0x3ac] sm:$0xf0] }
 0x140   :  { %3084 = vmatpush.bf16.msra.mxu2 %v6417_v12  ;;  %v7709_v12 = vld [vmem:[#allocation5 + $0x5fc] sm:$0xf]  ;;  %v5746_v62 = vld [vmem:[#allocation5 + $0x56c] sm:$0xf0] }
 0x141   :  { %3097 = vmatpush.bf16.msra.mxu3 %v5077_v17  ;;  %3059 = vmatmul.bf16.vlgmr.msra.gmra.mxu0 %v8438_v40  ;;  %v2866_v15 = vadd.f32 %v2865_v1, %v2853_v0  ;;  %v7765_v17 = vld [vmem:[#allocation5 + $0x7bc] sm:$0xf]  ;;  %v5970_v0 = vld [vmem:[#allocation5 + $0x72c] sm:$0xf0] }
 0x142   :  { %3103 = vmatpush.bf16.msrb.mxu0 %v5497_v18  ;;  %3072 = vmatmul.bf16.vlgmr.msra.gmra.mxu1 %v8440_v41  ;;  %v6054_v18 = vld [vmem:[#allocation5 + $0x7d4] sm:$0xf0] }
 0x143   :  { %3116 = vmatpush.bf16.msrb.mxu1 %v5721_v48  ;;  %3085 = vmatmul.bf16.vlgmr.msra.gmra.mxu2 %v8436_v37  ;;  %v5609_v48 = vor.u32 %v7653_v9, %v5606_v11  ;;  %v5301_v9 = vor.u32 %v7576_v54, %v5298_v55  ;;  %v5276_v11 = vld [vmem:[#allocation5 + $0x1a0] sm:$0xf]  ;;  %v7884_v54 = vld [vmem:[#allocation5 + $0xb74] sm:$0xf] }
 0x144   :  { %3129 = vmatpush.bf16.msrb.mxu2 %v5945_v22  ;;  %3098 = vmatmul.bf16.vlgmr.msra.gmra.mxu3 %v8429_v20  ;;  %v5833_v22 = vor.u32 %v7709_v12, %v5830_v14  ;;  %v7573_v12 = vld [vmem:[#allocation5 + $0x1b8] sm:$0xf0]  ;;  %v5525_v14 = vor.u32 %v7632_v58, %v5522_v59  ;;  %v7552_v58 = vld [vmem:[#allocation5 + $0x110] sm:$0xf0]  ;;  %v5416_v59 = vld [vmem:[#allocation5 + $0x2b8] sm:$0xf] }
 0x145   :  { %3142 = vmatpush.bf16.msrb.mxu3 %v6169_v26  ;;  %v6057_v26 = vor.u32 %v7765_v17, %v6054_v18  ;;  %v5500_v17 = vld [vmem:[#allocation5 + $0x360] sm:$0xf]  ;;  %v7629_v18 = vld [vmem:[#allocation5 + $0x378] sm:$0xf0]  ;;  %v5277_v23 = vor.u32 %v7573_v12, %v5276_v11 }
 0x146   :  { %3104 = vmatpush.bf16.msrb.mxu0 %v5469_v31  ;;  %v2878_v29 = vpop.f32.mrf.mxu2  ;;  %v2854_v31 = vpop.f32.mrf.mxu0  ;;  %v5501_v13 = vor.u32 %v7629_v18, %v5500_v17  ;;  %v7545_v11 = vld [vmem:[#allocation5 + $0xd8] sm:$0xf0]  ;;  %v5388_v12 = vld [vmem:[#allocation5 + $0x280] sm:$0xf]  ;;  %v7814_v18 = vld [vmem:[#allocation5 + $0x944] sm:$0xf] }
 0x147   :  { %3117 = vmatpush.bf16.msrb.mxu1 %v5693_v32  ;;  %v2879_v32 = vadd.f32 %v2878_v29, %v2866_v15  ;;  %v2867_v36 = vpop.f32.mrf.mxu1  ;;  %v5749_v15 = vor.u32 %v7688_v60, %v5746_v62  ;;  %v7566_v29 = vld [vmem:[#allocation5 + $0x180] sm:$0xf0]  ;;  %v6365_v31 = vor.u32 %v7842_v24, %v6362_v25  ;;  %v7608_v60 = vld [vmem:[#allocation5 + $0x2d0] sm:$0xf0]  ;;  %v5136_v24 = vld [vmem:[#allocation5 + $0x88] sm:$0xf] }
 0x148   :  { %3130 = vmatpush.bf16.msrb.mxu2 %v5917_v33  ;;  %v2891_v33 = vpop.f32.mrf.mxu3  ;;  %v6334_v36 = vld [vmem:[#allocation5 + $0xa04] sm:$0xf0]  ;;  %v7538_v25 = vld [vmem:[#allocation5 + $0xa0] sm:$0xf0] }
 0x149   :  { %3143 = vmatpush.bf16.msrb.mxu3 %v6141_v39  ;;  %v5805_v39 = vor.u32 %v7702_v27, %v5802_v28  ;;  %v8489_v45 = vadd.f32 %v2891_v33, %v2879_v32  ;;  %v6586_v27 = vld [vmem:[#allocation5 + $0xbfc] sm:$0xf0]  ;;  %v5248_v28 = vld [vmem:[#allocation5 + $0x168] sm:$0xf] }
 0x14a   :  { %3105 = vmatpush.bf16.msrb.mxu0 %v5441_v50  ;;  %v5774_v50 = vld [vmem:[#allocation5 + $0x5a4] sm:$0xf0]  ;;  %v5249_v33 = vor.u32 %v7566_v29, %v5248_v28 }
 0x14b   :  { %3118 = vmatpush.bf16.msrb.mxu1 %v5665_v51  ;;  %v7751_v51 = vld [vmem:[#allocation5 + $0x74c] sm:$0xf]  ;;  %v5777_v57 = vor.u32 %v7695_v49, %v5774_v50 }
 0x14c   :  { %3131 = vmatpush.bf16.msrb.mxu2 %v5889_v52  ;;  %v5998_v52 = vld [vmem:[#allocation5 + $0x764] sm:$0xf0] }
 0x14d   :  { %3144 = vmatpush.bf16.msrb.mxu3 %v6113_v56  ;;  %v5553_v56 = vor.u32 %v7639_v44, %v5550_v47  ;;  %v6001_v61 = vor.u32 %v7751_v51, %v5998_v52  ;;  %v7559_v44 = vld [vmem:[#allocation5 + $0x148] sm:$0xf0]  ;;  %v7828_v52 = vld [vmem:[#allocation5 + $0x9b4] sm:$0xf] }
 0x14e   :  { %3106 = vmatpush.bf16.msrb.mxu0 %v5413_v63  ;;  %v7744_v63 = vld [vmem:[#allocation5 + $0x714] sm:$0xf]  ;;  %v2880_v1 = vpop.f32.mrf.mxu2  ;;  %v7615_v47 = vld [vmem:[#allocation5 + $0x308] sm:$0xf0]  ;;  %v5221_v51 = vor.u32 %v7559_v44, %v5220_v43 }
 0x14f   :  { %3119 = vmatpush.bf16.msrb.mxu1 %v5637_v2  ;;  %v7849_v2 = vld [vmem:[#allocation5 + $0xa5c] sm:$0xf]  ;;  %v7800_v44 = vld [vmem:[#allocation5 + $0x8d4] sm:$0xf] }
 0x150   :  { %3132 = vmatpush.bf16.msrb.mxu2 %v5861_v3  ;;  %v6390_v3 = vld [vmem:[#allocation5 + $0xa74] sm:$0xf0]  ;;  %v2893_v8 = vpop.f32.mrf.mxu3 }
 0x151   :  { %3145 = vmatpush.bf16.msrb.mxu3 %v6085_v10  ;;  %v6614_v10 = vld [vmem:[#allocation5 + $0xc34] sm:$0xf0]  ;;  %v5417_v8 = vor.u32 %v7608_v60, %v5416_v59  ;;  %v7580_v59 = vld [vmem:[#allocation5 + $0x1f0] sm:$0xf0] }
 0x152   :  { %3107 = vmatpush.bf16.msrb.mxu0 %v5385_v19  ;;  %v5973_v19 = vor.u32 %v7744_v63, %v5970_v0 }
 0x153   :  { %3120 = vmatpush.bf16.msrb.mxu1 %v5609_v48  ;;  %v6393_v48 = vor.u32 %v7849_v2, %v6390_v3  ;;  %v7821_v2 = vld [vmem:[#allocation5 + $0x97c] sm:$0xf]  ;;  %v6278_v3 = vld [vmem:[#allocation5 + $0x994] sm:$0xf0] }
 0x154   :  { %3133 = vmatpush.bf16.msrb.mxu2 %v5833_v22  ;;  %v6617_v22 = vor.u32 %v7905_v5, %v6614_v10  ;;  %v7877_v5 = vld [vmem:[#allocation5 + $0xb3c] sm:$0xf]  ;;  %v5164_v10 = vld [vmem:[#allocation5 + $0xc0] sm:$0xf] }
 0x155   :  { %3146 = vmatpush.bf16.msrb.mxu3 %v6057_v26  ;;  %v7898_v26 = vld [vmem:[#allocation5 + $0xbe4] sm:$0xf]  ;;  %v5165_v17 = vor.u32 %v7545_v11, %v5164_v10 }
 0x156   :  { %3108 = vmatpush.bf16.msrb.mxu0 %v5357_v35  ;;  %v6589_v32 = vor.u32 %v7898_v26, %v6586_v27  ;;  %v7835_v35 = vld [vmem:[#allocation5 + $0x9ec] sm:$0xf]  ;;  %v5360_v26 = vld [vmem:[#allocation5 + $0x248] sm:$0xf] }
 0x157   :  { %3121 = vmatpush.bf16.msrb.mxu1 %v5581_v38  ;;  %v7891_v38 = vld [vmem:[#allocation5 + $0xbac] sm:$0xf]  ;;  %v6337_v49 = vor.u32 %v7835_v35, %v6334_v36  ;;  %v6446_v35 = vld [vmem:[#allocation5 + $0xae4] sm:$0xf0]  ;;  %v5108_v36 = vld [vmem:[#allocation5 + $0x50] sm:$0xf] }
 0x158   :  { %3134 = vmatpush.bf16.msrb.mxu2 %v5805_v39  ;;  %v5473_v39 = vor.u32 %v7622_v7, %v5472_v30  ;;  %v6561_v50 = vor.u32 %v7891_v38, %v6558_v42  ;;  %v5137_v30 = vor.u32 %v7538_v25, %v5136_v24  ;;  %v7807_v7 = vld [vmem:[#allocation5 + $0x90c] sm:$0xf] }
 0x159   :  { %3147 = vmatpush.bf16.msrb.mxu3 %v6029_v46  ;;  %v5444_v46 = vld [vmem:[#allocation5 + $0x2f0] sm:$0xf]  ;;  %v7531_v38 = vld [vmem:[#allocation5 + $0x68] sm:$0xf0] }
 0x15a   :  { %3109 = vmatpush.bf16.msrb.mxu0 %v5329_v53  ;;  %v6306_v53 = vld [vmem:[#allocation5 + $0x9cc] sm:$0xf0]  ;;  %v5445_v55 = vor.u32 %v7615_v47, %v5444_v46  ;;  %v7587_v42 = vld [vmem:[#allocation5 + $0x228] sm:$0xf0]  ;;  %v8498_v47 = vld [vmem:[#allocation7] sm:$0xff] }
 0x15b   :  { %3122 = vmatpush.bf16.msrb.mxu1 %v5553_v56  ;;  %v6530_v56 = vld [vmem:[#allocation5 + $0xb8c] sm:$0xf0]  ;;  %v6309_v62 = vor.u32 %v7828_v52, %v6306_v53  ;;  %v5109_v52 = vor.u32 %v7531_v38, %v5108_v36  ;;  %v7856_v53 = vld [vmem:[#allocation5 + $0xa94] sm:$0xf] }
 0x15c   :  { %3135 = vmatpush.bf16.msrb.mxu2 %v5777_v57  ;;  %v5192_v57 = vld [vmem:[#allocation5 + $0xf8] sm:$0xf]  ;;  %v6533_v0 = vor.u32 %v7884_v54, %v6530_v56  ;;  %v6194_v46 = vld [vmem:[#allocation5 + $0x8ec] sm:$0xf0] }
 0x15d   :  { %3148 = vmatpush.bf16.msrb.mxu3 %v6001_v61  ;;  %v5193_v1 = vor.u32 %v7552_v58, %v5192_v57  ;;  %v6418_v54 = vld [vmem:[#allocation5 + $0xaac] sm:$0xf0]  ;;  %v7524_v57 = vld [vmem:[#allocation5 + $0x30] sm:$0xf0]  ;;  %v5304_v58 = vld [vmem:[#allocation5 + $0x1d8] sm:$0xf] }
 0x15e   :  { %3110 = vmatpush.bf16.msrb.mxu0 %v5301_v9  ;;  %v2904_v61 = vpop.f32.mrf.mxu0  ;;  %v6502_v9 = vld [vmem:[#allocation5 + $0xb54] sm:$0xf0]  ;;  %v6421_v10 = vor.u32 %v7856_v53, %v6418_v54  ;;  %v5892_v36 = vld [vmem:[#allocation5 + $0x670] sm:$0xf] }
 0x15f   :  { %3123 = vmatpush.bf16.msrb.mxu1 %v5525_v14  ;;  %v8496_v63 = vadd.f32 %v2904_v61, %v8489_v45  ;;  %v7601_v14 = vld [vmem:[#allocation5 + $0x298] sm:$0xf0]  ;;  %v6505_v45 = vor.u32 %v7877_v5, %v6502_v9  ;;  %v5724_v61 = vld [vmem:[#allocation5 + $0x520] sm:$0xf]  ;;  %v5640_v54 = vld [vmem:[#allocation5 + $0x478] sm:$0xf] }
 0x160   :  { %3136 = vmatpush.bf16.msrb.mxu2 %v5749_v15  ;;  %v6281_v15 = vor.u32 %v7821_v2, %v6278_v3  ;;  %v7741_v2 = vld [vmem:[#allocation5 + $0x6f8] sm:$0xf0]  ;;  %v6172_v3 = vld [vmem:[#allocation5 + $0x8a0] sm:$0xf] }
 0x161   :  { %3149 = vmatpush.bf16.msrb.mxu3 %v5973_v19  ;;  %3111 = vmatmul.bf16.vlgmr.msrb.gmra.mxu0 %v8431_v21  ;;  %v6250_v19 = vld [vmem:[#allocation5 + $0x95c] sm:$0xf0]  ;;  %v7797_v5 = vld [vmem:[#allocation5 + $0x8b8] sm:$0xf0] }
 0x162   :  { %3155 = vmatpush.bf16.msra.mxu0 %v6393_v48  ;;  %3124 = vmatmul.bf16.vlgmr.msrb.gmra.mxu1 %v8424_v4  ;;  %v7870_v48 = vld [vmem:[#allocation5 + $0xb04] sm:$0xf]  ;;  %v6253_v28 = vor.u32 %v7814_v18, %v6250_v19  ;;  %v6173_v19 = vor.u32 %v7797_v5, %v6172_v3  ;;  %v5612_v5 = vld [vmem:[#allocation5 + $0x440] sm:$0xf] }
 0x163   :  { %3168 = vmatpush.bf16.msra.mxu1 %v6617_v22  ;;  %3137 = vmatmul.bf16.vlgmr.msrb.gmra.mxu2 %v8426_v6  ;;  %v5389_v22 = vor.u32 %v7601_v14, %v5388_v12  ;;  %v6396_v12 = vld [vmem:[#allocation5 + $0xa60] sm:$0xf]  ;;  %v7853_v14 = vld [vmem:[#allocation5 + $0xa78] sm:$0xf0] }
 0x164   :  { %3181 = vmatpush.bf16.msra.mxu2 %v5277_v23  ;;  %3150 = vmatmul.bf16.vlgmr.msrb.gmra.mxu3 %v8438_v40  ;;  %v6474_v23 = vld [vmem:[#allocation5 + $0xb1c] sm:$0xf0]  ;;  %v6397_v25 = vor.u32 %v7853_v14, %v6396_v12  ;;  %v7769_v14 = vld [vmem:[#allocation5 + $0x7d8] sm:$0xf0] }
 0x165   :  { %3194 = vmatpush.bf16.msra.mxu3 %v5501_v13  ;;  %v7594_v13 = vld [vmem:[#allocation5 + $0x260] sm:$0xf0]  ;;  %v6477_v29 = vor.u32 %v7870_v48, %v6474_v23  ;;  %v5696_v48 = vld [vmem:[#allocation5 + $0x4e8] sm:$0xf]  ;;  %v6060_v12 = vld [vmem:[#allocation5 + $0x7c0] sm:$0xf] }
 0x166   :  { %3156 = vmatpush.bf16.msra.mxu0 %v6365_v31  ;;  %v2906_v27 = vpop.f32.mrf.mxu0  ;;  %v6222_v31 = vld [vmem:[#allocation5 + $0x924] sm:$0xf0] }
 0x167   :  { %3169 = vmatpush.bf16.msra.mxu1 %v6589_v32  ;;  %v7863_v32 = vld [vmem:[#allocation5 + $0xacc] sm:$0xf]  ;;  %v6225_v43 = vor.u32 %v7807_v7, %v6222_v31  ;;  %v2943_v9 = vpop.f32.mrf.mxu3  ;;  %v5920_v23 = vld [vmem:[#allocation5 + $0x6a8] sm:$0xf]  ;;  %v7790_v27 = vld [vmem:[#allocation5 + $0x880] sm:$0xf0] }
 0x168   :  { %3182 = vmatpush.bf16.msra.mxu2 %v5249_v33  ;;  %v5361_v33 = vor.u32 %v7594_v13, %v5360_v26  ;;  %v7734_v26 = vld [vmem:[#allocation5 + $0x6c0] sm:$0xf0]  ;;  %v6144_v13 = vld [vmem:[#allocation5 + $0x868] sm:$0xf] }
 0x169   :  { %3195 = vmatpush.bf16.msra.mxu3 %v5473_v39  ;;  %v5332_v39 = vld [vmem:[#allocation5 + $0x210] sm:$0xf]  ;;  %v5921_v31 = vor.u32 %v7734_v26, %v5920_v23  ;;  %v7650_v23 = vld [vmem:[#allocation5 + $0x420] sm:$0xf0] }
 0x16a   :  { %3157 = vmatpush.bf16.msra.mxu0 %v6337_v49  ;;  %v583_v49 = vperm.slane %v8498_v47, 3  ;;  %v5333_v56 = vor.u32 %v7587_v42, %v5332_v39  ;;  %v7727_v39 = vld [vmem:[#allocation5 + $0x688] sm:$0xf0]  ;;  %v6116_v42 = vld [vmem:[#allocation5 + $0x830] sm:$0xf] }
 0x16b   :  { %3170 = vmatpush.bf16.msra.mxu1 %v6561_v50  ;;  %v2917_v50 = vpop.f32.mrf.mxu1  ;;  %v7706_v26 = vld [vmem:[#allocation5 + $0x5e0] sm:$0xf0] }
 0x16c   :  { %3183 = vmatpush.bf16.msra.mxu2 %v5221_v51  ;;  %v6449_v51 = vor.u32 %v7863_v32, %v6446_v35  ;;  %v2918_v60 = vadd.f32 %v2917_v50, %v583_v49  ;;  %v6145_v32 = vor.u32 %v7790_v27, %v6144_v13  ;;  %v7671_v35 = vld [vmem:[#allocation5 + $0x4c8] sm:$0xf0]  ;;  %v6340_v49 = vld [vmem:[#allocation5 + $0x9f0] sm:$0xf]  ;;  %v6032_v13 = vld [vmem:[#allocation5 + $0x788] sm:$0xf] }
 0x16d   :  { %3196 = vmatpush.bf16.msra.mxu3 %v5445_v55  ;;  %v5080_v55 = vld [vmem:[#allocation5 + $0x18] sm:$0xf]  ;;  %v7839_v50 = vld [vmem:[#allocation5 + $0xa08] sm:$0xf0]  ;;  %v7762_v27 = vld [vmem:[#allocation5 + $0x7a0] sm:$0xf0] }
 0x16e   :  { %3158 = vmatpush.bf16.msra.mxu0 %v6309_v62  ;;  %v7685_v62 = vld [vmem:[#allocation5 + $0x538] sm:$0xf0]  ;;  %v5081_v11 = vor.u32 %v7524_v57, %v5080_v55  ;;  %v7664_v55 = vld [vmem:[#allocation5 + $0x490] sm:$0xf0]  ;;  %v6341_v57 = vor.u32 %v7839_v50, %v6340_v49  ;;  %v7699_v49 = vld [vmem:[#allocation5 + $0x5a8] sm:$0xf0] }
 0x16f   :  { %3171 = vmatpush.bf16.msra.mxu1 %v6533_v0  ;;  %v5948_v0 = vld [vmem:[#allocation5 + $0x6e0] sm:$0xf]  ;;  %v6004_v50 = vld [vmem:[#allocation5 + $0x750] sm:$0xf] }
 0x170   :  { %3184 = vmatpush.bf16.msra.mxu2 %v5193_v1  ;;  %v6197_v1 = vor.u32 %v7800_v44, %v6194_v46  ;;  %v5949_v18 = vor.u32 %v7741_v2, %v5948_v0  ;;  %v2945_v46 = vpop.f32.mrf.mxu3 }
 0x171   :  { %3197 = vmatpush.bf16.msra.mxu3 %v5417_v8  ;;  %v2930_v8 = vpop.f32.mrf.mxu2 }
 0x172   :  { %3159 = vmatpush.bf16.msra.mxu0 %v6281_v15  ;;  %v2931_v15 = vadd.f32 %v2930_v8, %v2918_v60  ;;  %v7776_v60 = vld [vmem:[#allocation5 + $0x810] sm:$0xf0]  ;;  %v7657_v8 = vld [vmem:[#allocation5 + $0x458] sm:$0xf0] }
 0x173   :  { %3172 = vmatpush.bf16.msra.mxu1 %v6505_v45  ;;  %v5305_v45 = vor.u32 %v7580_v59, %v5304_v58  ;;  %v7720_v58 = vld [vmem:[#allocation5 + $0x650] sm:$0xf0]  ;;  %v6088_v59 = vld [vmem:[#allocation5 + $0x7f8] sm:$0xf] }
 0x174   :  { %3185 = vmatpush.bf16.msra.mxu2 %v5165_v17  ;;  %v5725_v17 = vor.u32 %v7685_v62, %v5724_v61  ;;  %v2944_v24 = vadd.f32 %v2943_v9, %v2931_v15  ;;  %v6312_v61 = vld [vmem:[#allocation5 + $0x9b8] sm:$0xf]  ;;  %v7832_v62 = vld [vmem:[#allocation5 + $0x9d0] sm:$0xf0]  ;;  %v6089_v3 = vor.u32 %v7776_v60, %v6088_v59  ;;  %v5836_v9 = vld [vmem:[#allocation5 + $0x600] sm:$0xf] }
 0x175   :  { %3198 = vmatpush.bf16.msra.mxu3 %v5389_v22  ;;  %v7678_v22 = vld [vmem:[#allocation5 + $0x500] sm:$0xf0]  ;;  %v5752_v59 = vld [vmem:[#allocation5 + $0x558] sm:$0xf]  ;;  %v7692_v60 = vld [vmem:[#allocation5 + $0x570] sm:$0xf0] }
 0x176   :  { %3160 = vmatpush.bf16.msra.mxu0 %v6253_v28  ;;  %v2919_v28 = vpop.f32.mrf.mxu1  ;;  %v5697_v7 = vor.u32 %v7678_v22, %v5696_v48  ;;  %v6061_v48 = vor.u32 %v7769_v14, %v6060_v12  ;;  %v5584_v22 = vld [vmem:[#allocation5 + $0x408] sm:$0xf]  ;;  %v7972_v12 = vld [vmem:[#allocation8 + $0x1ec] sm:$0xf0]  ;;  %v5753_v14 = vor.u32 %v7692_v60, %v5752_v59 }
 0x177   :  { %3173 = vmatpush.bf16.msra.mxu1 %v6477_v29  ;;  %v6368_v29 = vld [vmem:[#allocation5 + $0xa28] sm:$0xf] }
 0x178   :  { %3186 = vmatpush.bf16.msra.mxu2 %v5137_v30  ;;  %v7846_v30 = vld [vmem:[#allocation5 + $0xa40] sm:$0xf0]  ;;  %v6944_v59 = vld [vmem:[#allocation8 + $0x280] sm:$0xf] }
 0x179   :  { %3199 = vmatpush.bf16.msra.mxu3 %v5361_v33  ;;  %v5668_v33 = vld [vmem:[#allocation5 + $0x4b0] sm:$0xf]  ;;  %v6369_v38 = vor.u32 %v7846_v30, %v6368_v29  ;;  %v2932_v44 = vpop.f32.mrf.mxu2  ;;  %v6256_v29 = vld [vmem:[#allocation5 + $0x948] sm:$0xf]  ;;  %v7818_v30 = vld [vmem:[#allocation5 + $0x960] sm:$0xf0] }
 0x17a   :  { %3161 = vmatpush.bf16.msra.mxu0 %v6225_v43  ;;  %v7783_v43 = vld [vmem:[#allocation5 + $0x848] sm:$0xf0]  ;;  %v6257_v46 = vor.u32 %v7818_v30, %v6256_v29  ;;  %v6976_v29 = vld [vmem:[#allocation8 + $0x2c0] sm:$0xf]  ;;  %v8000_v30 = vld [vmem:[#allocation8 + $0x2cc] sm:$0xf0] }
 0x17b   :  { %3174 = vmatpush.bf16.msra.mxu1 %v6449_v51  ;;  %v5669_v51 = vor.u32 %v7671_v35, %v5668_v33  ;;  %v6117_v53 = vor.u32 %v7783_v43, %v6116_v42  ;;  %v5585_v33 = vor.u32 %v7650_v23, %v5584_v22  ;;  %v7643_v42 = vld [vmem:[#allocation5 + $0x3e8] sm:$0xf0]  ;;  %v5780_v43 = vld [vmem:[#allocation5 + $0x590] sm:$0xf]  ;;  %v6592_v23 = vld [vmem:[#allocation5 + $0xbe8] sm:$0xf] }
 0x17c   :  { %3187 = vmatpush.bf16.msra.mxu2 %v5109_v52  ;;  %v5893_v52 = vor.u32 %v7727_v39, %v5892_v36  ;;  %v5556_v39 = vld [vmem:[#allocation5 + $0x3d0] sm:$0xf] }
 0x17d   :  { %3200 = vmatpush.bf16.msra.mxu3 %v5333_v56  ;;  %v5864_v56 = vld [vmem:[#allocation5 + $0x638] sm:$0xf] }
 0x17e   :  { %3162 = vmatpush.bf16.msra.mxu0 %v6197_v1  ;;  %v2956_v0 = vpop.f32.mrf.mxu0 }
 0x17f   :  { %3175 = vmatpush.bf16.msra.mxu1 %v6421_v10  ;;  %v2957_v1 = vadd.f32 %v2956_v0, %v2944_v24  ;;  %v2969_v2 = vpop.f32.mrf.mxu1  ;;  %v6313_v10 = vor.u32 %v7832_v62, %v6312_v61  ;;  %v5808_v24 = vld [vmem:[#allocation5 + $0x5c8] sm:$0xf]  ;;  %v5976_v61 = vld [vmem:[#allocation5 + $0x718] sm:$0xf]  ;;  %v7748_v0 = vld [vmem:[#allocation5 + $0x730] sm:$0xf0] }
 0x180   :  { %3188 = vmatpush.bf16.msra.mxu2 %v5081_v11  ;;  %v7713_v11 = vld [vmem:[#allocation5 + $0x618] sm:$0xf0]  ;;  %v5809_v36 = vor.u32 %v7706_v26, %v5808_v24  ;;  %v7902_v24 = vld [vmem:[#allocation5 + $0xc00] sm:$0xf0] }
 0x181   :  { %3201 = vmatpush.bf16.msra.mxu3 %v5305_v45  ;;  %3163 = vmatmul.bf16.vlgmr.msra.gmra.mxu0 %v8440_v41  ;;  %v2970_v15 = vadd.f32 %v2969_v2, %v2957_v1  ;;  %v6284_v45 = vld [vmem:[#allocation5 + $0x980] sm:$0xf]  ;;  %v7804_v1 = vld [vmem:[#allocation5 + $0x8f0] sm:$0xf0] }
 0x182   :  { %3207 = vmatpush.bf16.msrb.mxu0 %v5725_v17  ;;  %3176 = vmatmul.bf16.vlgmr.msra.gmra.mxu1 %v8436_v37  ;;  %v7825_v17 = vld [vmem:[#allocation5 + $0x998] sm:$0xf0] }
 0x183   :  { %3220 = vmatpush.bf16.msrb.mxu1 %v5949_v18  ;;  %3189 = vmatmul.bf16.vlgmr.msra.gmra.mxu2 %v8429_v20  ;;  %v5641_v20 = vor.u32 %v7664_v55, %v5640_v54  ;;  %v5613_v18 = vor.u32 %v7657_v8, %v5612_v5  ;;  %v5557_v54 = vor.u32 %v7643_v42, %v5556_v39  ;;  %v5528_v55 = vld [vmem:[#allocation5 + $0x398] sm:$0xf]  ;;  %v6736_v5 = vld [vmem:[#allocation8 + $0xe0] sm:$0xf] }
 0x184   :  { %3233 = vmatpush.bf16.msrb.mxu2 %v6173_v19  ;;  %3202 = vmatmul.bf16.vlgmr.msra.gmra.mxu3 %v8431_v21  ;;  %v5865_v21 = vor.u32 %v7720_v58, %v5864_v56  ;;  %v5837_v19 = vor.u32 %v7713_v11, %v5836_v9  ;;  %v7636_v56 = vld [vmem:[#allocation5 + $0x3b0] sm:$0xf0]  ;;  %v6864_v11 = vld [vmem:[#allocation8 + $0x1e0] sm:$0xf]  ;;  %v7932_v39 = vld [vmem:[#allocation8 + $0xac] sm:$0xf0] }
 0x185   :  { %3246 = vmatpush.bf16.msrb.mxu3 %v6397_v25  ;;  %v6285_v25 = vor.u32 %v7825_v17, %v6284_v45  ;;  %v5529_v9 = vor.u32 %v7636_v56, %v5528_v55  ;;  %v6992_v45 = vld [vmem:[#allocation8 + $0x2e0] sm:$0xf]  ;;  %v8004_v17 = vld [vmem:[#allocation8 + $0x2ec] sm:$0xf0]  ;;  %v6865_v22 = vor.u32 %v7972_v12, %v6864_v11 }
 0x186   :  { %3208 = vmatpush.bf16.msrb.mxu0 %v5697_v7  ;;  %v2982_v28 = vpop.f32.mrf.mxu2  ;;  %v2958_v7 = vpop.f32.mrf.mxu0  ;;  %v6993_v26 = vor.u32 %v8004_v17, %v6992_v45  ;;  %v6832_v42 = vld [vmem:[#allocation8 + $0x1a0] sm:$0xf]  ;;  %v7928_v56 = vld [vmem:[#allocation8 + $0x8c] sm:$0xf0] }
 0x187   :  { %3221 = vmatpush.bf16.msrb.mxu1 %v5921_v31  ;;  %v2983_v31 = vadd.f32 %v2982_v28, %v2970_v15  ;;  %v2971_v35 = vpop.f32.mrf.mxu1  ;;  %v5977_v15 = vor.u32 %v7748_v0, %v5976_v61  ;;  %v7968_v28 = vld [vmem:[#allocation8 + $0x1cc] sm:$0xf0]  ;;  %v6593_v7 = vor.u32 %v7902_v24, %v6592_v23  ;;  %v6508_v0 = vld [vmem:[#allocation5 + $0xb40] sm:$0xf]  ;;  %v6656_v45 = vld [vmem:[#allocation8 + $0x40] sm:$0xf] }
 0x188   :  { %3234 = vmatpush.bf16.msrb.mxu2 %v6145_v32  ;;  %v2995_v32 = vpop.f32.mrf.mxu3  ;;  %v7895_v35 = vld [vmem:[#allocation5 + $0xbc8] sm:$0xf0]  ;;  %v6912_v23 = vld [vmem:[#allocation8 + $0x240] sm:$0xf]  ;;  %v7984_v24 = vld [vmem:[#allocation8 + $0x24c] sm:$0xf0] }
 0x189   :  { %3247 = vmatpush.bf16.msrb.mxu3 %v6369_v38  ;;  %v6033_v38 = vor.u32 %v7762_v27, %v6032_v13  ;;  %v8505_v44 = vadd.f32 %v2995_v32, %v2983_v31  ;;  %v7936_v13 = vld [vmem:[#allocation8 + $0xcc] sm:$0xf0]  ;;  %v6848_v27 = vld [vmem:[#allocation8 + $0x1c0] sm:$0xf] }
 0x18a   :  { %3209 = vmatpush.bf16.msrb.mxu0 %v5669_v51  ;;  %v7755_v51 = vld [vmem:[#allocation5 + $0x768] sm:$0xf0]  ;;  %v6849_v32 = vor.u32 %v7968_v28, %v6848_v27 }
 0x18b   :  { %3222 = vmatpush.bf16.msrb.mxu1 %v5893_v52  ;;  %v6228_v52 = vld [vmem:[#allocation5 + $0x910] sm:$0xf]  ;;  %v6005_v58 = vor.u32 %v7755_v51, %v6004_v50 }
 0x18c   :  { %3235 = vmatpush.bf16.msrb.mxu2 %v6117_v53  ;;  %v7811_v53 = vld [vmem:[#allocation5 + $0x928] sm:$0xf0] }
 0x18d   :  { %3248 = vmatpush.bf16.msrb.mxu3 %v6341_v57  ;;  %v5781_v57 = vor.u32 %v7699_v49, %v5780_v43  ;;  %v6229_v62 = vor.u32 %v7811_v53, %v6228_v52  ;;  %v7964_v43 = vld [vmem:[#allocation8 + $0x1ac] sm:$0xf0] }
 0x18e   :  { %3210 = vmatpush.bf16.msrb.mxu0 %v5641_v20  ;;  %v6200_v20 = vld [vmem:[#allocation5 + $0x8d8] sm:$0xf]  ;;  %v2984_v2 = vpop.f32.mrf.mxu2  ;;  %v6833_v52 = vor.u32 %v7964_v43, %v6832_v42 }
 0x18f   :  { %3223 = vmatpush.bf16.msrb.mxu1 %v5865_v21  ;;  %v6620_v21 = vld [vmem:[#allocation5 + $0xc20] sm:$0xf]  ;;  %v7996_v49 = vld [vmem:[#allocation8 + $0x2ac] sm:$0xf0] }
 0x190   :  { %3236 = vmatpush.bf16.msrb.mxu2 %v6089_v3  ;;  %v7909_v3 = vld [vmem:[#allocation5 + $0xc38] sm:$0xf0]  ;;  %v2997_v8 = vpop.f32.mrf.mxu3  ;;  %v6536_v53 = vld [vmem:[#allocation5 + $0xb78] sm:$0xf] }
 0x191   :  { %3249 = vmatpush.bf16.msrb.mxu3 %v6313_v10  ;;  %v7940_v10 = vld [vmem:[#allocation8 + $0xec] sm:$0xf0]  ;;  %v6928_v8 = vld [vmem:[#allocation8 + $0x260] sm:$0xf] }
 0x192   :  { %3211 = vmatpush.bf16.msrb.mxu0 %v5613_v18  ;;  %v6201_v18 = vor.u32 %v7804_v1, %v6200_v20  ;;  %v7881_v20 = vld [vmem:[#allocation5 + $0xb58] sm:$0xf0]  ;;  %v6672_v1 = vld [vmem:[#allocation8 + $0x60] sm:$0xf]  ;;  %v6424_v43 = vld [vmem:[#allocation5 + $0xa98] sm:$0xf] }
 0x193   :  { %3224 = vmatpush.bf16.msrb.mxu1 %v5837_v19  ;;  %v6621_v19 = vor.u32 %v7909_v3, %v6620_v21  ;;  %v7924_v21 = vld [vmem:[#allocation8 + $0x6c] sm:$0xf0]  ;;  %v6800_v3 = vld [vmem:[#allocation8 + $0x160] sm:$0xf] }
 0x194   :  { %3237 = vmatpush.bf16.msrb.mxu2 %v6061_v48  ;;  %v6737_v48 = vor.u32 %v7940_v10, %v6736_v5  ;;  %v7956_v5 = vld [vmem:[#allocation8 + $0x16c] sm:$0xf0]  ;;  %v6509_v10 = vor.u32 %v7881_v20, %v6508_v0  ;;  %v6673_v11 = vor.u32 %v7924_v21, %v6672_v1  ;;  %v584_v0 = vperm.slane %v8498_v47, 4 }
 0x195   :  { %3250 = vmatpush.bf16.msrb.mxu3 %v6285_v25  ;;  %v6720_v25 = vld [vmem:[#allocation8 + $0xc0] sm:$0xf]  ;;  %v6801_v12 = vor.u32 %v7956_v5, %v6800_v3  ;;  %v3273_v21 = vmax.f32 %v8482_v16, 0.0 }
 0x196   :  { %3212 = vmatpush.bf16.msrb.mxu0 %v5585_v33  ;;  %v6721_v31 = vor.u32 %v7936_v13, %v6720_v25  ;;  %v6564_v33 = vld [vmem:[#allocation5 + $0xbb0] sm:$0xf] }
 0x197   :  { %3225 = vmatpush.bf16.msrb.mxu1 %v5809_v36  ;;  %v6704_v36 = vld [vmem:[#allocation8 + $0xa0] sm:$0xf]  ;;  %v6565_v50 = vor.u32 %v7895_v35, %v6564_v33  ;;  %v7916_v33 = vld [vmem:[#allocation8 + $0x2c] sm:$0xf0]  ;;  %v8526_v16 = vpack.c.bf16 %v3273_v21, %v3273_v21 }
 0x198   :  { %3238 = vmatpush.bf16.msrb.mxu2 %v6033_v38  ;;  %v6977_v38 = vor.u32 %v8000_v30, %v6976_v29  ;;  %v6705_v51 = vor.u32 %v7932_v39, %v6704_v36  ;;  %v6452_v30 = vld [vmem:[#allocation5 + $0xad0] sm:$0xf]  ;;  %v6768_v35 = vld [vmem:[#allocation8 + $0x120] sm:$0xf]  ;;  %v7948_v36 = vld [vmem:[#allocation8 + $0x12c] sm:$0xf0] }
 0x199   :  { %3251 = vmatpush.bf16.msrb.mxu3 %v6257_v46  ;;  %v6960_v46 = vld [vmem:[#allocation8 + $0x2a0] sm:$0xf]  ;;  %v7980_v39 = vld [vmem:[#allocation8 + $0x22c] sm:$0xf0] }
 0x19a   :  { %3213 = vmatpush.bf16.msrb.mxu0 %v5557_v54  ;;  %v7888_v54 = vld [vmem:[#allocation5 + $0xb90] sm:$0xf0]  ;;  %v6961_v55 = vor.u32 %v7996_v49, %v6960_v46  ;;  %v6769_v49 = vor.u32 %v7948_v36, %v6768_v35  ;;  %v7200_v36 = vld [vmem:[#allocation8 + $0x480] sm:$0xf]  ;;  %v8080_v21 = vld [vmem:[#allocation8 + $0x54c] sm:$0xf0] }
 0x19b   :  { %3226 = vmatpush.bf16.msrb.mxu1 %v5781_v57  ;;  %v6816_v57 = vld [vmem:[#allocation8 + $0x180] sm:$0xf] }
 0x19c   :  { %3239 = vmatpush.bf16.msrb.mxu2 %v6005_v58  ;;  %v7960_v58 = vld [vmem:[#allocation8 + $0x18c] sm:$0xf0] }
 0x19d   :  { %3252 = vmatpush.bf16.msrb.mxu3 %v6229_v62  ;;  %v6817_v62 = vor.u32 %v7960_v58, %v6816_v57  ;;  %v7976_v57 = vld [vmem:[#allocation8 + $0x20c] sm:$0xf0]  ;;  %v7120_v58 = vld [vmem:[#allocation8 + $0x3e0] sm:$0xf] }
 0x19e   :  { %3214 = vmatpush.bf16.msrb.mxu0 %v5529_v9  ;;  %v8511_v60 = vpop.f32.mrf.mxu0  ;;  %v7988_v9 = vld [vmem:[#allocation8 + $0x26c] sm:$0xf0] }
 0x19f   :  { %3227 = vmatpush.bf16.msrb.mxu1 %v5753_v14  ;;  %v8513_v61 = vpop.f32.mrf.mxu1  ;;  %v6480_v14 = vld [vmem:[#allocation5 + $0xb08] sm:$0xf] }
 0x1a0   :  { %3240 = vmatpush.bf16.msrb.mxu2 %v5977_v15  ;;  %v7874_v15 = vld [vmem:[#allocation5 + $0xb20] sm:$0xf0] }
 0x1a1   :  { %3253 = vmatpush.bf16.msrb.mxu3 %v6201_v18  ;;  %3215 = vmatmul.bf16.vlgmr.msrb.gmra.mxu0 %v8424_v4  ;;  %v6688_v4 = vld [vmem:[#allocation8 + $0x80] sm:$0xf]  ;;  %v6929_v18 = vor.u32 %v7988_v9, %v6928_v8  ;;  %v8100_v9 = vld [vmem:[#allocation8 + $0x5ec] sm:$0xf0] }
 0x1a2   :  { %3259 = vmatpush.bf16.msra.mxu0 %v6621_v19  ;;  %3228 = vmatmul.bf16.vlgmr.msrb.gmra.mxu1 %v8426_v6  ;;  %v6537_v6 = vor.u32 %v7888_v54, %v6536_v53  ;;  %v7920_v19 = vld [vmem:[#allocation8 + $0x4c] sm:$0xf0]  ;;  %v7376_v8 = vld [vmem:[#allocation8 + $0x5e0] sm:$0xf] }
 0x1a3   :  { %4640 = vmatpush.bf16.msra.mxu1 %v6737_v48  ;;  %3241 = vmatmul.bf16.vlgmr.msrb.gmra.mxu2 %v8438_v40  ;;  %v7992_v40 = vld [vmem:[#allocation8 + $0x28c] sm:$0xf0]  ;;  %v6784_v48 = vld [vmem:[#allocation8 + $0x140] sm:$0xf]  ;;  %v6657_v28 = vor.u32 %v7920_v19, %v6656_v45 }
 0x1a4   :  { %4653 = vmatpush.bf16.msra.mxu2 %v6865_v22  ;;  %3254 = vmatmul.bf16.vlgmr.msrb.gmra.mxu3 %v8440_v41  ;;  %v6689_v41 = vor.u32 %v7928_v56, %v6688_v4  ;;  %v6945_v2 = vor.u32 %v7992_v40, %v6944_v59  ;;  %v7952_v22 = vld [vmem:[#allocation8 + $0x14c] sm:$0xf0]  ;;  %v6752_v4 = vld [vmem:[#allocation8 + $0x100] sm:$0xf] }
 0x1a5   :  { %4666 = vmatpush.bf16.msra.mxu3 %v6993_v26  ;;  %v6481_v26 = vor.u32 %v7874_v15, %v6480_v14  ;;  %v6785_v29 = vor.u32 %v7952_v22, %v6784_v48  ;;  %v6880_v56 = vld [vmem:[#allocation8 + $0x200] sm:$0xf]  ;;  %v8036_v59 = vld [vmem:[#allocation8 + $0x3ec] sm:$0xf0]  ;;  %v3009_v15 = vadd.f32 %v8511_v60, %v584_v0 }
 0x1a6   :  { %3260 = vmatpush.bf16.msra.mxu0 %v6593_v7  ;;  %v8515_v17 = vpop.f32.mrf.mxu2  ;;  %v3010_v13 = vpop.f32.mrf.mxu0  ;;  %v7867_v7 = vld [vmem:[#allocation5 + $0xae8] sm:$0xf0]  ;;  %v6881_v3 = vor.u32 %v7976_v57, %v6880_v56  ;;  %v7121_v5 = vor.u32 %v8036_v59, %v7120_v58  ;;  %v8032_v14 = vld [vmem:[#allocation8 + $0x3cc] sm:$0xf0]  ;;  %v7232_v45 = vld [vmem:[#allocation8 + $0x4c0] sm:$0xf] }
 0x1a7   :  { %4641 = vmatpush.bf16.msra.mxu1 %v6721_v31  ;;  %v8517_v25 = vpop.f32.mrf.mxu3  ;;  %v3023_v27 = vpop.f32.mrf.mxu1  ;;  %v6640_v31 = vld [vmem:[#allocation8 + $0x20] sm:$0xf]  ;;  %v6453_v42 = vor.u32 %v7867_v7, %v6452_v30  ;;  %v3022_v13 = vadd.f32 %v8513_v61, %v3009_v15  ;;  %v8084_v57 = vld [vmem:[#allocation8 + $0x56c] sm:$0xf0] }
 0x1a8   :  { %4654 = vmatpush.bf16.msra.mxu2 %v6849_v32  ;;  %v6913_v32 = vor.u32 %v7984_v24, %v6912_v23  ;;  %v6641_v46 = vor.u32 %v7916_v33, %v6640_v31  ;;  %v7360_v22 = vld [vmem:[#allocation8 + $0x5c0] sm:$0xf]  ;;  %v8092_v31 = vld [vmem:[#allocation8 + $0x5ac] sm:$0xf0] }
 0x1a9   :  { %4667 = vmatpush.bf16.msra.mxu3 %v6977_v38  ;;  %v6896_v38 = vld [vmem:[#allocation8 + $0x220] sm:$0xf]  ;;  %v8024_v33 = vld [vmem:[#allocation8 + $0x38c] sm:$0xf0]  ;;  %v3035_v35 = vadd.f32 %v8515_v17, %v3022_v13 }
 0x1aa   :  { %3261 = vmatpush.bf16.msra.mxu0 %v6565_v50  ;;  %v7860_v50 = vld [vmem:[#allocation5 + $0xab0] sm:$0xf0]  ;;  %v6897_v54 = vor.u32 %v7980_v39, %v6896_v38  ;;  %v7088_v24 = vld [vmem:[#allocation8 + $0x3a0] sm:$0xf]  ;;  %v8056_v38 = vld [vmem:[#allocation8 + $0x48c] sm:$0xf0] }
 0x1ab   :  { %4642 = vmatpush.bf16.msra.mxu1 %v6705_v51  ;;  %v6624_v51 = vld [vmem:[#allocation8] sm:$0xf]  ;;  %v8048_v0 = vld [vmem:[#allocation8 + $0x44c] sm:$0xf0] }
 0x1ac   :  { %4655 = vmatpush.bf16.msra.mxu2 %v6833_v52  ;;  %v7912_v52 = vld [vmem:[#allocation8 + $0xc] sm:$0xf0]  ;;  %v7216_v27 = vld [vmem:[#allocation8 + $0x4a0] sm:$0xf] }
 0x1ad   :  { %4668 = vmatpush.bf16.msra.mxu3 %v6961_v55  ;;  %v7944_v55 = vld [vmem:[#allocation8 + $0x10c] sm:$0xf0]  ;;  %v6625_v20 = vor.u32 %v7912_v52, %v6624_v51  ;;  %v7344_v7 = vld [vmem:[#allocation8 + $0x5a0] sm:$0xf] }
 0x1ae   :  { %3262 = vmatpush.bf16.msra.mxu0 %v6537_v6  ;;  %v3036_v53 = vpop.f32.mrf.mxu2  ;;  %v6425_v6 = vor.u32 %v7860_v50, %v6424_v43  ;;  %v6753_v1 = vor.u32 %v7944_v55, %v6752_v4  ;;  %v7345_v61 = vor.u32 %v8092_v31, %v7344_v7  ;;  %v7201_v50 = vor.u32 %v8056_v38, %v7200_v36  ;;  %v7056_v51 = vld [vmem:[#allocation8 + $0x360] sm:$0xf]  ;;  %v8020_v52 = vld [vmem:[#allocation8 + $0x36c] sm:$0xf0]  ;;  %v8002_v38 = vld [vmem:[#allocation8 + $0x2e4] sm:$0xf] }
 0x1af   :  { %4643 = vmatpush.bf16.msra.mxu1 %v6689_v41  ;;  %v3049_v40 = vpop.f32.mrf.mxu3  ;;  %v7248_v41 = vld [vmem:[#allocation8 + $0x4e0] sm:$0xf]  ;;  %v3048_v53 = vadd.f32 %v8517_v25, %v3035_v35  ;;  %v8052_v4 = vld [vmem:[#allocation8 + $0x46c] sm:$0xf0]  ;;  %v7057_v55 = vor.u32 %v8020_v52, %v7056_v51  ;;  %v6850_v51 = vld [vmem:[#allocation8 + $0x1d0] sm:$0xf0] }
 0x1b0   :  { %4656 = vmatpush.bf16.msra.mxu2 %v6817_v62  ;;  %v8068_v62 = vld [vmem:[#allocation8 + $0x4ec] sm:$0xf0]  ;;  %v7312_v56 = vld [vmem:[#allocation8 + $0x560] sm:$0xf] }
 0x1b1   :  { %4669 = vmatpush.bf16.msra.mxu3 %v6945_v2  ;;  %v3272_v2 = vmax.f32 %v8468_v34, 0.0  ;;  %v7377_v34 = vor.u32 %v8100_v9, %v7376_v8  ;;  %v7040_v59 = vld [vmem:[#allocation8 + $0x340] sm:$0xf]  ;;  %v8016_v40 = vld [vmem:[#allocation8 + $0x34c] sm:$0xf0] }
 0x1b2   :  { %3263 = vmatpush.bf16.msra.mxu0 %v6509_v10  ;;  %v3274_v10 = vmax.f32 %v8496_v63, 0.0  ;;  %v8096_v63 = vld [vmem:[#allocation8 + $0x5cc] sm:$0xf0]  ;;  %v7041_v25 = vor.u32 %v8016_v40, %v7040_v59  ;;  %v7024_v8 = vld [vmem:[#allocation8 + $0x320] sm:$0xf] }
 0x1b3   :  { %4644 = vmatpush.bf16.msra.mxu1 %v6673_v11  ;;  %v7249_v11 = vor.u32 %v8068_v62, %v7248_v41  ;;  %v8524_v19 = vpack.c.bf16 %v3272_v2, %v3272_v2  ;;  %v7168_v62 = vld [vmem:[#allocation8 + $0x440] sm:$0xf]  ;;  %v8012_v9 = vld [vmem:[#allocation8 + $0x32c] sm:$0xf0]  ;;  %v7962_v59 = vld [vmem:[#allocation8 + $0x1a4] sm:$0xf] }
 0x1b4   :  { %4657 = vmatpush.bf16.msra.mxu2 %v6801_v12  ;;  %v7104_v12 = vld [vmem:[#allocation8 + $0x3c0] sm:$0xf]  ;;  %v8528_v23 = vpack.c.bf16 %v3274_v10, %v3274_v10  ;;  %v8040_v13 = vld [vmem:[#allocation8 + $0x40c] sm:$0xf0]  ;;  %v6834_v40 = vld [vmem:[#allocation8 + $0x1b0] sm:$0xf0] }
 0x1b5   :  { %4670 = vmatpush.bf16.msra.mxu3 %v6929_v18  ;;  %v8064_v18 = vld [vmem:[#allocation8 + $0x4cc] sm:$0xf0]  ;;  %v7105_v48 = vor.u32 %v8032_v14, %v7104_v12  ;;  %v7296_v2 = vld [vmem:[#allocation8 + $0x540] sm:$0xf] }
 0x1b6   :  { %3264 = vmatpush.bf16.msra.mxu0 %v6481_v26  ;;  %v7233_v60 = vor.u32 %v8064_v18, %v7232_v45  ;;  %v8028_v26 = vld [vmem:[#allocation8 + $0x3ac] sm:$0xf0]  ;;  %v7297_v15 = vor.u32 %v8080_v21, %v7296_v2  ;;  %v7025_v45 = vor.u32 %v8012_v9, %v7024_v8  ;;  %v7280_v18 = vld [vmem:[#allocation8 + $0x520] sm:$0xf]  ;;  %v7958_v2 = vld [vmem:[#allocation8 + $0x184] sm:$0xf] }
 0x1b7   :  { %4645 = vmatpush.bf16.msra.mxu1 %v6657_v28  ;;  %v8060_v28 = vld [vmem:[#allocation8 + $0x4ac] sm:$0xf0]  ;;  %v7089_v30 = vor.u32 %v8028_v26, %v7088_v24  ;;  %v6818_v21 = vld [vmem:[#allocation8 + $0x190] sm:$0xf0]  ;;  %v7990_v9 = vld [vmem:[#allocation8 + $0x284] sm:$0xf] }
 0x1b8   :  { %4658 = vmatpush.bf16.msra.mxu2 %v6785_v29  ;;  %v7361_v29 = vor.u32 %v8096_v63, %v7360_v22  ;;  %v8044_v12 = vld [vmem:[#allocation8 + $0x42c] sm:$0xf0]  ;;  %v7008_v22 = vld [vmem:[#allocation8 + $0x300] sm:$0xf] }
 0x1b9   :  { %4671 = vmatpush.bf16.msra.mxu3 %v6913_v32  ;;  %v7072_v32 = vld [vmem:[#allocation8 + $0x380] sm:$0xf]  ;;  %v8008_v63 = vld [vmem:[#allocation8 + $0x30c] sm:$0xf0] }
 0x1ba   :  { %3265 = vmatpush.bf16.msra.mxu0 %v6453_v42  ;;  %v7073_v39 = vor.u32 %v8024_v33, %v7072_v32  ;;  %v7009_v31 = vor.u32 %v8008_v63, %v7008_v22  ;;  %v8072_v32 = vld [vmem:[#allocation8 + $0x50c] sm:$0xf0]  ;;  %v3275_v33 = vmax.f32 %v8505_v44, 0.0  ;;  %v7918_v63 = vld [vmem:[#allocation8 + $0x44] sm:$0xf] }
 0x1bb   :  { %4646 = vmatpush.bf16.msra.mxu1 %v6641_v46  ;;  %v7328_v46 = vld [vmem:[#allocation8 + $0x580] sm:$0xf] }
 0x1bc   :  { %4659 = vmatpush.bf16.msra.mxu2 %v6769_v49  ;;  %v8088_v49 = vld [vmem:[#allocation8 + $0x58c] sm:$0xf0] }
 0x1bd   :  { %4672 = vmatpush.bf16.msra.mxu3 %v6897_v54  ;;  %v7184_v54 = vld [vmem:[#allocation8 + $0x460] sm:$0xf]  ;;  %v7329_v17 = vor.u32 %v8088_v49, %v7328_v46  ;;  %v6722_v46 = vld [vmem:[#allocation8 + $0xd0] sm:$0xf0] }
 0x1be   :  { %3266 = vmatpush.bf16.msra.mxu0 %v6425_v6  ;;  %v3060_v42 = vpop.f32.mrf.mxu0  ;;  %v7185_v58 = vor.u32 %v8052_v4, %v7184_v54  ;;  %v8540_v54 = vpack.c.bf16 %v3275_v33, %v3275_v33  ;;  %v7998_v4 = vld [vmem:[#allocation8 + $0x2c4] sm:$0xf] }
 0x1bf   :  { %4647 = vmatpush.bf16.msra.mxu1 %v6625_v20  ;;  %v3073_v43 = vpop.f32.mrf.mxu1  ;;  %v3061_v41 = vadd.f32 %v3060_v42, %v3048_v53  ;;  %v7313_v20 = vor.u32 %v8084_v57, %v7312_v56  ;;  %v7930_v57 = vld [vmem:[#allocation8 + $0xa4] sm:$0xf] }
 0x1c0   :  { %4660 = vmatpush.bf16.msra.mxu2 %v6753_v1 }
 0x1c1   :  { %4673 = vmatpush.bf16.msra.mxu3 %v6881_v3  ;;  %3267 = vmatmul.bf16.vlgmr.msra.gmra.mxu0 %v8436_v37  ;;  %v7217_v37 = vor.u32 %v8060_v28, %v7216_v27  ;;  %v3074_v10 = vadd.f32 %v3073_v43, %v3061_v41  ;;  %v7938_v27 = vld [vmem:[#allocation8 + $0xe4] sm:$0xf]  ;;  %v6738_v28 = vld [vmem:[#allocation8 + $0xf0] sm:$0xf0] }
 0x1c2   :  { %4679 = vmatpush.bf16.msrb.mxu0 %v7121_v5  ;;  %4648 = vmatmul.bf16.vlgmr.msra.gmra.mxu1 %v8524_v19  ;;  %v7169_v5 = vor.u32 %v8048_v0, %v7168_v62  ;;  %v6741_v36 = vor.u32 %v7938_v27, %v6738_v28  ;;  %v7934_v43 = vld [vmem:[#allocation8 + $0xc4] sm:$0xf]  ;;  %v6962_v0 = vld [vmem:[#allocation8 + $0x2b0] sm:$0xf0]  ;;  %v7504_v27 = vld [vmem:[#allocation8 + $0x6e0] sm:$0xf] }
 0x1c3   :  { %4692 = vmatpush.bf16.msrb.mxu1 %v7249_v11  ;;  %4661 = vmatmul.bf16.vlgmr.msra.gmra.mxu2 %v8526_v16  ;;  %v7152_v11 = vld [vmem:[#allocation8 + $0x420] sm:$0xf]  ;;  %v6725_v44 = vor.u32 %v7934_v43, %v6722_v46  ;;  %v7994_v62 = vld [vmem:[#allocation8 + $0x2a4] sm:$0xf]  ;;  %v8132_v28 = vld [vmem:[#allocation8 + $0x6ec] sm:$0xf0] }
 0x1c4   :  { %4674 = vmatmul.bf16.vlgmr.msra.gmra.mxu3 %v8528_v23  ;;  %4705 = vmatpush.bf16.msrb.mxu2 %v7377_v34  ;;  %v8076_v34 = vld [vmem:[#allocation8 + $0x52c] sm:$0xf0]  ;;  %v6642_v43 = vld [vmem:[#allocation8 + $0x30] sm:$0xf0] }
 0x1c5   :  { %v7281_v7 = vor.u32 %v8076_v34, %v7280_v18  ;;  %v7954_v18 = vld [vmem:[#allocation8 + $0x164] sm:$0xf]  ;;  %v6802_v34 = vld [vmem:[#allocation8 + $0x170] sm:$0xf0] }
 0x1c6   :  { %4680 = vmatpush.bf16.msrb.mxu0 %v7105_v48  ;;  %v3086_v6 = vpop.f32.mrf.mxu2  ;;  %v3062_v1 = vpop.f32.mrf.mxu0  ;;  %v7153_v48 = vor.u32 %v8044_v12, %v7152_v11  ;;  %v6821_v11 = vor.u32 %v7958_v2, %v6818_v21  ;;  %v7922_v12 = vld [vmem:[#allocation8 + $0x64] sm:$0xf]  ;;  %v7378_v2 = vld [vmem:[#allocation8 + $0x5f0] sm:$0xf0] }
 0x1c7   :  { %4693 = vmatpush.bf16.msrb.mxu1 %v7233_v60  ;;  %v3075_v3 = vpop.f32.mrf.mxu1  ;;  %v8537_v14 = vpop.f32.mrf.mxu3  ;;  %v7136_v60 = vld [vmem:[#allocation8 + $0x400] sm:$0xf]  ;;  %v3087_v26 = vadd.f32 %v3086_v6, %v3074_v10  ;;  %v6690_v1 = vld [vmem:[#allocation8 + $0x90] sm:$0xf0] }
 0x1c8   :  { %4706 = vmatpush.bf16.msrb.mxu2 %v7361_v29  ;;  %v7970_v29 = vld [vmem:[#allocation8 + $0x1e4] sm:$0xf]  ;;  %v7137_v35 = vor.u32 %v8040_v13, %v7136_v60  ;;  %v6965_v3 = vor.u32 %v7994_v62, %v6962_v0  ;;  %v6946_v10 = vld [vmem:[#allocation8 + $0x290] sm:$0xf0] }
 0x1c9   :  { %v7986_v60 = vld [vmem:[#allocation8 + $0x264] sm:$0xf]  ;;  %v6658_v13 = vld [vmem:[#allocation8 + $0x50] sm:$0xf0] }
 0x1ca   :  { %4681 = vmatpush.bf16.msrb.mxu0 %v7089_v30  ;;  %v6866_v30 = vld [vmem:[#allocation8 + $0x1f0] sm:$0xf0]  ;;  %v6661_v33 = vor.u32 %v7918_v63, %v6658_v13  ;;  %v8066_v0 = vld [vmem:[#allocation8 + $0x4e4] sm:$0xf]  ;;  %v8120_v63 = vld [vmem:[#allocation8 + $0x68c] sm:$0xf0] }
 0x1cb   :  { %4694 = vmatpush.bf16.msrb.mxu1 %v7217_v37  ;;  %v7264_v37 = vld [vmem:[#allocation8 + $0x500] sm:$0xf]  ;;  %v6869_v42 = vor.u32 %v7970_v29, %v6866_v30  ;;  %v7950_v29 = vld [vmem:[#allocation8 + $0x144] sm:$0xf]  ;;  %v6786_v30 = vld [vmem:[#allocation8 + $0x150] sm:$0xf0] }
 0x1cc   :  { %4707 = vmatpush.bf16.msrb.mxu2 %v7345_v61  ;;  %v6994_v61 = vld [vmem:[#allocation8 + $0x2f0] sm:$0xf0]  ;;  %v7265_v52 = vor.u32 %v8072_v32, %v7264_v37 }
 0x1cd   :  { %v6997_v53 = vor.u32 %v8002_v38, %v6994_v61  ;;  %v7982_v61 = vld [vmem:[#allocation8 + $0x244] sm:$0xf]  ;;  %v6754_v62 = vld [vmem:[#allocation8 + $0x110] sm:$0xf0] }
 0x1ce   :  { %4682 = vmatpush.bf16.msrb.mxu0 %v7073_v39  ;;  %v3088_v24 = vpop.f32.mrf.mxu2  ;;  %v3276_v39 = vmax.f32 %v3087_v26, 0.0  ;;  %v6805_v26 = vor.u32 %v7954_v18, %v6802_v34  ;;  %v7456_v18 = vld [vmem:[#allocation8 + $0x680] sm:$0xf] }
 0x1cf   :  { %4695 = vmatpush.bf16.msrb.mxu1 %v7201_v50  ;;  %v3101_v49 = vpop.f32.mrf.mxu3  ;;  %v7966_v50 = vld [vmem:[#allocation8 + $0x1c4] sm:$0xf]  ;;  %v6930_v24 = vld [vmem:[#allocation8 + $0x270] sm:$0xf0]  ;;  %v7457_v13 = vor.u32 %v8120_v63, %v7456_v18 }
 0x1d0   :  { %4708 = vmatpush.bf16.msrb.mxu2 %v7329_v17  ;;  %v6978_v17 = vld [vmem:[#allocation8 + $0x2d0] sm:$0xf0]  ;;  %v6853_v56 = vor.u32 %v7966_v50, %v6850_v51  ;;  %v6933_v32 = vor.u32 %v7986_v60, %v6930_v24  ;;  %v7488_v49 = vld [vmem:[#allocation8 + $0x6c0] sm:$0xf]  ;;  %v8128_v50 = vld [vmem:[#allocation8 + $0x6cc] sm:$0xf0] }
 0x1d1   :  { %v6981_v6 = vor.u32 %v7998_v4, %v6978_v17  ;;  %v6770_v51 = vld [vmem:[#allocation8 + $0x130] sm:$0xf0]  ;;  %v8094_v60 = vld [vmem:[#allocation8 + $0x5c4] sm:$0xf] }
 0x1d2   :  { %4683 = vmatpush.bf16.msrb.mxu0 %v7057_v55  ;;  %v8542_v55 = vpack.c.bf16 %v3276_v39, %v3276_v39  ;;  %v6914_v39 = vld [vmem:[#allocation8 + $0x250] sm:$0xf0] }
 0x1d3   :  { %4696 = vmatpush.bf16.msrb.mxu1 %v7185_v58  ;;  %v6706_v58 = vld [vmem:[#allocation8 + $0xb0] sm:$0xf0]  ;;  %v6917_v4 = vor.u32 %v7982_v61, %v6914_v39  ;;  %v7424_v61 = vld [vmem:[#allocation8 + $0x640] sm:$0xf]  ;;  %v8112_v39 = vld [vmem:[#allocation8 + $0x64c] sm:$0xf0] }
 0x1d4   :  { %4709 = vmatpush.bf16.msrb.mxu2 %v7313_v20  ;;  %v6709_v41 = vor.u32 %v7930_v57, %v6706_v58  ;;  %v6837_v20 = vor.u32 %v7962_v59, %v6834_v40  ;;  %v7978_v57 = vld [vmem:[#allocation8 + $0x224] sm:$0xf]  ;;  %v6898_v58 = vld [vmem:[#allocation8 + $0x230] sm:$0xf0] }
 0x1d5   :  { %v7942_v40 = vld [vmem:[#allocation8 + $0x104] sm:$0xf]  ;;  %v6901_v21 = vor.u32 %v7978_v57, %v6898_v58  ;;  %v7362_v24 = vld [vmem:[#allocation8 + $0x5d0] sm:$0xf0] }
 0x1d6   :  { %4684 = vmatpush.bf16.msrb.mxu0 %v7041_v25  ;;  %v7926_v25 = vld [vmem:[#allocation8 + $0x84] sm:$0xf]  ;;  %v7490_v63 = vld [vmem:[#allocation8 + $0x6d0] sm:$0xf0] }
 0x1d7   :  { %4697 = vmatpush.bf16.msrb.mxu1 %v7169_v5  ;;  %v6693_v5 = vor.u32 %v7926_v25, %v6690_v1  ;;  %v8098_v1 = vld [vmem:[#allocation8 + $0x5e4] sm:$0xf] }
 0x1d8   :  { %4710 = vmatpush.bf16.msrb.mxu2 %v7297_v15  ;;  %v6674_v15 = vld [vmem:[#allocation8 + $0x70] sm:$0xf0]  ;;  %v7381_v34 = vor.u32 %v8098_v1, %v7378_v2 }
 0x1d9   :  { %v6677_v22 = vor.u32 %v7922_v12, %v6674_v15  ;;  %v6757_v12 = vor.u32 %v7942_v40, %v6754_v62  ;;  %v7314_v40 = vld [vmem:[#allocation8 + $0x570] sm:$0xf0]  ;;  %v8130_v62 = vld [vmem:[#allocation8 + $0x6e4] sm:$0xf] }
 0x1da   :  { %4685 = vmatpush.bf16.msrb.mxu0 %v7025_v45  ;;  %v7170_v2 = vld [vmem:[#allocation8 + $0x450] sm:$0xf0] }
 0x1db   :  { %4698 = vmatpush.bf16.msrb.mxu1 %v7153_v48  ;;  %v6949_v48 = vor.u32 %v7990_v9, %v6946_v10  ;;  %v7974_v9 = vld [vmem:[#allocation8 + $0x204] sm:$0xf]  ;;  %v6882_v10 = vld [vmem:[#allocation8 + $0x210] sm:$0xf0] }
 0x1dc   :  { %4711 = vmatpush.bf16.msrb.mxu2 %v7281_v7  ;;  %v7505_v7 = vor.u32 %v8132_v28, %v7504_v27  ;;  %v7440_v28 = vld [vmem:[#allocation8 + $0x660] sm:$0xf] }
 0x1de   :  { %4686 = vmatpush.bf16.msrb.mxu0 %v7009_v31  ;;  %v8546_v8 = vpop.f32.mrf.mxu0  ;;  %v585_v31 = vperm.slane %v8498_v47, 5  ;;  %4718 = vmatpush.bf16.msrb.mxu3 %v7505_v7  ;;  %v7946_v47 = vld [vmem:[#allocation8 + $0x124] sm:$0xf] }
 0x1df   :  { %4699 = vmatpush.bf16.msrb.mxu1 %v7137_v35  ;;  %v8548_v45 = vpop.f32.mrf.mxu1  ;;  %v7914_v35 = vld [vmem:[#allocation8 + $0x24] sm:$0xf]  ;;  %v6773_v59 = vor.u32 %v7946_v47, %v6770_v51  ;;  %v7330_v51 = vld [vmem:[#allocation8 + $0x590] sm:$0xf0] }
 0x1e0   :  { %4712 = vmatpush.bf16.msrb.mxu2 %v7265_v52  ;;  %v7489_v52 = vor.u32 %v8128_v50, %v7488_v49  ;;  %v6645_v17 = vor.u32 %v7914_v35, %v6642_v43  ;;  %v8058_v7 = vld [vmem:[#allocation8 + $0x4a4] sm:$0xf]  ;;  %v7346_v35 = vld [vmem:[#allocation8 + $0x5b0] sm:$0xf0]  ;;  %v7425_v49 = vor.u32 %v8112_v39, %v7424_v61 }
 0x1e1   :  { %4687 = vmatmul.bf16.vlgmr.msrb.gmra.mxu0 %v8540_v54  ;;  %v8054_v43 = vld [vmem:[#allocation8 + $0x484] sm:$0xf]  ;;  %v7474_v61 = vld [vmem:[#allocation8 + $0x6b0] sm:$0xf0] }
 0x1e2   :  { %4731 = vmatpush.bf16.msra.mxu0 %v6741_v36  ;;  %4700 = vmatmul.bf16.vlgmr.msrb.gmra.mxu1 %v8542_v55  ;;  %v8086_v47 = vld [vmem:[#allocation8 + $0x584] sm:$0xf] }
 0x1e3   :  { %4744 = vmatpush.bf16.msra.mxu1 %v6869_v42  ;;  %v6789_v42 = vor.u32 %v7950_v29, %v6786_v30  ;;  %4719 = vmatpush.bf16.msrb.mxu3 %v7489_v52  ;;  %v8116_v29 = vld [vmem:[#allocation8 + $0x66c] sm:$0xf0]  ;;  %v7365_v30 = vor.u32 %v8094_v60, %v7362_v24  ;;  %v7408_v52 = vld [vmem:[#allocation8 + $0x620] sm:$0xf]  ;;  %v7154_v24 = vld [vmem:[#allocation8 + $0x430] sm:$0xf0] }
 0x1e4   :  { %4757 = vmatpush.bf16.msra.mxu2 %v6997_v53  ;;  %v3100_v53 = vadd.f32 %v8537_v14, %v585_v31  ;;  %v7218_v31 = vld [vmem:[#allocation8 + $0x4b0] sm:$0xf0] }
 0x1e6   :  { %4732 = vmatpush.bf16.msra.mxu0 %v6725_v44  ;;  %v8551_v37 = vpop.f32.mrf.mxu2  ;;  %v3114_v36 = vpop.f32.mrf.mxu0  ;;  %v7910_v44 = vld [vmem:[#allocation8 + $0x4] sm:$0xf]  ;;  %v3113_v14 = vadd.f32 %v8546_v8, %v3100_v53 }
 0x1e7   :  { %4745 = vmatpush.bf16.msra.mxu1 %v6853_v56  ;;  %v8553_v38 = vpop.f32.mrf.mxu3  ;;  %v3127_v46 = vpop.f32.mrf.mxu1  ;;  %v6626_v56 = vld [vmem:[#allocation8 + $0x10] sm:$0xf0]  ;;  %v7221_v36 = vor.u32 %v8058_v7, %v7218_v31 }
 0x1e8   :  { %4758 = vmatpush.bf16.msra.mxu2 %v6981_v6  ;;  %v7472_v6 = vld [vmem:[#allocation8 + $0x6a0] sm:$0xf]  ;;  %v3126_v8 = vadd.f32 %v8548_v45, %v3113_v14  ;;  %v7202_v46 = vld [vmem:[#allocation8 + $0x490] sm:$0xf0]  ;;  %v8104_v14 = vld [vmem:[#allocation8 + $0x60c] sm:$0xf0] }
 0x1ea   :  { %4733 = vmatpush.bf16.msra.mxu0 %v6709_v41  ;;  %v8124_v41 = vld [vmem:[#allocation8 + $0x6ac] sm:$0xf0]  ;;  %v3139_v45 = vadd.f32 %v8551_v37, %v3126_v8  ;;  %v7205_v37 = vor.u32 %v8054_v43, %v7202_v46  ;;  %v8026_v43 = vld [vmem:[#allocation8 + $0x3a4] sm:$0xf]  ;;  %v7090_v46 = vld [vmem:[#allocation8 + $0x3b0] sm:$0xf0] }
 0x1eb   :  { %4746 = vmatpush.bf16.msra.mxu1 %v6837_v20  ;;  %v7250_v20 = vld [vmem:[#allocation8 + $0x4f0] sm:$0xf0]  ;;  %v7473_v25 = vor.u32 %v8124_v41, %v7472_v6  ;;  %v8046_v41 = vld [vmem:[#allocation8 + $0x444] sm:$0xf] }
 0x1ec   :  { %4759 = vmatpush.bf16.msra.mxu2 %v6965_v3  ;;  %v7253_v15 = vor.u32 %v8066_v0, %v7250_v20  ;;  %v3152_v50 = vadd.f32 %v8553_v38, %v3139_v45  ;;  %v7506_v20 = vld [vmem:[#allocation8 + $0x6f0] sm:$0xf0]  ;;  %v8038_v45 = vld [vmem:[#allocation8 + $0x404] sm:$0xf] }
 0x1ed   :  { %4720 = vmatpush.bf16.msrb.mxu3 %v7473_v25  ;;  %v7392_v25 = vld [vmem:[#allocation8 + $0x600] sm:$0xf] }
 0x1ee   :  { %4734 = vmatpush.bf16.msra.mxu0 %v6693_v5  ;;  %v3140_v3 = vpop.f32.mrf.mxu2  ;;  %v6629_v5 = vor.u32 %v7910_v44, %v6626_v56  ;;  %v7333_v44 = vor.u32 %v8086_v47, %v7330_v51  ;;  %v8108_v56 = vld [vmem:[#allocation8 + $0x62c] sm:$0xf0]  ;;  %v7973_v47 = vld [vmem:[#allocation8 + $0x1f4] sm:$0xf0]  ;;  %v7093_v51 = vor.u32 %v8026_v43, %v7090_v46  ;;  %v7026_v43 = vld [vmem:[#allocation8 + $0x330] sm:$0xf0] }
 0x1ef   :  { %4747 = vmatpush.bf16.msra.mxu1 %v6821_v11  ;;  %v3153_v11 = vpop.f32.mrf.mxu3  ;;  %v7409_v6 = vor.u32 %v8108_v56, %v7408_v52  ;;  %v8034_v3 = vld [vmem:[#allocation8 + $0x3e4] sm:$0xf]  ;;  %v7000_v52 = vld [vmem:[#allocation8 + $0x2e8] sm:$0xf] }
 0x1f0   :  { %4760 = vmatpush.bf16.msra.mxu2 %v6949_v48  ;;  %v8062_v48 = vld [vmem:[#allocation8 + $0x4c4] sm:$0xf]  ;;  %v7298_v11 = vld [vmem:[#allocation8 + $0x550] sm:$0xf0] }
 0x1f1   :  { %4721 = vmatpush.bf16.msrb.mxu3 %v7457_v13 }
 0x1f2   :  { %4735 = vmatpush.bf16.msra.mxu0 %v6677_v22  ;;  %v7234_v22 = vld [vmem:[#allocation8 + $0x4d0] sm:$0xf0] }
 0x1f3   :  { %4748 = vmatpush.bf16.msra.mxu1 %v6805_v26  ;;  %v6885_v26 = vor.u32 %v7974_v9, %v6882_v10  ;;  %v7237_v27 = vor.u32 %v8062_v48, %v7234_v22  ;;  %v8078_v10 = vld [vmem:[#allocation8 + $0x544] sm:$0xf] }
 0x1f4   :  { %4761 = vmatpush.bf16.msra.mxu2 %v6933_v32  ;;  %v7441_v32 = vor.u32 %v8116_v29, %v7440_v28  ;;  %v8042_v48 = vld [vmem:[#allocation8 + $0x424] sm:$0xf]  ;;  %v7301_v60 = vor.u32 %v8078_v10, %v7298_v11  ;;  %v7106_v28 = vld [vmem:[#allocation8 + $0x3d0] sm:$0xf0]  ;;  %v6840_v10 = vld [vmem:[#allocation8 + $0x1a8] sm:$0xf] }
 0x1f5   :  { %v8126_v22 = vld [vmem:[#allocation8 + $0x6c4] sm:$0xf]  ;;  %v7965_v11 = vld [vmem:[#allocation8 + $0x1b4] sm:$0xf0] }
 0x1f6   :  { %4736 = vmatpush.bf16.msra.mxu0 %v6661_v33  ;;  %v8090_v33 = vld [vmem:[#allocation8 + $0x5a4] sm:$0xf]  ;;  %4722 = vmatpush.bf16.msrb.mxu3 %v7441_v32  ;;  %v7493_v32 = vor.u32 %v8126_v22, %v7490_v63  ;;  %v7426_v63 = vld [vmem:[#allocation8 + $0x650] sm:$0xf0] }
 0x1f7   :  { %4749 = vmatpush.bf16.msra.mxu1 %v6789_v42  ;;  %v7349_v42 = vor.u32 %v8090_v33, %v7346_v35  ;;  %v8074_v29 = vld [vmem:[#allocation8 + $0x524] sm:$0xf]  ;;  %v7157_v33 = vor.u32 %v8042_v48, %v7154_v24  ;;  %v7138_v35 = vld [vmem:[#allocation8 + $0x410] sm:$0xf0] }
 0x1f8   :  { %4762 = vmatpush.bf16.msra.mxu2 %v6917_v4  ;;  %v8050_v4 = vld [vmem:[#allocation8 + $0x464] sm:$0xf] }
 0x1f9   :  { %v8110_v22 = vld [vmem:[#allocation8 + $0x644] sm:$0xf] }
 0x1fa   :  { %4737 = vmatpush.bf16.msra.mxu0 %v6645_v17  ;;  %v7186_v17 = vld [vmem:[#allocation8 + $0x470] sm:$0xf0]  ;;  %4723 = vmatpush.bf16.msrb.mxu3 %v7425_v49  ;;  %v8014_v24 = vld [vmem:[#allocation8 + $0x344] sm:$0xf] }
 0x1fb   :  { %4750 = vmatpush.bf16.msra.mxu1 %v6773_v59  ;;  %v8082_v59 = vld [vmem:[#allocation8 + $0x564] sm:$0xf]  ;;  %v7189_v0 = vor.u32 %v8050_v4, %v7186_v17  ;;  %v7266_v49 = vld [vmem:[#allocation8 + $0x510] sm:$0xf0] }
 0x1fc   :  { %4763 = vmatpush.bf16.msra.mxu2 %v6901_v21  ;;  %v7317_v1 = vor.u32 %v8082_v59, %v7314_v40  ;;  %v7393_v21 = vor.u32 %v8104_v14, %v7392_v25  ;;  %v8118_v4 = vld [vmem:[#allocation8 + $0x684] sm:$0xf]  ;;  %v7458_v17 = vld [vmem:[#allocation8 + $0x690] sm:$0xf0]  ;;  %v8001_v25 = vld [vmem:[#allocation8 + $0x2d4] sm:$0xf0] }
 0x1fd   :  { %v8022_v40 = vld [vmem:[#allocation8 + $0x384] sm:$0xf] }
 0x1fe   :  { %4738 = vmatpush.bf16.msra.mxu0 %v6629_v5  ;;  %v3164_v53 = vpop.f32.mrf.mxu0  ;;  %4724 = vmatpush.bf16.msrb.mxu3 %v7409_v6  ;;  %v7122_v5 = vld [vmem:[#allocation8 + $0x3f0] sm:$0xf0] }
 0x1ff   :  { %4751 = vmatpush.bf16.msra.mxu1 %v6757_v12  ;;  %v3165_v57 = vadd.f32 %v3164_v53, %v3152_v50  ;;  %v3177_v58 = vpop.f32.mrf.mxu1  ;;  %v7125_v12 = vor.u32 %v8034_v3, %v7122_v5  ;;  %v6872_v50 = vld [vmem:[#allocation8 + $0x1e8] sm:$0xf]  ;;  %v8005_v53 = vld [vmem:[#allocation8 + $0x2f4] sm:$0xf0]  ;;  %v8018_v3 = vld [vmem:[#allocation8 + $0x364] sm:$0xf] }
 0x200   :  { %4764 = vmatpush.bf16.msra.mxu2 %v6885_v26  ;;  %v7001_v6 = vor.u32 %v8005_v53, %v7000_v52  ;;  %v7058_v5 = vld [vmem:[#allocation8 + $0x370] sm:$0xf0]  ;;  %v7128_v53 = vld [vmem:[#allocation8 + $0x3e8] sm:$0xf] }
 0x201   :  { %4739 = vmatmul.bf16.vlgmr.msra.gmra.mxu0 %v8524_v19  ;;  %v3178_v38 = vadd.f32 %v3177_v58, %v3165_v57  ;;  %v6873_v58 = vor.u32 %v7973_v47, %v6872_v50  ;;  %v7061_v48 = vor.u32 %v8018_v3, %v7058_v5  ;;  %v6936_v50 = vld [vmem:[#allocation8 + $0x268] sm:$0xf]  ;;  %v7989_v47 = vld [vmem:[#allocation8 + $0x274] sm:$0xf0]  ;;  %v7394_v52 = vld [vmem:[#allocation8 + $0x610] sm:$0xf0] }
 0x202   :  { %4783 = vmatpush.bf16.msrb.mxu0 %v7253_v15  ;;  %4752 = vmatmul.bf16.vlgmr.msra.gmra.mxu1 %v8526_v16  ;;  %v7509_v15 = vor.u32 %v8130_v62, %v7506_v20  ;;  %v7969_v62 = vld [vmem:[#allocation8 + $0x1d4] sm:$0xf0]  ;;  %v6984_v20 = vld [vmem:[#allocation8 + $0x2c8] sm:$0xf] }
 0x203   :  { %4796 = vmatpush.bf16.msrb.mxu1 %v7381_v34  ;;  %v3277_v9 = vmax.f32 %v3178_v38, 0.0  ;;  %v7173_v34 = vor.u32 %v8046_v41, %v7170_v2  ;;  %4725 = vmatpush.bf16.msrb.mxu3 %v7393_v21  ;;  %v6856_v41 = vld [vmem:[#allocation8 + $0x1c8] sm:$0xf]  ;;  %v7074_v38 = vld [vmem:[#allocation8 + $0x390] sm:$0xf0] }
 0x204   :  { %v7077_v14 = vor.u32 %v8022_v40, %v7074_v38  ;;  %v7442_v2 = vld [vmem:[#allocation8 + $0x670] sm:$0xf0]  ;;  %v6857_v21 = vor.u32 %v7969_v62, %v6856_v41  ;;  %v7953_v40 = vld [vmem:[#allocation8 + $0x154] sm:$0xf0]  ;;  %v6920_v38 = vld [vmem:[#allocation8 + $0x248] sm:$0xf] }
 0x205   :  { %v8562_v18 = vpack.c.bf16 %v3277_v9, %v3277_v9  ;;  %v6985_v9 = vor.u32 %v8001_v25, %v6984_v20  ;;  %v6776_v3 = vld [vmem:[#allocation8 + $0x128] sm:$0xf]  ;;  %v7949_v5 = vld [vmem:[#allocation8 + $0x134] sm:$0xf0] }
 0x206   :  { %4784 = vmatpush.bf16.msrb.mxu0 %v7237_v27  ;;  %v8564_v8 = vpop.f32.mrf.mxu2  ;;  %v3166_v26 = vpop.f32.mrf.mxu0  ;;  %v8030_v27 = vld [vmem:[#allocation8 + $0x3c4] sm:$0xf] }
 0x207   :  { %4797 = vmatpush.bf16.msrb.mxu1 %v7365_v30  ;;  %v8566_v13 = vpop.f32.mrf.mxu3  ;;  %4713 = vmatmul.bf16.vlgmr.msrb.gmra.mxu2 %v8562_v18  ;;  %v7282_v30 = vld [vmem:[#allocation8 + $0x530] sm:$0xf0]  ;;  %v3179_v7 = vpop.f32.mrf.mxu1  ;;  %v7109_v31 = vor.u32 %v8030_v27, %v7106_v28  ;;  %v6824_v28 = vld [vmem:[#allocation8 + $0x188] sm:$0xf] }
 0x208   :  { %4770 = vmatpush.bf16.msra.mxu3 %v7125_v12  ;;  %4809 = vmatpush.bf16.msrb.mxu2 %v7509_v15  ;;  %v7285_v39 = vor.u32 %v8074_v29, %v7282_v30  ;;  %v6968_v15 = vld [vmem:[#allocation8 + $0x2a8] sm:$0xf]  ;;  %v7042_v26 = vld [vmem:[#allocation8 + $0x350] sm:$0xf0]  ;;  %v7961_v29 = vld [vmem:[#allocation8 + $0x194] sm:$0xf0]  ;;  %v7429_v30 = vor.u32 %v8110_v22, %v7426_v63  ;;  %v6777_v63 = vor.u32 %v7949_v5, %v6776_v3 }
 0x209   :  { %v6952_v7 = vld [vmem:[#allocation8 + $0x288] sm:$0xf]  ;;  %v8587_v3 = vld [vmem:[#allocation10] sm:$0xf] }
 0x20a   :  { %4785 = vmatpush.bf16.msrb.mxu0 %v7221_v36  ;;  %v8122_v36 = vld [vmem:[#allocation8 + $0x6a4] sm:$0xf]  ;;  %v7032_v5 = vld [vmem:[#allocation8 + $0x328] sm:$0xf] }
 0x20b   :  { %4798 = vmatpush.bf16.msrb.mxu1 %v7349_v42  ;;  %v8070_v42 = vld [vmem:[#allocation8 + $0x504] sm:$0xf] }
 0x20c   :  { %4771 = vmatpush.bf16.msra.mxu3 %v7109_v31  ;;  %4810 = vmatpush.bf16.msrb.mxu2 %v7493_v32  ;;  %v7269_v57 = vor.u32 %v8070_v42, %v7266_v49  ;;  %v7993_v31 = vld [vmem:[#allocation8 + $0x294] sm:$0xf0]  ;;  %v7045_v32 = vor.u32 %v8014_v24, %v7042_v26  ;;  %v8010_v42 = vld [vmem:[#allocation8 + $0x324] sm:$0xf] }
 0x20d   :  { %v8029_v24 = vld [vmem:[#allocation8 + $0x3b4] sm:$0xf0] }
 0x20e   :  { %4786 = vmatpush.bf16.msrb.mxu0 %v7205_v37  ;;  %v7477_v37 = vor.u32 %v8122_v36, %v7474_v61  ;;  %v3192_v56 = vpop.f32.mrf.mxu2  ;;  %v6808_v36 = vld [vmem:[#allocation8 + $0x168] sm:$0xf]  ;;  %v6953_v61 = vor.u32 %v7993_v31, %v6952_v7  ;;  %v8101_v31 = vld [vmem:[#allocation8 + $0x5f4] sm:$0xf0] }
 0x20f   :  { %4799 = vmatpush.bf16.msrb.mxu1 %v7333_v44  ;;  %v7141_v44 = vor.u32 %v8038_v45, %v7138_v35  ;;  %v3205_v59 = vpop.f32.mrf.mxu3  ;;  %v8106_v45 = vld [vmem:[#allocation8 + $0x624] sm:$0xf]  ;;  %v6825_v35 = vor.u32 %v7961_v29, %v6824_v28  ;;  %v7945_v28 = vld [vmem:[#allocation8 + $0x114] sm:$0xf0]  ;;  %v6888_v29 = vld [vmem:[#allocation8 + $0x208] sm:$0xf] }
 0x210   :  { %4772 = vmatpush.bf16.msra.mxu3 %v7093_v51  ;;  %4811 = vmatpush.bf16.msrb.mxu2 %v7477_v37  ;;  %v7029_v51 = vor.u32 %v8010_v42, %v7026_v43  ;;  %v8102_v37 = vld [vmem:[#allocation8 + $0x604] sm:$0xf]  ;;  %v6792_v59 = vld [vmem:[#allocation8 + $0x148] sm:$0xf] }
 0x211   :  { %v8006_v56 = vld [vmem:[#allocation8 + $0x304] sm:$0xf]  ;;  %v7397_v62 = vor.u32 %v8102_v37, %v7394_v52  ;;  %v7384_v7 = vld [vmem:[#allocation8 + $0x5e8] sm:$0xf] }
 0x212   :  { %4787 = vmatpush.bf16.msrb.mxu0 %v7189_v0  ;;  %v7461_v0 = vor.u32 %v8118_v4, %v7458_v17  ;;  %v8037_v17 = vld [vmem:[#allocation8 + $0x3f4] sm:$0xf0]  ;;  %v7385_v42 = vor.u32 %v8101_v31, %v7384_v7  ;;  %v7496_v52 = vld [vmem:[#allocation8 + $0x6c8] sm:$0xf] }
 0x213   :  { %4800 = vmatpush.bf16.msrb.mxu1 %v7317_v1  ;;  %v8114_v1 = vld [vmem:[#allocation8 + $0x664] sm:$0xf]  ;;  %v7129_v25 = vor.u32 %v8037_v17, %v7128_v53  ;;  %v8129_v53 = vld [vmem:[#allocation8 + $0x6d4] sm:$0xf0] }
 0x214   :  { %4773 = vmatpush.bf16.msra.mxu3 %v7077_v14  ;;  %4812 = vmatpush.bf16.msrb.mxu2 %v7461_v0  ;;  %v7445_v12 = vor.u32 %v8114_v1, %v7442_v2  ;;  %v7985_v0 = vld [vmem:[#allocation8 + $0x254] sm:$0xf0]  ;;  %v6793_v14 = vor.u32 %v7953_v40, %v6792_v59  ;;  %v7112_v1 = vld [vmem:[#allocation8 + $0x3c8] sm:$0xf] }
 0x215   :  { %v8033_v2 = vld [vmem:[#allocation8 + $0x3d4] sm:$0xf0]  ;;  %v7352_v59 = vld [vmem:[#allocation8 + $0x5a8] sm:$0xf] }
 0x216   :  { %4788 = vmatpush.bf16.msrb.mxu0 %v7173_v34  ;;  %v7997_v34 = vld [vmem:[#allocation8 + $0x2b4] sm:$0xf0] }
 0x217   :  { %4801 = vmatpush.bf16.msrb.mxu1 %v7301_v60  ;;  %v6841_v60 = vor.u32 %v7965_v11, %v6840_v10  ;;  %4765 = vmatmul.bf16.vlgmr.msra.gmra.mxu2 %v8528_v23  ;;  %v6969_v27 = vor.u32 %v7997_v34, %v6968_v15  ;;  %v7981_v15 = vld [vmem:[#allocation8 + $0x234] sm:$0xf0] }
 0x218   :  { %4813 = vmatpush.bf16.msrb.mxu2 %v7445_v12  ;;  %4774 = vmatpush.bf16.msra.mxu3 %v7061_v48  ;;  %v6904_v12 = vld [vmem:[#allocation8 + $0x228] sm:$0xf]  ;;  %v7113_v48 = vor.u32 %v8033_v2, %v7112_v1  ;;  %v8021_v17 = vld [vmem:[#allocation8 + $0x374] sm:$0xf0] }
 0x219   :  { %v6905_v26 = vor.u32 %v7981_v15, %v6904_v12  ;;  %v7464_v2 = vld [vmem:[#allocation8 + $0x688] sm:$0xf]  ;;  %v8009_v31 = vld [vmem:[#allocation8 + $0x314] sm:$0xf0] }
 0x21a   :  { %4789 = vmatpush.bf16.msrb.mxu0 %v7157_v33  ;;  %v7410_v33 = vld [vmem:[#allocation8 + $0x630] sm:$0xf0] }
 0x21b   :  { %4802 = vmatpush.bf16.msrb.mxu1 %v7285_v39  ;;  %v7957_v39 = vld [vmem:[#allocation8 + $0x174] sm:$0xf0]  ;;  %v7413_v46 = vor.u32 %v8106_v45, %v7410_v33  ;;  %v7512_v45 = vld [vmem:[#allocation8 + $0x6e8] sm:$0xf] }
 0x21c   :  { %4814 = vmatpush.bf16.msrb.mxu2 %v7429_v30  ;;  %4775 = vmatpush.bf16.msra.mxu3 %v7045_v32  ;;  %v6809_v4 = vor.u32 %v7957_v39, %v6808_v36  ;;  %v7977_v30 = vld [vmem:[#allocation8 + $0x214] sm:$0xf0]  ;;  %v7080_v36 = vld [vmem:[#allocation8 + $0x388] sm:$0xf] }
 0x21d   :  { %v8133_v33 = vld [vmem:[#allocation8 + $0x6f4] sm:$0xf0]  ;;  %v6889_v39 = vor.u32 %v7977_v30, %v6888_v29  ;;  %v6744_v29 = vld [vmem:[#allocation8 + $0xe8] sm:$0xf] }
 0x21e   :  { %4790 = vmatpush.bf16.msrb.mxu0 %v7141_v44  ;;  %v8572_v49 = vpop.f32.mrf.mxu0  ;;  %v7016_v30 = vld [vmem:[#allocation8 + $0x308] sm:$0xf] }
 0x21f   :  { %4803 = vmatpush.bf16.msrb.mxu1 %v7269_v57  ;;  %v8574_v44 = vpop.f32.mrf.mxu1  ;;  %v7010_v57 = vld [vmem:[#allocation8 + $0x310] sm:$0xf0] }
 0x220   :  { %4815 = vmatpush.bf16.msrb.mxu2 %v7413_v46  ;;  %4776 = vmatpush.bf16.msra.mxu3 %v7029_v51  ;;  %v7013_v20 = vor.u32 %v8006_v56, %v7010_v57 }
 0x221   :  { %4791 = vmatmul.bf16.vlgmr.msrb.gmra.mxu0 %v8542_v55 }
 0x222   :  { %4835 = vmatpush.bf16.msra.mxu0 %v6873_v58  ;;  %4804 = vmatmul.bf16.vlgmr.msrb.gmra.mxu1 %v8562_v18  ;;  %v6937_v58 = vor.u32 %v7989_v47, %v6936_v50  ;;  %v7513_v50 = vor.u32 %v8133_v33, %v7512_v45  ;;  %v7368_v47 = vld [vmem:[#allocation8 + $0x5c8] sm:$0xf] }
 0x223   :  { %4848 = vmatpush.bf16.msra.mxu1 %v7001_v6  ;;  %v8148_v6 = vld [vmem:[#allocation7] sm:$0xff] }
 0x224   :  { %v586_v41 = vperm.slane %v8148_v6, 6  ;;  %4816 = vmatpush.bf16.msrb.mxu2 %v7397_v62  ;;  %4777 = vmatpush.bf16.msra.mxu3 %v7013_v20  ;;  %v7480_v6 = vld [vmem:[#allocation8 + $0x6a8] sm:$0xf] }
 0x225   :  { %v7048_v62 = vld [vmem:[#allocation8 + $0x348] sm:$0xf] }
 0x226   :  { %4836 = vmatpush.bf16.msra.mxu0 %v6857_v21  ;;  %v6921_v21 = vor.u32 %v7985_v0, %v6920_v38  ;;  %v3191_v10 = vadd.f32 %v8564_v8, %v586_v41  ;;  %v3218_v11 = vpop.f32.mrf.mxu0  ;;  %v8125_v41 = vld [vmem:[#allocation8 + $0x6b4] sm:$0xf0] }
 0x227   :  { %4849 = vmatpush.bf16.msra.mxu1 %v6985_v9  ;;  %v8576_v9 = vpop.f32.mrf.mxu2  ;;  %v8579_v34 = vpop.f32.mrf.mxu3  ;;  %v8017_v38 = vld [vmem:[#allocation8 + $0x354] sm:$0xf0] }
 0x228   :  { %4861 = vmatpush.bf16.msra.mxu2 %v7129_v25  ;;  %v3231_v22 = vpop.f32.mrf.mxu1  ;;  %v3204_v8 = vadd.f32 %v8566_v13, %v3191_v10  ;;  %v8097_v13 = vld [vmem:[#allocation8 + $0x5d4] sm:$0xf0]  ;;  %v7336_v25 = vld [vmem:[#allocation8 + $0x588] sm:$0xf]  ;;  %v7049_v1 = vor.u32 %v8017_v38, %v7048_v62 }
 0x229   :  { %v7369_v56 = vor.u32 %v8097_v13, %v7368_v47  ;;  %v8013_v10 = vld [vmem:[#allocation8 + $0x334] sm:$0xf0]  ;;  %v6712_v38 = vld [vmem:[#allocation8 + $0xa8] sm:$0xf] }
 0x22a   :  { %4837 = vmatpush.bf16.msra.mxu0 %v6841_v60  ;;  %v7096_v60 = vld [vmem:[#allocation8 + $0x3a8] sm:$0xf]  ;;  %v3217_v46 = vadd.f32 %v8572_v49, %v3204_v8  ;;  %v8093_v49 = vld [vmem:[#allocation8 + $0x5b4] sm:$0xf0] }
 0x22b   :  { %4850 = vmatpush.bf16.msra.mxu1 %v6969_v27  ;;  %v6760_v27 = vld [vmem:[#allocation8 + $0x108] sm:$0xf]  ;;  %v7097_v32 = vor.u32 %v8029_v24, %v7096_v60  ;;  %v7353_v0 = vor.u32 %v8093_v49, %v7352_v59  ;;  %v7033_v60 = vor.u32 %v8013_v10, %v7032_v5  ;;  %v7941_v8 = vld [vmem:[#allocation8 + $0xf4] sm:$0xf0]  ;;  %v7931_v10 = vld [vmem:[#allocation8 + $0xac] sm:$0xf] }
 0x22c   :  { %4862 = vmatpush.bf16.msra.mxu2 %v7113_v48  ;;  %v3230_v57 = vadd.f32 %v8574_v44, %v3217_v46  ;;  %v7481_v44 = vor.u32 %v8125_v41, %v7480_v6  ;;  %v7320_v48 = vld [vmem:[#allocation8 + $0x568] sm:$0xf]  ;;  %v7017_v46 = vor.u32 %v8009_v31, %v7016_v30  ;;  %v7937_v47 = vld [vmem:[#allocation8 + $0xd4] sm:$0xf0]  ;;  %v6698_v30 = vld [vmem:[#allocation8 + $0x98] sm:$0xf0] }
 0x22d   :  { %v7448_v24 = vld [vmem:[#allocation8 + $0x668] sm:$0xf]  ;;  %v8109_v41 = vld [vmem:[#allocation8 + $0x634] sm:$0xf0] }
 0x22e   :  { %4838 = vmatpush.bf16.msra.mxu0 %v6825_v35  ;;  %v6761_v35 = vor.u32 %v7945_v28, %v6760_v27  ;;  %v3243_v20 = vadd.f32 %v8576_v9, %v3230_v57  ;;  %v8085_v9 = vld [vmem:[#allocation8 + $0x574] sm:$0xf0]  ;;  %v6730_v57 = vld [vmem:[#allocation8 + $0xd8] sm:$0xf0]  ;;  %v7416_v6 = vld [vmem:[#allocation8 + $0x628] sm:$0xf] }
 0x22f   :  { %4851 = vmatpush.bf16.msra.mxu1 %v6953_v61  ;;  %v8025_v61 = vld [vmem:[#allocation8 + $0x394] sm:$0xf0]  ;;  %v3244_v43 = vpop.f32.mrf.mxu2  ;;  %v3257_v51 = vpop.f32.mrf.mxu3  ;;  %v7321_v7 = vor.u32 %v8085_v9, %v7320_v48  ;;  %v7002_v48 = vld [vmem:[#allocation8 + $0x2f8] sm:$0xf0]  ;;  %v8035_v9 = vld [vmem:[#allocation8 + $0x3ec] sm:$0xf] }
 0x230   :  { %4863 = vmatpush.bf16.msra.mxu2 %v7097_v32  ;;  %v7081_v37 = vor.u32 %v8025_v61, %v7080_v36  ;;  %v3256_v12 = vadd.f32 %v8579_v34, %v3243_v20  ;;  %v7304_v34 = vld [vmem:[#allocation8 + $0x548] sm:$0xf]  ;;  %v8081_v32 = vld [vmem:[#allocation8 + $0x554] sm:$0xf0]  ;;  %v6746_v36 = vld [vmem:[#allocation8 + $0xf8] sm:$0xf0]  ;;  %v6745_v61 = vor.u32 %v7941_v8, %v6744_v29 }
 0x231   :  { %v7305_v51 = vor.u32 %v8081_v32, %v7304_v34  ;;  %v8105_v5 = vld [vmem:[#allocation8 + $0x614] sm:$0xf0]  ;;  %v7927_v8 = vld [vmem:[#allocation8 + $0x8c] sm:$0xf] }
 0x232   :  { %4839 = vmatpush.bf16.msra.mxu0 %v6809_v4  ;;  %v7064_v4 = vld [vmem:[#allocation8 + $0x368] sm:$0xf]  ;;  %v7999_v32 = vld [vmem:[#allocation8 + $0x2cc] sm:$0xf] }
 0x233   :  { %4852 = vmatpush.bf16.msra.mxu1 %v6937_v58  ;;  %v7497_v58 = vor.u32 %v8129_v53, %v7496_v52  ;;  %v7065_v40 = vor.u32 %v8021_v17, %v7064_v4  ;;  %v7288_v52 = vld [vmem:[#allocation8 + $0x528] sm:$0xf]  ;;  %v8077_v17 = vld [vmem:[#allocation8 + $0x534] sm:$0xf0] }
 0x234   :  { %4864 = vmatpush.bf16.msra.mxu2 %v7081_v37 }
 0x236   :  { %4840 = vmatpush.bf16.msra.mxu0 %v6793_v14  ;;  %v8089_v14 = vld [vmem:[#allocation8 + $0x594] sm:$0xf0] }
 0x237   :  { %4853 = vmatpush.bf16.msra.mxu1 %v6921_v21  ;;  %v8121_v21 = vld [vmem:[#allocation8 + $0x694] sm:$0xf0]  ;;  %v7337_v11 = vor.u32 %v8089_v14, %v7336_v25  ;;  %v7272_v14 = vld [vmem:[#allocation8 + $0x508] sm:$0xf] }
 0x238   :  { %4865 = vmatpush.bf16.msra.mxu2 %v7065_v40  ;;  %v7465_v15 = vor.u32 %v8121_v21, %v7464_v2  ;;  %v7400_v2 = vld [vmem:[#allocation8 + $0x608] sm:$0xf]  ;;  %v7417_v21 = vor.u32 %v8109_v41, %v7416_v6  ;;  %v7991_v6 = vld [vmem:[#allocation8 + $0x28c] sm:$0xf]  ;;  %v6954_v41 = vld [vmem:[#allocation8 + $0x298] sm:$0xf0] }
 0x23a   :  { %4841 = vmatpush.bf16.msra.mxu0 %v6777_v63  ;;  %v3512_v63 = vperm.slane %v8587_v3, 0 }
 0x23b   :  { %4854 = vmatpush.bf16.msra.mxu1 %v6905_v26  ;;  %v8117_v26 = vld [vmem:[#allocation8 + $0x674] sm:$0xf0] }
 0x23c   :  { %4866 = vmatpush.bf16.msra.mxu2 %v7049_v1  ;;  %v7449_v33 = vor.u32 %v8117_v26, %v7448_v24  ;;  %v8073_v1 = vld [vmem:[#allocation8 + $0x514] sm:$0xf0] }
 0x23d   :  { %v7273_v24 = vor.u32 %v8073_v1, %v7272_v14  ;;  %v6957_v14 = vor.u32 %v7991_v6, %v6954_v41  ;;  %v7915_v1 = vld [vmem:[#allocation8 + $0x2c] sm:$0xf]  ;;  %v6890_v41 = vld [vmem:[#allocation8 + $0x218] sm:$0xf0] }
 0x23e   :  { %4842 = vmatpush.bf16.msra.mxu0 %v6761_v35  ;;  %v3268_v22 = vpop.f32.mrf.mxu0  ;;  %v7939_v35 = vld [vmem:[#allocation8 + $0xec] sm:$0xf] }
 0x23f   :  { %4855 = vmatpush.bf16.msra.mxu1 %v6889_v39  ;;  %v3269_v27 = vadd.f32 %v3268_v22, %v3256_v12  ;;  %v4649_v28 = vpop.f32.mrf.mxu1  ;;  %v7432_v39 = vld [vmem:[#allocation8 + $0x648] sm:$0xf]  ;;  %v6749_v37 = vor.u32 %v7939_v35, %v6746_v36  ;;  %v7130_v22 = vld [vmem:[#allocation8 + $0x3f8] sm:$0xf0]  ;;  %v7975_v6 = vld [vmem:[#allocation8 + $0x20c] sm:$0xf] }
 0x240   :  { %4867 = vmatpush.bf16.msra.mxu2 %v7033_v60  ;;  %v4650_v13 = vadd.f32 %v4649_v28, %v3512_v63  ;;  %v6696_v63 = vld [vmem:[#allocation8 + $0x88] sm:$0xf]  ;;  %v7929_v60 = vld [vmem:[#allocation8 + $0x94] sm:$0xf0]  ;;  %v7401_v28 = vor.u32 %v8105_v5, %v7400_v2  ;;  %v7133_v31 = vor.u32 %v8035_v9, %v7130_v22  ;;  %v7114_v35 = vld [vmem:[#allocation8 + $0x3d8] sm:$0xf0] }
 0x241   :  { %4843 = vmatmul.bf16.vlgmr.msra.gmra.mxu0 %v8526_v16  ;;  %v3278_v45 = vmax.f32 %v3269_v27, 0.0  ;;  %v6697_v34 = vor.u32 %v7929_v60, %v6696_v63  ;;  %v6680_v36 = vld [vmem:[#allocation8 + $0x68] sm:$0xf]  ;;  %v6650_v2 = vld [vmem:[#allocation8 + $0x38] sm:$0xf0] }
 0x242   :  { %4887 = vmatpush.bf16.msrb.mxu0 %v7385_v42  ;;  %4856 = vmatmul.bf16.vlgmr.msra.gmra.mxu1 %v8528_v23  ;;  %v8113_v42 = vld [vmem:[#allocation8 + $0x654] sm:$0xf0]  ;;  %v6653_v63 = vor.u32 %v7915_v1, %v6650_v2  ;;  %v7256_v60 = vld [vmem:[#allocation8 + $0x4e8] sm:$0xf]  ;;  %v8131_v1 = vld [vmem:[#allocation8 + $0x6ec] sm:$0xf] }
 0x243   :  { %4900 = vmatpush.bf16.msrb.mxu1 %v7513_v50  ;;  %v8591_v43 = vpack.c.bf16 %v3278_v45, %v3278_v45  ;;  %v6728_v50 = vld [vmem:[#allocation8 + $0xc8] sm:$0xf]  ;;  %v7433_v4 = vor.u32 %v8113_v42, %v7432_v39  ;;  %v6986_v45 = vld [vmem:[#allocation8 + $0x2d8] sm:$0xf0]  ;;  %v6701_v39 = vor.u32 %v7927_v8, %v6698_v30  ;;  %v7913_v9 = vld [vmem:[#allocation8 + $0x14] sm:$0xf0] }
 0x244   :  { %v6729_v40 = vor.u32 %v7937_v47, %v6728_v50  ;;  %4868 = vmatpush.bf16.msra.mxu2 %v7017_v46  ;;  %v6989_v42 = vor.u32 %v7999_v32, %v6986_v45  ;;  %v7923_v46 = vld [vmem:[#allocation8 + $0x6c] sm:$0xf]  ;;  %v6682_v50 = vld [vmem:[#allocation8 + $0x78] sm:$0xf0] }
 0x245   :  { %4726 = vmatmul.bf16.vlgmr.msrb.gmra.mxu3 %v8591_v43  ;;  %4817 = vmatmul.bf16.vlgmr.msrb.gmra.mxu2 %v8591_v43  ;;  %v6634_v8 = vld [vmem:[#allocation8 + $0x18] sm:$0xf0]  ;;  %v7983_v30 = vld [vmem:[#allocation8 + $0x24c] sm:$0xf] }
 0x246   :  { %4888 = vmatpush.bf16.msrb.mxu0 %v7369_v56  ;;  %v4662_v53 = vpop.f32.mrf.mxu2  ;;  %v7935_v56 = vld [vmem:[#allocation8 + $0xcc] sm:$0xf]  ;;  %4822 = vmatpush.bf16.msrb.mxu3 %v6745_v61  ;;  %v3270_v49 = vpop.f32.mrf.mxu0  ;;  %v7925_v61 = vld [vmem:[#allocation8 + $0x74] sm:$0xf0]  ;;  %v7258_v45 = vld [vmem:[#allocation8 + $0x4f8] sm:$0xf0] }
 0x247   :  { %4901 = vmatpush.bf16.msrb.mxu1 %v7497_v58  ;;  %v4663_v58 = vadd.f32 %v4662_v53, %v4650_v13  ;;  %v4675_v59 = vpop.f32.mrf.mxu3  ;;  %v4651_v62 = vpop.f32.mrf.mxu1  ;;  %v6733_v25 = vor.u32 %v7935_v56, %v6730_v57  ;;  %v6681_v13 = vor.u32 %v7925_v61, %v6680_v36  ;;  %v7098_v53 = vld [vmem:[#allocation8 + $0x3b8] sm:$0xf0]  ;;  %v6685_v56 = vor.u32 %v7923_v46, %v6682_v50  ;;  %v8067_v32 = vld [vmem:[#allocation8 + $0x4ec] sm:$0xf] }
 0x248   :  { %4913 = vmatpush.bf16.msrb.mxu2 %v6749_v37  ;;  %v6970_v37 = vld [vmem:[#allocation8 + $0x2b8] sm:$0xf0]  ;;  %v8023_v62 = vld [vmem:[#allocation8 + $0x38c] sm:$0xf]  ;;  %v7261_v50 = vor.u32 %v8067_v32, %v7258_v45 }
 0x249   :  { %v8595_v20 = vadd.f32 %v4675_v59, %v4663_v58  ;;  %v7919_v58 = vld [vmem:[#allocation8 + $0x4c] sm:$0xf]  ;;  %v6666_v59 = vld [vmem:[#allocation8 + $0x58] sm:$0xf0] }
 0x24a   :  { %4889 = vmatpush.bf16.msrb.mxu0 %v7353_v0  ;;  %v7933_v0 = vld [vmem:[#allocation8 + $0xb4] sm:$0xf0]  ;;  %4823 = vmatpush.bf16.msrb.mxu3 %v6729_v40  ;;  %v8015_v36 = vld [vmem:[#allocation8 + $0x34c] sm:$0xf]  ;;  %v7050_v61 = vld [vmem:[#allocation8 + $0x358] sm:$0xf0] }
 0x24b   :  { %4902 = vmatpush.bf16.msrb.mxu1 %v7481_v44  ;;  %v7289_v44 = vor.u32 %v8077_v17, %v7288_v52  ;;  %v6713_v12 = vor.u32 %v7933_v0, %v6712_v38  ;;  %v8027_v52 = vld [vmem:[#allocation8 + $0x3ac] sm:$0xf]  ;;  %v7921_v17 = vld [vmem:[#allocation8 + $0x54] sm:$0xf0]  ;;  %v7082_v38 = vld [vmem:[#allocation8 + $0x398] sm:$0xf0] }
 0x24c   :  { %4914 = vmatpush.bf16.msrb.mxu2 %v6733_v25  ;;  %v7101_v49 = vor.u32 %v8027_v52, %v7098_v53  ;;  %v6648_v0 = vld [vmem:[#allocation8 + $0x28] sm:$0xf]  ;;  %v6669_v25 = vor.u32 %v7919_v58, %v6666_v59  ;;  %v7242_v52 = vld [vmem:[#allocation8 + $0x4d8] sm:$0xf0]  ;;  %v8061_v58 = vld [vmem:[#allocation8 + $0x4b4] sm:$0xf0] }
 0x24d   :  { %v7514_v2 = vld [vmem:[#allocation8 + $0x6f8] sm:$0xf0] }
 0x24e   :  { %4890 = vmatpush.bf16.msrb.mxu0 %v7337_v11  ;;  %v6714_v11 = vld [vmem:[#allocation8 + $0xb8] sm:$0xf0]  ;;  %v4664_v27 = vpop.f32.mrf.mxu2  ;;  %4824 = vmatpush.bf16.msrb.mxu3 %v6713_v12  ;;  %v8019_v12 = vld [vmem:[#allocation8 + $0x36c] sm:$0xf] }
 0x24f   :  { %4903 = vmatpush.bf16.msrb.mxu1 %v7465_v15  ;;  %v8003_v15 = vld [vmem:[#allocation8 + $0x2ec] sm:$0xf]  ;;  %v6717_v26 = vor.u32 %v7931_v10, %v6714_v11  ;;  %v6938_v11 = vld [vmem:[#allocation8 + $0x278] sm:$0xf0] }
 0x250   :  { %v7005_v29 = vor.u32 %v8003_v15, %v7002_v48  ;;  %v7987_v10 = vld [vmem:[#allocation8 + $0x26c] sm:$0xf]  ;;  %v7066_v15 = vld [vmem:[#allocation8 + $0x378] sm:$0xf0]  ;;  %v6632_v48 = vld [vmem:[#allocation8 + $0x8] sm:$0xf] }
 0x251   :  { %4915 = vmatpush.bf16.msrb.mxu2 %v6717_v26 }
 0x252   :  { %4891 = vmatpush.bf16.msrb.mxu0 %v7321_v7  ;;  %v4677_v7 = vpop.f32.mrf.mxu3  ;;  %4825 = vmatpush.bf16.msrb.mxu3 %v6697_v34  ;;  %v6922_v34 = vld [vmem:[#allocation8 + $0x258] sm:$0xf0] }
 0x253   :  { %4904 = vmatpush.bf16.msrb.mxu1 %v7449_v33  ;;  %v8031_v33 = vld [vmem:[#allocation8 + $0x3cc] sm:$0xf]  ;;  %v7069_v7 = vor.u32 %v8019_v12, %v7066_v15  ;;  %v6925_v46 = vor.u32 %v7983_v30, %v6922_v34  ;;  %v7517_v15 = vor.u32 %v8131_v1, %v7514_v2  ;;  %v8049_v34 = vld [vmem:[#allocation8 + $0x454] sm:$0xf0]  ;;  %v6858_v2 = vld [vmem:[#allocation8 + $0x1d8] sm:$0xf0] }
 0x254   :  { %v7117_v47 = vor.u32 %v8031_v33, %v7114_v35  ;;  %v8123_v30 = vld [vmem:[#allocation8 + $0x6ac] sm:$0xf] }
 0x255   :  { %4916 = vmatpush.bf16.msrb.mxu2 %v6701_v39  ;;  %4778 = vmatmul.bf16.vlgmr.msra.gmra.mxu3 %v8540_v54  ;;  %v7240_v39 = vld [vmem:[#allocation8 + $0x4c8] sm:$0xf]  ;;  %v7967_v1 = vld [vmem:[#allocation8 + $0x1cc] sm:$0xf] }
 0x256   :  { %4892 = vmatpush.bf16.msrb.mxu0 %v7305_v51  ;;  %v7995_v51 = vld [vmem:[#allocation8 + $0x2ac] sm:$0xf]  ;;  %4826 = vmatpush.bf16.msrb.mxu3 %v6681_v13  ;;  %v7053_v13 = vor.u32 %v8015_v36, %v7050_v61  ;;  %v7178_v36 = vld [vmem:[#allocation8 + $0x458] sm:$0xf0] }
 0x257   :  { %4905 = vmatpush.bf16.msrb.mxu1 %v7433_v4  ;;  %v6664_v4 = vld [vmem:[#allocation8 + $0x48] sm:$0xf]  ;;  %v6973_v57 = vor.u32 %v7995_v51, %v6970_v37  ;;  %4869 = vmatmul.bf16.vlgmr.msra.gmra.mxu2 %v8540_v54  ;;  %v6906_v51 = vld [vmem:[#allocation8 + $0x238] sm:$0xf0]  ;;  %v8063_v37 = vld [vmem:[#allocation8 + $0x4cc] sm:$0xf] }
 0x258   :  { %v6665_v40 = vor.u32 %v7921_v17, %v6664_v4  ;;  %v8011_v4 = vld [vmem:[#allocation8 + $0x32c] sm:$0xf]  ;;  %v7034_v17 = vld [vmem:[#allocation8 + $0x338] sm:$0xf0] }
 0x259   :  { %4917 = vmatpush.bf16.msrb.mxu2 %v6685_v56 }
 0x25a   :  { %4893 = vmatpush.bf16.msrb.mxu0 %v7289_v44  ;;  %v7917_v44 = vld [vmem:[#allocation8 + $0x34] sm:$0xf0]  ;;  %4827 = vmatpush.bf16.msrb.mxu3 %v6665_v40  ;;  %v7245_v40 = vor.u32 %v8063_v37, %v7242_v52  ;;  %v8115_v37 = vld [vmem:[#allocation8 + $0x66c] sm:$0xf]  ;;  %v7450_v52 = vld [vmem:[#allocation8 + $0x678] sm:$0xf0] }
 0x25b   :  { %4906 = vmatpush.bf16.msrb.mxu1 %v7417_v21  ;;  %v7085_v21 = vor.u32 %v8023_v62, %v7082_v38  ;;  %v6649_v5 = vor.u32 %v7917_v44, %v6648_v0  ;;  %v7037_v62 = vor.u32 %v8011_v4, %v7034_v17  ;;  %v8007_v38 = vld [vmem:[#allocation8 + $0x30c] sm:$0xf]  ;;  %v7226_v44 = vld [vmem:[#allocation8 + $0x4b8] sm:$0xf0]  ;;  %v8041_v4 = vld [vmem:[#allocation8 + $0x414] sm:$0xf0] }
 0x25c   :  { %v8059_v0 = vld [vmem:[#allocation8 + $0x4ac] sm:$0xf] }
 0x25d   :  { %4918 = vmatpush.bf16.msrb.mxu2 %v6669_v25 }
 0x25e   :  { %4894 = vmatpush.bf16.msrb.mxu0 %v7273_v24  ;;  %v4688_v22 = vpop.f32.mrf.mxu0  ;;  %v8069_v24 = vld [vmem:[#allocation8 + $0x4f4] sm:$0xf0]  ;;  %4828 = vmatpush.bf16.msrb.mxu3 %v6649_v5 }
 0x25f   :  { %4907 = vmatpush.bf16.msrb.mxu1 %v7401_v28  ;;  %v4689_v26 = vadd.f32 %v4688_v22, %v8595_v20  ;;  %v4701_v27 = vpop.f32.mrf.mxu1  ;;  %v6941_v28 = vor.u32 %v7987_v10, %v6938_v11  ;;  %v7257_v35 = vor.u32 %v8069_v24, %v7256_v60  ;;  %v8057_v5 = vld [vmem:[#allocation8 + $0x494] sm:$0xf0]  ;;  %v6893_v10 = vor.u32 %v7975_v6, %v6890_v41  ;;  %v7498_v60 = vld [vmem:[#allocation8 + $0x6d8] sm:$0xf0]  ;;  %v8039_v6 = vld [vmem:[#allocation8 + $0x40c] sm:$0xf] }
 0x260   :  { %v7229_v11 = vor.u32 %v8059_v0, %v7226_v44  ;;  %v8053_v24 = vld [vmem:[#allocation8 + $0x474] sm:$0xf0]  ;;  %v7146_v41 = vld [vmem:[#allocation8 + $0x418] sm:$0xf0] }
 0x261   :  { %4895 = vmatmul.bf16.vlgmr.msrb.gmra.mxu0 %v8562_v18  ;;  %v8602_v33 = vadd.f32 %v4701_v27, %v4689_v26  ;;  %4919 = vmatpush.bf16.msrb.mxu2 %v6653_v63  ;;  %v8127_v63 = vld [vmem:[#allocation8 + $0x6cc] sm:$0xf]  ;;  %v7434_v0 = vld [vmem:[#allocation8 + $0x658] sm:$0xf0] }
 0x262   :  { %4939 = vmatpush.bf16.msra.mxu0 %v7005_v29  ;;  %4908 = vmatmul.bf16.vlgmr.msrb.gmra.mxu1 %v8591_v43  ;;  %v7911_v29 = vld [vmem:[#allocation8 + $0xc] sm:$0xf]  ;;  %v7501_v27 = vor.u32 %v8127_v63, %v7498_v60  ;;  %v7402_v60 = vld [vmem:[#allocation8 + $0x618] sm:$0xf0] }
 0x263   :  { %4952 = vmatpush.bf16.msra.mxu1 %v7133_v31  ;;  %v6633_v31 = vor.u32 %v7913_v9, %v6632_v48  ;;  %v6637_v20 = vor.u32 %v7911_v29, %v6634_v8  ;;  %v8055_v48 = vld [vmem:[#allocation8 + $0x48c] sm:$0xf]  ;;  %v7210_v9 = vld [vmem:[#allocation8 + $0x498] sm:$0xf0] }
 0x264   :  { %v7213_v26 = vor.u32 %v8055_v48, %v7210_v9  ;;  %v7194_v29 = vld [vmem:[#allocation8 + $0x478] sm:$0xf0]  ;;  %v8103_v63 = vld [vmem:[#allocation8 + $0x60c] sm:$0xf] }
 0x265   :  { %4829 = vmatpush.bf16.msrb.mxu3 %v6633_v31  ;;  %4920 = vmatpush.bf16.msrb.mxu2 %v6637_v20  ;;  %v7176_v31 = vld [vmem:[#allocation8 + $0x448] sm:$0xf]  ;;  %v8119_v20 = vld [vmem:[#allocation8 + $0x68c] sm:$0xf]  ;;  %v6842_v48 = vld [vmem:[#allocation8 + $0x1b8] sm:$0xf0] }
 0x266   :  { %4940 = vmatpush.bf16.msra.mxu0 %v6989_v42  ;;  %v8065_v42 = vld [vmem:[#allocation8 + $0x4d4] sm:$0xf0]  ;;  %v4690_v56 = vpop.f32.mrf.mxu0  ;;  %v7177_v61 = vor.u32 %v8049_v34, %v7176_v31  ;;  %v6794_v31 = vld [vmem:[#allocation8 + $0x158] sm:$0xf0] }
 0x267   :  { %4953 = vmatpush.bf16.msra.mxu1 %v7117_v47  ;;  %v7979_v47 = vld [vmem:[#allocation8 + $0x22c] sm:$0xf]  ;;  %v7241_v53 = vor.u32 %v8065_v42, %v7240_v39  ;;  %v4703_v59 = vpop.f32.mrf.mxu1  ;;  %v7466_v39 = vld [vmem:[#allocation8 + $0x698] sm:$0xf0]  ;;  %v7160_v42 = vld [vmem:[#allocation8 + $0x428] sm:$0xf] }
 0x268   :  { %4830 = vmatmul.bf16.vlgmr.msrb.gmra.mxu3 %v8524_v19  ;;  %4921 = vmatmul.bf16.vlgmr.msrb.gmra.mxu2 %v8524_v19  ;;  %v7192_v19 = vld [vmem:[#allocation8 + $0x468] sm:$0xf] }
 0x269   :  { %4874 = vmatpush.bf16.msra.mxu3 %v7257_v35  ;;  %4965 = vmatpush.bf16.msra.mxu2 %v7261_v50  ;;  %v7193_v8 = vor.u32 %v8053_v24, %v7192_v19  ;;  %v8047_v35 = vld [vmem:[#allocation8 + $0x44c] sm:$0xf] }
 0x26a   :  { %4941 = vmatpush.bf16.msra.mxu0 %v6973_v57  ;;  %v7224_v57 = vld [vmem:[#allocation8 + $0x4a8] sm:$0xf]  ;;  %v7181_v50 = vor.u32 %v8047_v35, %v7178_v36  ;;  %v7959_v24 = vld [vmem:[#allocation8 + $0x18c] sm:$0xf]  ;;  %v6778_v35 = vld [vmem:[#allocation8 + $0x138] sm:$0xf0] }
 0x26b   :  { %4954 = vmatpush.bf16.msra.mxu1 %v7101_v49  ;;  %v6909_v49 = vor.u32 %v7979_v47, %v6906_v51  ;;  %v7225_v25 = vor.u32 %v8061_v58, %v7224_v57  ;;  %v7469_v47 = vor.u32 %v8119_v20, %v7466_v39  ;;  %v7971_v57 = vld [vmem:[#allocation8 + $0x1ec] sm:$0xf]  ;;  %v6874_v58 = vld [vmem:[#allocation8 + $0x1f8] sm:$0xf0] }
 0x26c   :  { %v6762_v20 = vld [vmem:[#allocation8 + $0x118] sm:$0xf0] }
 0x26d   :  { %4875 = vmatpush.bf16.msra.mxu3 %v7241_v53  ;;  %4966 = vmatpush.bf16.msra.mxu2 %v7245_v40  ;;  %v7144_v53 = vld [vmem:[#allocation8 + $0x408] sm:$0xf]  ;;  %v7453_v40 = vor.u32 %v8115_v37, %v7450_v52  ;;  %v8091_v37 = vld [vmem:[#allocation8 + $0x5ac] sm:$0xf]  ;;  %v7354_v52 = vld [vmem:[#allocation8 + $0x5b8] sm:$0xf0] }
 0x26e   :  { %4942 = vmatpush.bf16.msra.mxu0 %v6957_v14  ;;  %v7018_v14 = vld [vmem:[#allocation8 + $0x318] sm:$0xf0] }
 0x26f   :  { %4955 = vmatpush.bf16.msra.mxu1 %v7085_v21  ;;  %v7208_v21 = vld [vmem:[#allocation8 + $0x488] sm:$0xf]  ;;  %v7021_v12 = vor.u32 %v8007_v38, %v7018_v14  ;;  %v8111_v38 = vld [vmem:[#allocation8 + $0x64c] sm:$0xf]  ;;  %v7149_v14 = vor.u32 %v8039_v6, %v7146_v41 }
 0x270   :  { %v7209_v22 = vor.u32 %v8057_v5, %v7208_v21  ;;  %v7437_v21 = vor.u32 %v8111_v38, %v7434_v0  ;;  %v8107_v5 = vld [vmem:[#allocation8 + $0x62c] sm:$0xf]  ;;  %v7306_v38 = vld [vmem:[#allocation8 + $0x558] sm:$0xf0] }
 0x271   :  { %4876 = vmatpush.bf16.msra.mxu3 %v7225_v25  ;;  %4967 = vmatpush.bf16.msra.mxu2 %v7229_v11  ;;  %v6877_v25 = vor.u32 %v7971_v57, %v6874_v58  ;;  %v6861_v11 = vor.u32 %v7967_v1, %v6858_v2  ;;  %v8087_v57 = vld [vmem:[#allocation8 + $0x58c] sm:$0xf]  ;;  %v7338_v58 = vld [vmem:[#allocation8 + $0x598] sm:$0xf0] }
 0x272   :  { %4943 = vmatpush.bf16.msra.mxu0 %v6941_v28  ;;  %v8051_v28 = vld [vmem:[#allocation8 + $0x46c] sm:$0xf]  ;;  %v7274_v1 = vld [vmem:[#allocation8 + $0x518] sm:$0xf0] }
 0x273   :  { %4956 = vmatpush.bf16.msra.mxu1 %v7069_v7  ;;  %v7482_v7 = vld [vmem:[#allocation8 + $0x6b8] sm:$0xf0]  ;;  %v7197_v32 = vor.u32 %v8051_v28, %v7194_v29  ;;  %v7955_v29 = vld [vmem:[#allocation8 + $0x16c] sm:$0xf] }
 0x274   :  { %v7485_v45 = vor.u32 %v8123_v30, %v7482_v7  ;;  %v7951_v7 = vld [vmem:[#allocation8 + $0x14c] sm:$0xf] }
 0x275   :  { %4877 = vmatpush.bf16.msra.mxu3 %v7209_v22  ;;  %4968 = vmatpush.bf16.msra.mxu2 %v7213_v26  ;;  %v6826_v26 = vld [vmem:[#allocation8 + $0x198] sm:$0xf0] }
 0x276   :  { %4944 = vmatpush.bf16.msra.mxu0 %v6925_v46  ;;  %v8045_v46 = vld [vmem:[#allocation8 + $0x434] sm:$0xf0]  ;;  %v6829_v28 = vor.u32 %v7959_v24, %v6826_v26 }
 0x277   :  { %4957 = vmatpush.bf16.msra.mxu1 %v7053_v13  ;;  %v8043_v13 = vld [vmem:[#allocation8 + $0x42c] sm:$0xf]  ;;  %v7161_v51 = vor.u32 %v8045_v46, %v7160_v42  ;;  %v7386_v46 = vld [vmem:[#allocation8 + $0x5f8] sm:$0xf0] }
 0x278   :  { %v8099_v42 = vld [vmem:[#allocation8 + $0x5ec] sm:$0xf] }
 0x279   :  { %4878 = vmatpush.bf16.msra.mxu3 %v7193_v8  ;;  %4969 = vmatpush.bf16.msra.mxu2 %v7197_v32  ;;  %v6810_v8 = vld [vmem:[#allocation8 + $0x178] sm:$0xf0]  ;;  %v6797_v32 = vor.u32 %v7951_v7, %v6794_v31 }
 0x27a   :  { %4945 = vmatpush.bf16.msra.mxu0 %v6909_v49  ;;  %v6813_v30 = vor.u32 %v7955_v29, %v6810_v8  ;;  %v5008_v8 = vld [vmem:[#allocation11] sm:$0xf] }
 0x27b   :  { %4958 = vmatpush.bf16.msra.mxu1 %v7037_v62  ;;  %v7145_v62 = vor.u32 %v8041_v4, %v7144_v53  ;;  %v5010_v31 = vperm.slane %v5008_v8, 0 }
 0x27d   :  { %4879 = vmatpush.bf16.msra.mxu3 %v7177_v61  ;;  %4970 = vmatpush.bf16.msra.mxu2 %v7181_v50  ;;  %v7943_v61 = vld [vmem:[#allocation8 + $0x10c] sm:$0xf] }
 0x27e   :  { %4946 = vmatpush.bf16.msra.mxu0 %v6893_v10  ;;  %v4740_v17 = vpop.f32.mrf.mxu0  ;;  %v7418_v10 = vld [vmem:[#allocation8 + $0x638] sm:$0xf0] }
 0x27f   :  { %4959 = vmatpush.bf16.msra.mxu1 %v7021_v12  ;;  %v4753_v49 = vpop.f32.mrf.mxu1  ;;  %v7421_v22 = vor.u32 %v8107_v5, %v7418_v10 }
 0x281   :  { %4947 = vmatmul.bf16.vlgmr.msra.gmra.mxu0 %v8528_v23  ;;  %v3513_v23 = vperm.slane %v8587_v3, 1  ;;  %4880 = vmatpush.bf16.msra.mxu3 %v7161_v51 }
 0x282   :  { %4991 = vmatpush.bf16.msrb.mxu0 %v7517_v15  ;;  %4960 = vmatmul.bf16.vlgmr.msra.gmra.mxu1 %v8540_v54  ;;  %v7162_v54 = vld [vmem:[#allocation8 + $0x438] sm:$0xf0]  ;;  %v7963_v15 = vld [vmem:[#allocation8 + $0x1ac] sm:$0xf] }
 0x283   :  { %v7165_v56 = vor.u32 %v8043_v13, %v7162_v54  ;;  %v4741_v59 = vadd.f32 %v4740_v17, %v3513_v23  ;;  %v6845_v19 = vor.u32 %v7963_v15, %v6842_v48  ;;  %v8095_v13 = vld [vmem:[#allocation8 + $0x5cc] sm:$0xf]  ;;  %v7370_v54 = vld [vmem:[#allocation8 + $0x5d8] sm:$0xf0] }
 0x285   :  { %v8609_v44 = vadd.f32 %v4753_v49, %v4741_v59  ;;  %4971 = vmatpush.bf16.msra.mxu2 %v7165_v56  ;;  %4881 = vmatpush.bf16.msra.mxu3 %v7145_v62  ;;  %v7357_v56 = vor.u32 %v8091_v37, %v7354_v52  ;;  %v7341_v59 = vor.u32 %v8087_v57, %v7338_v58  ;;  %v8083_v49 = vld [vmem:[#allocation8 + $0x56c] sm:$0xf]  ;;  %v5012_v58 = vperm.slane %v5008_v8, 2 }
 0x286   :  { %4992 = vmatpush.bf16.msrb.mxu0 %v7501_v27  ;;  %v4742_v12 = vpop.f32.mrf.mxu0  ;;  %v7405_v27 = vor.u32 %v8103_v63, %v7402_v60  ;;  %v8079_v62 = vld [vmem:[#allocation8 + $0x54c] sm:$0xf] }
 0x287   :  { %v4755_v9 = vpop.f32.mrf.mxu1  ;;  %v7309_v0 = vor.u32 %v8079_v62, %v7306_v38  ;;  %v3515_v38 = vperm.slane %v8587_v3, 3 }
 0x288   :  { %4882 = vmatmul.bf16.vlgmr.msra.gmra.mxu3 %v8542_v55 }
 0x289   :  { %4926 = vmatpush.bf16.msrb.mxu3 %v6877_v25  ;;  %4972 = vmatpush.bf16.msra.mxu2 %v7149_v14  ;;  %v8075_v25 = vld [vmem:[#allocation8 + $0x52c] sm:$0xf] }
 0x28a   :  { %4993 = vmatpush.bf16.msrb.mxu0 %v7485_v45  ;;  %v4714_v34 = vpop.f32.mrf.mxu2  ;;  %v7947_v45 = vld [vmem:[#allocation8 + $0x12c] sm:$0xf] }
 0x28b   :  { %v6781_v36 = vor.u32 %v7947_v45, %v6778_v35 }
 0x28c   :  { %4973 = vmatmul.bf16.vlgmr.msra.gmra.mxu2 %v8542_v55  ;;  %v4715_v55 = vadd.f32 %v4714_v34, %v8602_v33  ;;  %v7373_v33 = vor.u32 %v8095_v13, %v7370_v54 }
 0x28d   :  { %4927 = vmatpush.bf16.msrb.mxu3 %v6861_v11 }
 0x28e   :  { %4994 = vmatpush.bf16.msrb.mxu0 %v7469_v47  ;;  %v7389_v47 = vor.u32 %v8099_v42, %v7386_v46 }
 0x291   :  { %4928 = vmatpush.bf16.msrb.mxu3 %v6845_v19 }
 0x292   :  { %4995 = vmatpush.bf16.msrb.mxu0 %v7453_v40  ;;  %v4716_v23 = vpop.f32.mrf.mxu2  ;;  %v7322_v40 = vld [vmem:[#allocation8 + $0x578] sm:$0xf0] }
 0x293   :  { %v7325_v41 = vor.u32 %v8083_v49, %v7322_v40 }
 0x295   :  { %4929 = vmatpush.bf16.msrb.mxu3 %v6829_v28 }
 0x296   :  { %4996 = vmatpush.bf16.msrb.mxu0 %v7437_v21 }
 0x299   :  { %4930 = vmatpush.bf16.msrb.mxu3 %v6813_v30 }
 0x29a   :  { %4997 = vmatpush.bf16.msrb.mxu0 %v7421_v22  ;;  %v4766_v4 = vpop.f32.mrf.mxu2 }
 0x29b   :  { %v4767_v17 = vadd.f32 %v4766_v4, %v8609_v44  ;;  %v8071_v44 = vld [vmem:[#allocation8 + $0x50c] sm:$0xf] }
 0x29c   :  { %v7277_v5 = vor.u32 %v8071_v44, %v7274_v1 }
 0x29d   :  { %4931 = vmatpush.bf16.msrb.mxu3 %v6797_v32  ;;  %v5011_v32 = vperm.slane %v5008_v8, 1 }
 0x29e   :  { %4998 = vmatpush.bf16.msrb.mxu0 %v7405_v27  ;;  %v4792_v39 = vpop.f32.mrf.mxu0 }
 0x29f   :  { %v4805_v50 = vpop.f32.mrf.mxu1 }
 0x2a1   :  { %4999 = vmatmul.bf16.vlgmr.msrb.gmra.mxu0 %v8591_v43  ;;  %4932 = vmatpush.bf16.msrb.mxu3 %v6781_v36  ;;  %v6765_v43 = vor.u32 %v7943_v61, %v6762_v20  ;;  %v3514_v20 = vperm.slane %v8587_v3, 2 }
 0x2a2   :  { %v4768_v6 = vpop.f32.mrf.mxu2 }
 0x2a5   :  { %4933 = vmatpush.bf16.msrb.mxu3 %v6765_v43 }
 0x2a6   :  { %v4794_v51 = vpop.f32.mrf.mxu0 }
 0x2a7   :  { %v4807_v53 = vpop.f32.mrf.mxu1 }
 0x2a8   :  { %4934 = vmatmul.bf16.vlgmr.msrb.gmra.mxu3 %v8526_v16  ;;  %v7290_v16 = vld [vmem:[#allocation8 + $0x538] sm:$0xf0] }
 0x2a9   :  { %4978 = vmatpush.bf16.msra.mxu3 %v7389_v47  ;;  %v7293_v14 = vor.u32 %v8075_v25, %v7290_v16 }
 0x2ad   :  { %4979 = vmatpush.bf16.msra.mxu3 %v7373_v33 }
 0x2b1   :  { %4980 = vmatpush.bf16.msra.mxu3 %v7357_v56 }
 0x2b5   :  { %4981 = vmatpush.bf16.msra.mxu3 %v7341_v59 }
 0x2b9   :  { %4982 = vmatpush.bf16.msra.mxu3 %v7325_v41 }
 0x2bd   :  { %4983 = vmatpush.bf16.msra.mxu3 %v7309_v0 }
 0x2be   :  { %v4844_v2 = vpop.f32.mrf.mxu0 }
 0x2bf   :  { %v4857_v21 = vpop.f32.mrf.mxu1 }
 0x2c1   :  { %4984 = vmatpush.bf16.msra.mxu3 %v7293_v14 }
 0x2c5   :  { %4985 = vmatpush.bf16.msra.mxu3 %v7277_v5 }
 0x2c6   :  { %v4846_v10 = vpop.f32.mrf.mxu0 }
 0x2c7   :  { %v4859_v11 = vpop.f32.mrf.mxu1 }
 0x2c8   :  { %4986 = vmatmul.bf16.vlgmr.msra.gmra.mxu3 %v8562_v18  ;;  %v4727_v12 = vpop.f32.mrf.mxu3  ;;  %v4818_v48 = vpop.f32.mrf.mxu2  ;;  %v5013_v11 = vperm.slane %v5008_v8, 3 }
 0x2c9   :  { %v4728_v15 = vadd.f32 %v4727_v12, %v4715_v55 }
 0x2cb   :  { %v5004_v7 = vmax.f32 %v4728_v15, 0.0 }
 0x2cd   :  { %v5018_v35 = vmul.f32 %v5010_v31, %v5004_v7 }
 0x2d0   :  { %v4729_v22 = vpop.f32.mrf.mxu3  ;;  %v4820_v60 = vpop.f32.mrf.mxu2 }
 0x2d1   :  { %v8146_v22 = vld [vmem:[#allocation13] ss:$0 sm:$0xff] }
 0x2d8   :  { %v4779_v24 = vpop.f32.mrf.mxu3 }
 0x2d9   :  { %v4780_v27 = vadd.f32 %v4779_v24, %v4767_v17 }
 0x2da   :  { %v4870_v28 = vpop.f32.mrf.mxu2 }
 0x2db   :  { %v4793_v29 = vadd.f32 %v4792_v39, %v4780_v27 }
 0x2dd   :  { %v4806_v30 = vadd.f32 %v4805_v50, %v4793_v29 }
 0x2de   :  { %v4896_v9 = vpop.f32.mrf.mxu0 }
 0x2df   :  { %v4909_v63 = vpop.f32.mrf.mxu1  ;;  %v4819_v34 = vadd.f32 %v4818_v48, %v4806_v30 }
 0x2e0   :  { %v4781_v18 = vpop.f32.mrf.mxu3 }
 0x2e1   :  { %v5005_v45 = vmax.f32 %v4819_v34, 0.0 }
 0x2e2   :  { %v4872_v55 = vpop.f32.mrf.mxu2 }
 0x2e3   :  { %v5019_v36 = vmul.f32 %v5011_v32, %v5005_v45 }
 0x2e5   :  { %v5022_v61 = vadd.f32 %v5019_v36, %v5018_v35 }
 0x2e6   :  { %v4898_v19 = vpop.f32.mrf.mxu0 }
 0x2e7   :  { %v4911_v26 = vpop.f32.mrf.mxu1 }
 0x2eb   :  { %v4831_v42 = vpop.f32.mrf.mxu3  ;;  %v4922_v23 = vpop.f32.mrf.mxu2 }
 0x2ec   :  { %v4832_v46 = vadd.f32 %v4831_v42, %v3514_v20  ;;  %v4923_v0 = vadd.f32 %v4922_v23, %v3515_v38 }
 0x2ee   :  { %v4845_v43 = vadd.f32 %v4844_v2, %v4832_v46 }
 0x2f0   :  { %v4858_v13 = vadd.f32 %v4857_v21, %v4845_v43 }
 0x2f2   :  { %v4871_v50 = vadd.f32 %v4870_v28, %v4858_v13 }
 0x2f3   :  { %v4833_v54 = vpop.f32.mrf.mxu3  ;;  %v4924_v33 = vpop.f32.mrf.mxu2 }
 0x2fe   :  { %v4948_v47 = vpop.f32.mrf.mxu0 }
 0x2ff   :  { %v4961_v39 = vpop.f32.mrf.mxu1 }
 0x306   :  { %v4950_v51 = vpop.f32.mrf.mxu0 }
 0x307   :  { %v4963_v37 = vpop.f32.mrf.mxu1 }
 0x30b   :  { %v4883_v52 = vpop.f32.mrf.mxu3 }
 0x30c   :  { %v4884_v53 = vadd.f32 %v4883_v52, %v4871_v50 }
 0x30e   :  { %v4897_v17 = vadd.f32 %v4896_v9, %v4884_v53 }
 0x30f   :  { %v4974_v4 = vpop.f32.mrf.mxu2 }
 0x310   :  { %v4910_v56 = vadd.f32 %v4909_v63, %v4897_v17 }
 0x312   :  { %v5006_v59 = vmax.f32 %v4910_v56, 0.0 }
 0x313   :  { %v4885_v49 = vpop.f32.mrf.mxu3 }
 0x314   :  { %v5020_v40 = vmul.f32 %v5012_v58, %v5006_v59 }
 0x316   :  { %v5023_v41 = vadd.f32 %v5022_v61, %v5020_v40 }
 0x317   :  { %v4976_v6 = vpop.f32.mrf.mxu2 }
 0x31e   :  { %v5000_v57 = vpop.f32.mrf.mxu0 }
 0x326   :  { %v5002_v62 = vpop.f32.mrf.mxu0 }
 0x32b   :  { %v4935_v25 = vpop.f32.mrf.mxu3 }
 0x32c   :  { %v4936_v16 = vadd.f32 %v4935_v25, %v4923_v0 }
 0x32e   :  { %v4949_v14 = vadd.f32 %v4948_v47, %v4936_v16 }
 0x330   :  { %v4962_v44 = vadd.f32 %v4961_v39, %v4949_v14 }
 0x332   :  { %v4975_v2 = vadd.f32 %v4974_v4, %v4962_v44 }
 0x333   :  { %v4937_v1 = vpop.f32.mrf.mxu3 }
 0x34b   :  { %v4987_v21 = vpop.f32.mrf.mxu3 }
 0x34c   :  { %v4988_v5 = vadd.f32 %v4987_v21, %v4975_v2 }
 0x34e   :  { %v5001_v10 = vadd.f32 %v5000_v57, %v4988_v5 }
 0x350   :  { %v5007_v12 = vmax.f32 %v5001_v10, 0.0 }
 0x352   :  { %v5021_v15 = vmul.f32 %v5013_v11, %v5007_v12 }
 0x353   :  { %v4989_v48 = vpop.f32.mrf.mxu3 }
 0x354   :  { %v5024_v9 = vadd.f32 %v5023_v41, %v5021_v15 }
 0x356   :  { %5025 = vadd.xlane.f32.xlu0 %v5024_v9 }
 0x3c9   :  { %v5026_v63 = vpop.xlane.xlu0 %5025 }
 0x3ca   :  { %v5031_v3 = vadd.f32 %v8146_v22, %v5026_v63 }
 0x3cc   :  { %v5032_v60 = vmax.f32 %v5031_v3, 0.0 }
 0x3ce   :  { %5033 = vst [vmem:[#allocation14] sm:$0xff] %v5032_v60 }
 0x3cf   :  { %5044 = dma.vmem_to_hbm [thread:$0]  %s5040_s6, 128, %s5042_s14, [#allocation4]  }
 0x3d0   :  { %8349 = dma.done.wait [#allocation4], 128  }
 0x3d1   :  { %8350 = vsyncadd [#allocation4], 4294967168 }
 0x3d2   :  { %5049 = vsyncpa [#allocation3], 1 }
 0x3d3   :  { %5050 = vsyncpa [#allocation6], 1 }
 0x3d4   :  { %5051 = vsyncpa [#allocation9], 1 }
 0x3d5   :  { %5052 = vsyncpa [#allocation12], 1 }
 0x3d6   :  { %5053 = vsyncpa [#allocation4], 1 }

</bundles_post_ra>
